<compile_context>
chip_gen: v6e
topology: v6e:2x2x1
jax: 0.10.0
libtpu: 0.0.40
codegen_flags: <defaults>
</compile_context>

<pallas_src>
import math
import functools

import jax
import jax.numpy as jnp
from jax import lax
from jax.experimental import pallas as pl
from jax.experimental.pallas import tpu as pltpu


# dot_general dimension numbers (2-D), same naming as the flash-attention ops:
#   NT: contract last dim of both  -> A (M,C) x B (N,C) -> (M,N)   (rhs "transposed")
#   TN: contract first dim of both -> A (C,M) x B (C,N) -> (M,N)   (lhs "transposed")
_NT = (((1,), (1,)), ((), ()))
_TN = (((0,), (0,)), ((), ()))


# ----------------------------------------------------------------------------
# Kernel A: fused attention sub-block (one grid step per batch element)
#   LayerNorm + Q/K/V projections + Linformer seq-projection + per-head softmax
#   attention + output projection + bias + residual, all in VMEM.
# ----------------------------------------------------------------------------
def _attn_block_kernel(x_ref, g_ref, beta_ref, wq_ref, wk_ref, wv_ref,
                       pk_ref, pv_ref, wout_ref, bout_ref, o_ref,
                       *, heads, dim_head):
    x = x_ref[0].astype(jnp.float32)                               # (N, D)

    # LayerNorm (biased variance, eps=1e-5 -- matches nn.LayerNorm)
    mu = jnp.mean(x, axis=-1, keepdims=True)
    xc = x - mu
    var = jnp.mean(xc * xc, axis=-1, keepdims=True)
    xn = xc * lax.rsqrt(var + 1e-5) * g_ref[...].astype(jnp.float32) \
         + beta_ref[...].astype(jnp.float32)                       # (N, D)

    # Three separate Q/K/V projections (no fused-QKV lane-unaligned split).
    # Weights are PyTorch layout (HD, D); contracting the D axis of both
    # operands yields head-dim-major (HD, N) activations directly, so the
    # per-head slicing below lands on the 8-aligned sublane axis.
    # W_q is pre-scaled by dim_head ** -0.5 at init (scale folded in).
    qT = lax.dot_general(wq_ref[...].astype(jnp.float32), xn, _NT,
                         preferred_element_type=jnp.float32)       # (HD, N)
    kT = lax.dot_general(wk_ref[...].astype(jnp.float32), xn, _NT,
                         preferred_element_type=jnp.float32)       # (HD, N)
    vT = lax.dot_general(wv_ref[...].astype(jnp.float32), xn, _NT,
                         preferred_element_type=jnp.float32)       # (HD, N)

    # Linformer sequence projection, einsum('bnd,nk->bkd') in transposed form:
    #   keysT[d, k] = sum_n kT[d, n] * proj_k[n, k]  (proj used untransposed).
    keysT = jnp.dot(kT, pk_ref[...].astype(jnp.float32),
                    preferred_element_type=jnp.float32)            # (HD, K)
    valsT = jnp.dot(vT, pv_ref[...].astype(jnp.float32),
                    preferred_element_type=jnp.float32)            # (HD, K)

    # Per-head attention.  Each slice [h*DH:(h+1)*DH, :] is a sublane slice at
    # an 8-aligned offset (free).  attn@V contracts K with output dim_head
    # (exactly the required FLOPs); per-head outputs are (DH, N) and stack
    # along sublanes -- also free.  Static Python loop => fully unrolled.
    ctx_parts = []
    for h in range(heads):
        lo = h * dim_head
        hi = lo + dim_head
        qh = qT[lo:hi, :]                                          # (DH, N)
        kh = keysT[lo:hi, :]                                       # (DH, K)
        vh = valsT[lo:hi, :]                                       # (DH, K)
        dots = lax.dot_general(qh, kh, _TN,
                               preferred_element_type=jnp.float32)  # (N, K)
        m = jnp.max(dots, axis=-1, keepdims=True)
        p = jnp.exp(dots - m)
        p = p * pl.reciprocal(jnp.sum(p, axis=-1, keepdims=True), approx=True)
        ctx_parts.append(
            lax.dot_general(vh, p, _NT,
                            preferred_element_type=jnp.float32))    # (DH, N)
    outT = jnp.concatenate(ctx_parts, axis=0)                       # (HD, N)

    # Single output projection after the head loop: (N, HD) @ (HD, D) in
    # TN form (outT is head-major), result is a lane-dense (N, D) slab.
    y = lax.dot_general(outT, wout_ref[...].astype(jnp.float32), _TN,
                        preferred_element_type=jnp.float32)         # (N, D)
    o_ref[0] = (y + bout_ref[...].astype(jnp.float32) + x).astype(o_ref.dtype)


# ----------------------------------------------------------------------------
# Kernel B: fused FFN sub-block, tiled over rows of (B*N)
#   LayerNorm + W1 + exact(erf) GELU + W2 + bias + residual.
# ----------------------------------------------------------------------------
def _ffn_block_kernel(x_ref, g_ref, beta_ref, w1_ref, b1_ref, w2_ref, b2_ref,
                      o_ref):
    x = x_ref[...].astype(jnp.float32)                             # (TM, D)
    mu = jnp.mean(x, axis=-1, keepdims=True)
    xc = x - mu
    var = jnp.mean(xc * xc, axis=-1, keepdims=True)
    xn = xc * lax.rsqrt(var + 1e-5) * g_ref[...].astype(jnp.float32) \
         + beta_ref[...].astype(jnp.float32)
    h = jnp.dot(xn, w1_ref[...].astype(jnp.float32),
                preferred_element_type=jnp.float32) + b1_ref[...].astype(jnp.float32)
    # exact (erf) GELU -- matches nn.GELU() default
    h = 0.5 * h * (1.0 + lax.erf(h * (1.0 / math.sqrt(2.0))))
    y = jnp.dot(h, w2_ref[...].astype(jnp.float32),
                preferred_element_type=jnp.float32) + b2_ref[...].astype(jnp.float32)
    o_ref[...] = (y + x).astype(o_ref.dtype)                       # + residual


# ----------------------------------------------------------------------------
# pallas_call wrappers
# ----------------------------------------------------------------------------
def attention_block(x, p):
    B, N, D = x.shape
    H, DH, K = p["heads"], p["dim_head"], p["k"]
    HD = H * DH
    kern = functools.partial(_attn_block_kernel, heads=H, dim_head=DH)
    # grid=(B,) "parallel": shards batch across TensorCores on multi-TC chips;
    # on single-TC chips it is a short serial loop (negligible at small B).
    # TODO(synk): for very long sequences on v7x (64 MiB VMEM) add a query-tile
    # grid axis over N and accumulate the Linformer projection over N-tiles.
    return pl.pallas_call(
        kern,
        out_shape=jax.ShapeDtypeStruct((B, N, D), x.dtype),
        grid=(B,),
        in_specs=[
            pl.BlockSpec((1, N, D), lambda b: (b, 0, 0)),     # x (per batch)
            pl.BlockSpec((1, D), lambda b: (0, 0)),           # ln gamma
            pl.BlockSpec((1, D), lambda b: (0, 0)),           # ln beta
            pl.BlockSpec((HD, D), lambda b: (0, 0)),          # W_q (pre-scaled)
            pl.BlockSpec((HD, D), lambda b: (0, 0)),          # W_k
            pl.BlockSpec((HD, D), lambda b: (0, 0)),          # W_v
            pl.BlockSpec((N, K), lambda b: (0, 0)),           # proj_k
            pl.BlockSpec((N, K), lambda b: (0, 0)),           # proj_v
            pl.BlockSpec((HD, D), lambda b: (0, 0)),          # W_out (in, out)
            pl.BlockSpec((1, D), lambda b: (0, 0)),           # b_out
        ],
        out_specs=pl.BlockSpec((1, N, D), lambda b: (b, 0, 0)),
        compiler_params=pltpu.CompilerParams(
            dimension_semantics=("parallel",),
            vmem_limit_bytes=32 * 1024 * 1024),
    )(x, p["ln_g"].reshape(1, D), p["ln_b"].reshape(1, D),
      p["w_q_scaled"], p["w_k"], p["w_v"], p["proj_k"], p["proj_v"],
      p["w_out"], p["b_out"].reshape(1, D))


def _pick_row_tile(m):
    # Larger tiles amortize the ~0.35us/step grid overhead and keep stores
    # dense; no ">= 2 steps" constraint (single-TC chips don't need it, and at
    # production M >= 1024 a 512-row tile still yields multiple parallel steps).
    for t in (512, 256, 128, 64, 32, 16, 8):
        if m % t == 0:
            return t
    return m


def ffn_block(x1, p):
    B, N, D = x1.shape
    M = B * N
    Dff = p["w1"].shape[1]
    TM = _pick_row_tile(M)
    xf = x1.reshape(M, D)
    out = pl.pallas_call(
        _ffn_block_kernel,
        out_shape=jax.ShapeDtypeStruct((M, D), x1.dtype),
        grid=(M // TM,),
        in_specs=[
            pl.BlockSpec((TM, D), lambda i: (i, 0)),          # x1 row tile
            pl.BlockSpec((1, D), lambda i: (0, 0)),           # ln gamma
            pl.BlockSpec((1, D), lambda i: (0, 0)),           # ln beta
            pl.BlockSpec((D, Dff), lambda i: (0, 0)),         # W1
            pl.BlockSpec((1, Dff), lambda i: (0, 0)),         # b1
            pl.BlockSpec((Dff, D), lambda i: (0, 0)),         # W2
            pl.BlockSpec((1, D), lambda i: (0, 0)),           # b2
        ],
        out_specs=pl.BlockSpec((TM, D), lambda i: (i, 0)),
        compiler_params=pltpu.CompilerParams(
            dimension_semantics=("parallel",),
            vmem_limit_bytes=32 * 1024 * 1024),
    )(xf, p["ln_g"].reshape(1, D), p["ln_b"].reshape(1, D),
      p["w1"], p["b1"].reshape(1, Dff), p["w2"], p["b2"].reshape(1, D))
    return out.reshape(B, N, D)


def linformer_block_forward(x, p):
    # TODO(synk): dropout layers are treated as identity (inference / p=0.0).
    x1 = attention_block(x, p)     # LN -> Linformer attention -> +residual
    return ffn_block(x1, p)        # LN -> FFN -> +residual (same LN params)


# ----------------------------------------------------------------------------
# Pure-JAX reference (sanity check of the Pallas path)
# ----------------------------------------------------------------------------
def reference_forward(x, p):
    H, DH, K = p["heads"], p["dim_head"], p["k"]
    B, N, D = x.shape
    HD = H * DH

    def ln(t):
        mu = jnp.mean(t, -1, keepdims=True)
        var = jnp.mean((t - mu) ** 2, -1, keepdims=True)
        return (t - mu) / jnp.sqrt(var + 1e-5) * p["ln_g"] + p["ln_b"]

    residual = x
    xn = ln(x)
    q = xn @ p["w_q"].T
    kk = xn @ p["w_k"].T
    vv = xn @ p["w_v"].T
    keys = jnp.einsum("bnd,nk->bkd", kk, p["proj_k"])
    values = jnp.einsum("bnd,nk->bkd", vv, p["proj_v"])
    qh = q.reshape(B, N, H, DH).transpose(0, 2, 1, 3)
    kh = keys.reshape(B, K, H, DH).transpose(0, 2, 1, 3)
    vh = values.reshape(B, K, H, DH).transpose(0, 2, 1, 3)
    dots = jnp.einsum("bhnd,bhkd->bhnk", qh, kh) * DH ** -0.5
    attn = jax.nn.softmax(dots, axis=-1)
    o = jnp.einsum("bhnk,bhkd->bhnd", attn, vh)
    o = o.transpose(0, 2, 1, 3).reshape(B, N, HD)
    x1 = o @ p["w_out"] + p["b_out"] + residual
    x2 = ln(x1)
    h = x2 @ p["w1"] + p["b1"]
    h = 0.5 * h * (1.0 + lax.erf(h / math.sqrt(2.0)))
    return h @ p["w2"] + p["b2"] + x1


# ----------------------------------------------------------------------------
# Deterministic parameter init (mirrors PyTorch shapes; synthetic values)
# ----------------------------------------------------------------------------
def init_params(key, d_model, d_ffn, seq_len, heads=8, k=256):
    dim_head = d_model // heads
    HD = heads * dim_head
    ks = jax.random.split(key, 11)
    u = lambda kk, shape, bound: jax.random.uniform(
        kk, shape, jnp.float32, minval=-bound, maxval=bound)
    bq = 1.0 / math.sqrt(d_model)
    scale = dim_head ** -0.5
    # Q/K/V kept in PyTorch nn.Linear layout (out_features, in_features).
    w_q = u(ks[0], (HD, d_model), bq)
    w_k = u(ks[1], (HD, d_model), bq)
    w_v = u(ks[2], (HD, d_model), bq)
    # TODO(synk): weights could be stored in bfloat16 (kernels upcast + f32
    # accumulate already); kept f32 here for exact parity with the f32 module.
    return {
        "heads": heads, "dim_head": dim_head, "k": k,
        "ln_g": jnp.ones((d_model,), jnp.float32),
        "ln_b": jnp.zeros((d_model,), jnp.float32),
        "w_q": w_q, "w_k": w_k, "w_v": w_v,
        "w_q_scaled": w_q * scale,          # attention scale folded in at init
        "proj_k": u(ks[3], (seq_len, k), 1.0 / math.sqrt(k)),
        "proj_v": u(ks[4], (seq_len, k), 1.0 / math.sqrt(k)),
        # to_out weight pre-transposed to (in=HD, out=D) once at init
        "w_out": u(ks[5], (HD, d_model), 1.0 / math.sqrt(HD)),
        "b_out": u(ks[6], (d_model,), 1.0 / math.sqrt(HD)),
        # FFN weights pre-transposed to (in, out)
        "w1": u(ks[7], (d_model, d_ffn), bq),
        "b1": u(ks[8], (d_ffn,), bq),
        "w2": u(ks[9], (d_ffn, d_model), 1.0 / math.sqrt(d_ffn)),
        "b2": u(ks[10], (d_model,), 1.0 / math.sqrt(d_ffn)),
    }


if __name__ == "__main__":
    B, N, D, DFF = 2, 64, 64, 128          # seq_len must equal the module's seq_len
    key = jax.random.PRNGKey(0)
    kx, kp = jax.random.split(key)
    x = jax.random.normal(kx, (B, N, D), jnp.float32)
    params = init_params(kp, D, DFF, N, heads=8, k=256)

    out = jax.block_until_ready(linformer_block_forward(x, params))
    ref = jax.block_until_ready(reference_forward(x, params))

    assert out.shape == (B, N, D)
    assert bool(jnp.all(jnp.isfinite(out)))
    assert bool(jnp.allclose(out, ref, atol=5e-2, rtol=5e-2)), "mismatch vs reference"
    print("KERNEL_OK")
</pallas_src>

<mosaic_0001>
module attributes {stable_mosaic.version = 11 : i64} {
  func.func @_attn_block_kernel(%arg0: i32, %arg1: memref<1x64x64xf32, #tpu.memory_space<vmem>>, %arg2: memref<1x64xf32, #tpu.memory_space<vmem>>, %arg3: memref<1x64xf32, #tpu.memory_space<vmem>>, %arg4: memref<64x64xf32, #tpu.memory_space<vmem>>, %arg5: memref<64x64xf32, #tpu.memory_space<vmem>>, %arg6: memref<64x64xf32, #tpu.memory_space<vmem>>, %arg7: memref<64x256xf32, #tpu.memory_space<vmem>>, %arg8: memref<64x256xf32, #tpu.memory_space<vmem>>, %arg9: memref<64x64xf32, #tpu.memory_space<vmem>>, %arg10: memref<1x64xf32, #tpu.memory_space<vmem>>, %arg11: memref<1x64x64xf32, #tpu.memory_space<vmem>>) attributes {dimension_semantics = [#tpu.dimension_semantics<parallel>], iteration_bounds = array<i64: 2>, scalar_prefetch = 0 : i64, scratch_operands = 0 : i64, tpu.core_type = #tpu.core_type<tc>, window_params = [{transform_indices = @transform_0, window_bounds = array<i64: 1, 64, 64>}, {pipeline_mode = #tpu.pipeline_mode<synchronous>, transform_indices = @transform_1, window_bounds = array<i64: 1, 64>}, {pipeline_mode = #tpu.pipeline_mode<synchronous>, transform_indices = @transform_2, window_bounds = array<i64: 1, 64>}, {pipeline_mode = #tpu.pipeline_mode<synchronous>, transform_indices = @transform_3, window_bounds = array<i64: 64, 64>}, {pipeline_mode = #tpu.pipeline_mode<synchronous>, transform_indices = @transform_4, window_bounds = array<i64: 64, 64>}, {pipeline_mode = #tpu.pipeline_mode<synchronous>, transform_indices = @transform_5, window_bounds = array<i64: 64, 64>}, {pipeline_mode = #tpu.pipeline_mode<synchronous>, transform_indices = @transform_6, window_bounds = array<i64: 64, 256>}, {pipeline_mode = #tpu.pipeline_mode<synchronous>, transform_indices = @transform_7, window_bounds = array<i64: 64, 256>}, {pipeline_mode = #tpu.pipeline_mode<synchronous>, transform_indices = @transform_8, window_bounds = array<i64: 64, 64>}, {pipeline_mode = #tpu.pipeline_mode<synchronous>, transform_indices = @transform_9, window_bounds = array<i64: 1, 64>}, {transform_indices = @transform_10, window_bounds = array<i64: 1, 64, 64>}]} {
    %c0 = arith.constant 0 : index
    %c0_0 = arith.constant 0 : index
    %c0_1 = arith.constant 0 : index
    %0 = vector.load %arg1[%c0, %c0_0, %c0_1] : memref<1x64x64xf32, #tpu.memory_space<vmem>>, vector<1x64x64xf32>
    %1 = vector.shape_cast %0 : vector<1x64x64xf32> to vector<64x64xf32>
    %cst = arith.constant dense<0.000000e+00> : vector<64xf32>
    %2 = vector.multi_reduction <add>, %1, %cst [1] : vector<64x64xf32> to vector<64xf32>
    %3 = vector.shape_cast %2 : vector<64xf32> to vector<64x1xf32>
    %cst_2 = arith.constant 6.400000e+01 : f32
    %4 = vector.broadcast %cst_2 : f32 to vector<64x1xf32>
    %5 = arith.divf %3, %4 : vector<64x1xf32>
    %6 = vector.broadcast %5 : vector<64x1xf32> to vector<64x64xf32>
    %7 = arith.subf %1, %6 : vector<64x64xf32>
    %8 = arith.mulf %7, %7 : vector<64x64xf32>
    %cst_3 = arith.constant dense<0.000000e+00> : vector<64xf32>
    %9 = vector.multi_reduction <add>, %8, %cst_3 [1] : vector<64x64xf32> to vector<64xf32>
    %10 = vector.shape_cast %9 : vector<64xf32> to vector<64x1xf32>
    %cst_4 = arith.constant 6.400000e+01 : f32
    %11 = vector.broadcast %cst_4 : f32 to vector<64x1xf32>
    %12 = arith.divf %10, %11 : vector<64x1xf32>
    %cst_5 = arith.constant 9.99999974E-6 : f32
    %13 = vector.broadcast %cst_5 : f32 to vector<64x1xf32>
    %14 = arith.addf %12, %13 : vector<64x1xf32>
    %15 = math.rsqrt %14 : vector<64x1xf32>
    %16 = vector.broadcast %15 : vector<64x1xf32> to vector<64x64xf32>
    %17 = arith.mulf %7, %16 : vector<64x64xf32>
    %c0_6 = arith.constant 0 : index
    %c0_7 = arith.constant 0 : index
    %18 = vector.load %arg2[%c0_6, %c0_7] : memref<1x64xf32, #tpu.memory_space<vmem>>, vector<1x64xf32>
    %19 = vector.broadcast %18 : vector<1x64xf32> to vector<64x64xf32>
    %20 = arith.mulf %17, %19 : vector<64x64xf32>
    %c0_8 = arith.constant 0 : index
    %c0_9 = arith.constant 0 : index
    %21 = vector.load %arg3[%c0_8, %c0_9] : memref<1x64xf32, #tpu.memory_space<vmem>>, vector<1x64xf32>
    %22 = vector.broadcast %21 : vector<1x64xf32> to vector<64x64xf32>
    %23 = arith.addf %20, %22 : vector<64x64xf32>
    %c0_10 = arith.constant 0 : index
    %c0_11 = arith.constant 0 : index
    %24 = vector.load %arg4[%c0_10, %c0_11] : memref<64x64xf32, #tpu.memory_space<vmem>>, vector<64x64xf32>
    %cst_12 = arith.constant dense<0.000000e+00> : vector<64x64xf32>
    %25 = tpu.matmul %24, %23, %cst_12 {dimension_numbers = #tpu.dot_dimension_numbers<[1], [1], [0], [0], [0, 0, 1, 0], [], []>} : vector<64x64xf32>, vector<64x64xf32>, vector<64x64xf32> -> vector<64x64xf32>
    %c0_13 = arith.constant 0 : index
    %c0_14 = arith.constant 0 : index
    %26 = vector.load %arg5[%c0_13, %c0_14] : memref<64x64xf32, #tpu.memory_space<vmem>>, vector<64x64xf32>
    %cst_15 = arith.constant dense<0.000000e+00> : vector<64x64xf32>
    %27 = tpu.matmul %26, %23, %cst_15 {dimension_numbers = #tpu.dot_dimension_numbers<[1], [1], [0], [0], [0, 0, 1, 0], [], []>} : vector<64x64xf32>, vector<64x64xf32>, vector<64x64xf32> -> vector<64x64xf32>
    %c0_16 = arith.constant 0 : index
    %c0_17 = arith.constant 0 : index
    %28 = vector.load %arg6[%c0_16, %c0_17] : memref<64x64xf32, #tpu.memory_space<vmem>>, vector<64x64xf32>
    %cst_18 = arith.constant dense<0.000000e+00> : vector<64x64xf32>
    %29 = tpu.matmul %28, %23, %cst_18 {dimension_numbers = #tpu.dot_dimension_numbers<[1], [1], [0], [0], [0, 0, 1, 0], [], []>} : vector<64x64xf32>, vector<64x64xf32>, vector<64x64xf32> -> vector<64x64xf32>
    %c0_19 = arith.constant 0 : index
    %c0_20 = arith.constant 0 : index
    %30 = vector.load %arg7[%c0_19, %c0_20] : memref<64x256xf32, #tpu.memory_space<vmem>>, vector<64x256xf32>
    %cst_21 = arith.constant dense<0.000000e+00> : vector<64x256xf32>
    %31 = tpu.matmul %27, %30, %cst_21 {dimension_numbers = #tpu.dot_dimension_numbers<[1], [0], [0], [1], [0, 0, 1, 1], [], []>} : vector<64x64xf32>, vector<64x256xf32>, vector<64x256xf32> -> vector<64x256xf32>
    %c0_22 = arith.constant 0 : index
    %c0_23 = arith.constant 0 : index
    %32 = vector.load %arg8[%c0_22, %c0_23] : memref<64x256xf32, #tpu.memory_space<vmem>>, vector<64x256xf32>
    %cst_24 = arith.constant dense<0.000000e+00> : vector<64x256xf32>
    %33 = tpu.matmul %29, %32, %cst_24 {dimension_numbers = #tpu.dot_dimension_numbers<[1], [0], [0], [1], [0, 0, 1, 1], [], []>} : vector<64x64xf32>, vector<64x256xf32>, vector<64x256xf32> -> vector<64x256xf32>
    %34 = vector.extract_strided_slice %25 {offsets = [0, 0], sizes = [8, 64], strides = [1, 1]} : vector<64x64xf32> to vector<8x64xf32>
    %35 = vector.extract_strided_slice %31 {offsets = [0, 0], sizes = [8, 256], strides = [1, 1]} : vector<64x256xf32> to vector<8x256xf32>
    %36 = vector.extract_strided_slice %33 {offsets = [0, 0], sizes = [8, 256], strides = [1, 1]} : vector<64x256xf32> to vector<8x256xf32>
    %cst_25 = arith.constant dense<0.000000e+00> : vector<64x256xf32>
    %37 = tpu.matmul %34, %35, %cst_25 {dimension_numbers = #tpu.dot_dimension_numbers<[0], [0], [1], [1], [0, 1, 1, 1], [], []>} : vector<8x64xf32>, vector<8x256xf32>, vector<64x256xf32> -> vector<64x256xf32>
    %cst_26 = arith.constant dense<0xFF800000> : vector<64xf32>
    %38 = vector.multi_reduction <maximumf>, %37, %cst_26 [1] : vector<64x256xf32> to vector<64xf32>
    %39 = vector.shape_cast %38 : vector<64xf32> to vector<64x1xf32>
    %40 = vector.broadcast %39 : vector<64x1xf32> to vector<64x256xf32>
    %41 = arith.subf %37, %40 : vector<64x256xf32>
    %42 = math.exp %41 : vector<64x256xf32>
    %cst_27 = arith.constant dense<0.000000e+00> : vector<64xf32>
    %43 = vector.multi_reduction <add>, %42, %cst_27 [1] : vector<64x256xf32> to vector<64xf32>
    %44 = vector.shape_cast %43 : vector<64xf32> to vector<64x1xf32>
    %45 = tpu.reciprocal %44 {approx = true} : vector<64x1xf32> -> vector<64x1xf32>
    %46 = vector.broadcast %45 : vector<64x1xf32> to vector<64x256xf32>
    %47 = arith.mulf %42, %46 : vector<64x256xf32>
    %cst_28 = arith.constant dense<0.000000e+00> : vector<8x64xf32>
    %48 = tpu.matmul %36, %47, %cst_28 {dimension_numbers = #tpu.dot_dimension_numbers<[1], [1], [0], [0], [0, 0, 1, 0], [], []>} : vector<8x256xf32>, vector<64x256xf32>, vector<8x64xf32> -> vector<8x64xf32>
    %49 = vector.extract_strided_slice %25 {offsets = [8, 0], sizes = [8, 64], strides = [1, 1]} : vector<64x64xf32> to vector<8x64xf32>
    %50 = vector.extract_strided_slice %31 {offsets = [8, 0], sizes = [8, 256], strides = [1, 1]} : vector<64x256xf32> to vector<8x256xf32>
    %51 = vector.extract_strided_slice %33 {offsets = [8, 0], sizes = [8, 256], strides = [1, 1]} : vector<64x256xf32> to vector<8x256xf32>
    %cst_29 = arith.constant dense<0.000000e+00> : vector<64x256xf32>
    %52 = tpu.matmul %49, %50, %cst_29 {dimension_numbers = #tpu.dot_dimension_numbers<[0], [0], [1], [1], [0, 1, 1, 1], [], []>} : vector<8x64xf32>, vector<8x256xf32>, vector<64x256xf32> -> vector<64x256xf32>
    %cst_30 = arith.constant dense<0xFF800000> : vector<64xf32>
    %53 = vector.multi_reduction <maximumf>, %52, %cst_30 [1] : vector<64x256xf32> to vector<64xf32>
    %54 = vector.shape_cast %53 : vector<64xf32> to vector<64x1xf32>
    %55 = vector.broadcast %54 : vector<64x1xf32> to vector<64x256xf32>
    %56 = arith.subf %52, %55 : vector<64x256xf32>
    %57 = math.exp %56 : vector<64x256xf32>
    %cst_31 = arith.constant dense<0.000000e+00> : vector<64xf32>
    %58 = vector.multi_reduction <add>, %57, %cst_31 [1] : vector<64x256xf32> to vector<64xf32>
    %59 = vector.shape_cast %58 : vector<64xf32> to vector<64x1xf32>
    %60 = tpu.reciprocal %59 {approx = true} : vector<64x1xf32> -> vector<64x1xf32>
    %61 = vector.broadcast %60 : vector<64x1xf32> to vector<64x256xf32>
    %62 = arith.mulf %57, %61 : vector<64x256xf32>
    %cst_32 = arith.constant dense<0.000000e+00> : vector<8x64xf32>
    %63 = tpu.matmul %51, %62, %cst_32 {dimension_numbers = #tpu.dot_dimension_numbers<[1], [1], [0], [0], [0, 0, 1, 0], [], []>} : vector<8x256xf32>, vector<64x256xf32>, vector<8x64xf32> -> vector<8x64xf32>
    %64 = vector.extract_strided_slice %25 {offsets = [16, 0], sizes = [8, 64], strides = [1, 1]} : vector<64x64xf32> to vector<8x64xf32>
    %65 = vector.extract_strided_slice %31 {offsets = [16, 0], sizes = [8, 256], strides = [1, 1]} : vector<64x256xf32> to vector<8x256xf32>
    %66 = vector.extract_strided_slice %33 {offsets = [16, 0], sizes = [8, 256], strides = [1, 1]} : vector<64x256xf32> to vector<8x256xf32>
    %cst_33 = arith.constant dense<0.000000e+00> : vector<64x256xf32>
    %67 = tpu.matmul %64, %65, %cst_33 {dimension_numbers = #tpu.dot_dimension_numbers<[0], [0], [1], [1], [0, 1, 1, 1], [], []>} : vector<8x64xf32>, vector<8x256xf32>, vector<64x256xf32> -> vector<64x256xf32>
    %cst_34 = arith.constant dense<0xFF800000> : vector<64xf32>
    %68 = vector.multi_reduction <maximumf>, %67, %cst_34 [1] : vector<64x256xf32> to vector<64xf32>
    %69 = vector.shape_cast %68 : vector<64xf32> to vector<64x1xf32>
    %70 = vector.broadcast %69 : vector<64x1xf32> to vector<64x256xf32>
    %71 = arith.subf %67, %70 : vector<64x256xf32>
    %72 = math.exp %71 : vector<64x256xf32>
    %cst_35 = arith.constant dense<0.000000e+00> : vector<64xf32>
    %73 = vector.multi_reduction <add>, %72, %cst_35 [1] : vector<64x256xf32> to vector<64xf32>
    %74 = vector.shape_cast %73 : vector<64xf32> to vector<64x1xf32>
    %75 = tpu.reciprocal %74 {approx = true} : vector<64x1xf32> -> vector<64x1xf32>
    %76 = vector.broadcast %75 : vector<64x1xf32> to vector<64x256xf32>
    %77 = arith.mulf %72, %76 : vector<64x256xf32>
    %cst_36 = arith.constant dense<0.000000e+00> : vector<8x64xf32>
    %78 = tpu.matmul %66, %77, %cst_36 {dimension_numbers = #tpu.dot_dimension_numbers<[1], [1], [0], [0], [0, 0, 1, 0], [], []>} : vector<8x256xf32>, vector<64x256xf32>, vector<8x64xf32> -> vector<8x64xf32>
    %79 = vector.extract_strided_slice %25 {offsets = [24, 0], sizes = [8, 64], strides = [1, 1]} : vector<64x64xf32> to vector<8x64xf32>
    %80 = vector.extract_strided_slice %31 {offsets = [24, 0], sizes = [8, 256], strides = [1, 1]} : vector<64x256xf32> to vector<8x256xf32>
    %81 = vector.extract_strided_slice %33 {offsets = [24, 0], sizes = [8, 256], strides = [1, 1]} : vector<64x256xf32> to vector<8x256xf32>
    %cst_37 = arith.constant dense<0.000000e+00> : vector<64x256xf32>
    %82 = tpu.matmul %79, %80, %cst_37 {dimension_numbers = #tpu.dot_dimension_numbers<[0], [0], [1], [1], [0, 1, 1, 1], [], []>} : vector<8x64xf32>, vector<8x256xf32>, vector<64x256xf32> -> vector<64x256xf32>
    %cst_38 = arith.constant dense<0xFF800000> : vector<64xf32>
    %83 = vector.multi_reduction <maximumf>, %82, %cst_38 [1] : vector<64x256xf32> to vector<64xf32>
    %84 = vector.shape_cast %83 : vector<64xf32> to vector<64x1xf32>
    %85 = vector.broadcast %84 : vector<64x1xf32> to vector<64x256xf32>
    %86 = arith.subf %82, %85 : vector<64x256xf32>
    %87 = math.exp %86 : vector<64x256xf32>
    %cst_39 = arith.constant dense<0.000000e+00> : vector<64xf32>
    %88 = vector.multi_reduction <add>, %87, %cst_39 [1] : vector<64x256xf32> to vector<64xf32>
    %89 = vector.shape_cast %88 : vector<64xf32> to vector<64x1xf32>
    %90 = tpu.reciprocal %89 {approx = true} : vector<64x1xf32> -> vector<64x1xf32>
    %91 = vector.broadcast %90 : vector<64x1xf32> to vector<64x256xf32>
    %92 = arith.mulf %87, %91 : vector<64x256xf32>
    %cst_40 = arith.constant dense<0.000000e+00> : vector<8x64xf32>
    %93 = tpu.matmul %81, %92, %cst_40 {dimension_numbers = #tpu.dot_dimension_numbers<[1], [1], [0], [0], [0, 0, 1, 0], [], []>} : vector<8x256xf32>, vector<64x256xf32>, vector<8x64xf32> -> vector<8x64xf32>
    %94 = vector.extract_strided_slice %25 {offsets = [32, 0], sizes = [8, 64], strides = [1, 1]} : vector<64x64xf32> to vector<8x64xf32>
    %95 = vector.extract_strided_slice %31 {offsets = [32, 0], sizes = [8, 256], strides = [1, 1]} : vector<64x256xf32> to vector<8x256xf32>
    %96 = vector.extract_strided_slice %33 {offsets = [32, 0], sizes = [8, 256], strides = [1, 1]} : vector<64x256xf32> to vector<8x256xf32>
    %cst_41 = arith.constant dense<0.000000e+00> : vector<64x256xf32>
    %97 = tpu.matmul %94, %95, %cst_41 {dimension_numbers = #tpu.dot_dimension_numbers<[0], [0], [1], [1], [0, 1, 1, 1], [], []>} : vector<8x64xf32>, vector<8x256xf32>, vector<64x256xf32> -> vector<64x256xf32>
    %cst_42 = arith.constant dense<0xFF800000> : vector<64xf32>
    %98 = vector.multi_reduction <maximumf>, %97, %cst_42 [1] : vector<64x256xf32> to vector<64xf32>
    %99 = vector.shape_cast %98 : vector<64xf32> to vector<64x1xf32>
    %100 = vector.broadcast %99 : vector<64x1xf32> to vector<64x256xf32>
    %101 = arith.subf %97, %100 : vector<64x256xf32>
    %102 = math.exp %101 : vector<64x256xf32>
    %cst_43 = arith.constant dense<0.000000e+00> : vector<64xf32>
    %103 = vector.multi_reduction <add>, %102, %cst_43 [1] : vector<64x256xf32> to vector<64xf32>
    %104 = vector.shape_cast %103 : vector<64xf32> to vector<64x1xf32>
    %105 = tpu.reciprocal %104 {approx = true} : vector<64x1xf32> -> vector<64x1xf32>
    %106 = vector.broadcast %105 : vector<64x1xf32> to vector<64x256xf32>
    %107 = arith.mulf %102, %106 : vector<64x256xf32>
    %cst_44 = arith.constant dense<0.000000e+00> : vector<8x64xf32>
    %108 = tpu.matmul %96, %107, %cst_44 {dimension_numbers = #tpu.dot_dimension_numbers<[1], [1], [0], [0], [0, 0, 1, 0], [], []>} : vector<8x256xf32>, vector<64x256xf32>, vector<8x64xf32> -> vector<8x64xf32>
    %109 = vector.extract_strided_slice %25 {offsets = [40, 0], sizes = [8, 64], strides = [1, 1]} : vector<64x64xf32> to vector<8x64xf32>
    %110 = vector.extract_strided_slice %31 {offsets = [40, 0], sizes = [8, 256], strides = [1, 1]} : vector<64x256xf32> to vector<8x256xf32>
    %111 = vector.extract_strided_slice %33 {offsets = [40, 0], sizes = [8, 256], strides = [1, 1]} : vector<64x256xf32> to vector<8x256xf32>
    %cst_45 = arith.constant dense<0.000000e+00> : vector<64x256xf32>
    %112 = tpu.matmul %109, %110, %cst_45 {dimension_numbers = #tpu.dot_dimension_numbers<[0], [0], [1], [1], [0, 1, 1, 1], [], []>} : vector<8x64xf32>, vector<8x256xf32>, vector<64x256xf32> -> vector<64x256xf32>
    %cst_46 = arith.constant dense<0xFF800000> : vector<64xf32>
    %113 = vector.multi_reduction <maximumf>, %112, %cst_46 [1] : vector<64x256xf32> to vector<64xf32>
    %114 = vector.shape_cast %113 : vector<64xf32> to vector<64x1xf32>
    %115 = vector.broadcast %114 : vector<64x1xf32> to vector<64x256xf32>
    %116 = arith.subf %112, %115 : vector<64x256xf32>
    %117 = math.exp %116 : vector<64x256xf32>
    %cst_47 = arith.constant dense<0.000000e+00> : vector<64xf32>
    %118 = vector.multi_reduction <add>, %117, %cst_47 [1] : vector<64x256xf32> to vector<64xf32>
    %119 = vector.shape_cast %118 : vector<64xf32> to vector<64x1xf32>
    %120 = tpu.reciprocal %119 {approx = true} : vector<64x1xf32> -> vector<64x1xf32>
    %121 = vector.broadcast %120 : vector<64x1xf32> to vector<64x256xf32>
    %122 = arith.mulf %117, %121 : vector<64x256xf32>
    %cst_48 = arith.constant dense<0.000000e+00> : vector<8x64xf32>
    %123 = tpu.matmul %111, %122, %cst_48 {dimension_numbers = #tpu.dot_dimension_numbers<[1], [1], [0], [0], [0, 0, 1, 0], [], []>} : vector<8x256xf32>, vector<64x256xf32>, vector<8x64xf32> -> vector<8x64xf32>
    %124 = vector.extract_strided_slice %25 {offsets = [48, 0], sizes = [8, 64], strides = [1, 1]} : vector<64x64xf32> to vector<8x64xf32>
    %125 = vector.extract_strided_slice %31 {offsets = [48, 0], sizes = [8, 256], strides = [1, 1]} : vector<64x256xf32> to vector<8x256xf32>
    %126 = vector.extract_strided_slice %33 {offsets = [48, 0], sizes = [8, 256], strides = [1, 1]} : vector<64x256xf32> to vector<8x256xf32>
    %cst_49 = arith.constant dense<0.000000e+00> : vector<64x256xf32>
    %127 = tpu.matmul %124, %125, %cst_49 {dimension_numbers = #tpu.dot_dimension_numbers<[0], [0], [1], [1], [0, 1, 1, 1], [], []>} : vector<8x64xf32>, vector<8x256xf32>, vector<64x256xf32> -> vector<64x256xf32>
    %cst_50 = arith.constant dense<0xFF800000> : vector<64xf32>
    %128 = vector.multi_reduction <maximumf>, %127, %cst_50 [1] : vector<64x256xf32> to vector<64xf32>
    %129 = vector.shape_cast %128 : vector<64xf32> to vector<64x1xf32>
    %130 = vector.broadcast %129 : vector<64x1xf32> to vector<64x256xf32>
    %131 = arith.subf %127, %130 : vector<64x256xf32>
    %132 = math.exp %131 : vector<64x256xf32>
    %cst_51 = arith.constant dense<0.000000e+00> : vector<64xf32>
    %133 = vector.multi_reduction <add>, %132, %cst_51 [1] : vector<64x256xf32> to vector<64xf32>
    %134 = vector.shape_cast %133 : vector<64xf32> to vector<64x1xf32>
    %135 = tpu.reciprocal %134 {approx = true} : vector<64x1xf32> -> vector<64x1xf32>
    %136 = vector.broadcast %135 : vector<64x1xf32> to vector<64x256xf32>
    %137 = arith.mulf %132, %136 : vector<64x256xf32>
    %cst_52 = arith.constant dense<0.000000e+00> : vector<8x64xf32>
    %138 = tpu.matmul %126, %137, %cst_52 {dimension_numbers = #tpu.dot_dimension_numbers<[1], [1], [0], [0], [0, 0, 1, 0], [], []>} : vector<8x256xf32>, vector<64x256xf32>, vector<8x64xf32> -> vector<8x64xf32>
    %139 = vector.extract_strided_slice %25 {offsets = [56, 0], sizes = [8, 64], strides = [1, 1]} : vector<64x64xf32> to vector<8x64xf32>
    %140 = vector.extract_strided_slice %31 {offsets = [56, 0], sizes = [8, 256], strides = [1, 1]} : vector<64x256xf32> to vector<8x256xf32>
    %141 = vector.extract_strided_slice %33 {offsets = [56, 0], sizes = [8, 256], strides = [1, 1]} : vector<64x256xf32> to vector<8x256xf32>
    %cst_53 = arith.constant dense<0.000000e+00> : vector<64x256xf32>
    %142 = tpu.matmul %139, %140, %cst_53 {dimension_numbers = #tpu.dot_dimension_numbers<[0], [0], [1], [1], [0, 1, 1, 1], [], []>} : vector<8x64xf32>, vector<8x256xf32>, vector<64x256xf32> -> vector<64x256xf32>
    %cst_54 = arith.constant dense<0xFF800000> : vector<64xf32>
    %143 = vector.multi_reduction <maximumf>, %142, %cst_54 [1] : vector<64x256xf32> to vector<64xf32>
    %144 = vector.shape_cast %143 : vector<64xf32> to vector<64x1xf32>
    %145 = vector.broadcast %144 : vector<64x1xf32> to vector<64x256xf32>
    %146 = arith.subf %142, %145 : vector<64x256xf32>
    %147 = math.exp %146 : vector<64x256xf32>
    %cst_55 = arith.constant dense<0.000000e+00> : vector<64xf32>
    %148 = vector.multi_reduction <add>, %147, %cst_55 [1] : vector<64x256xf32> to vector<64xf32>
    %149 = vector.shape_cast %148 : vector<64xf32> to vector<64x1xf32>
    %150 = tpu.reciprocal %149 {approx = true} : vector<64x1xf32> -> vector<64x1xf32>
    %151 = vector.broadcast %150 : vector<64x1xf32> to vector<64x256xf32>
    %152 = arith.mulf %147, %151 : vector<64x256xf32>
    %cst_56 = arith.constant dense<0.000000e+00> : vector<8x64xf32>
    %153 = tpu.matmul %141, %152, %cst_56 {dimension_numbers = #tpu.dot_dimension_numbers<[1], [1], [0], [0], [0, 0, 1, 0], [], []>} : vector<8x256xf32>, vector<64x256xf32>, vector<8x64xf32> -> vector<8x64xf32>
    %154 = tpu.concatenate %48, %63, %78, %93, %108, %123, %138, %153 in 0 : vector<8x64xf32>, vector<8x64xf32>, vector<8x64xf32>, vector<8x64xf32>, vector<8x64xf32>, vector<8x64xf32>, vector<8x64xf32>, vector<8x64xf32> -> vector<64x64xf32>
    %c0_57 = arith.constant 0 : index
    %c0_58 = arith.constant 0 : index
    %155 = vector.load %arg9[%c0_57, %c0_58] : memref<64x64xf32, #tpu.memory_space<vmem>>, vector<64x64xf32>
    %cst_59 = arith.constant dense<0.000000e+00> : vector<64x64xf32>
    %156 = tpu.matmul %154, %155, %cst_59 {dimension_numbers = #tpu.dot_dimension_numbers<[0], [0], [1], [1], [0, 1, 1, 1], [], []>} : vector<64x64xf32>, vector<64x64xf32>, vector<64x64xf32> -> vector<64x64xf32>
    %c0_60 = arith.constant 0 : index
    %c0_61 = arith.constant 0 : index
    %157 = vector.load %arg10[%c0_60, %c0_61] : memref<1x64xf32, #tpu.memory_space<vmem>>, vector<1x64xf32>
    %158 = vector.broadcast %157 : vector<1x64xf32> to vector<64x64xf32>
    %159 = arith.addf %156, %158 : vector<64x64xf32>
    %160 = arith.addf %159, %1 : vector<64x64xf32>
    %c0_62 = arith.constant 0 : index
    %c0_63 = arith.constant 0 : index
    %c0_64 = arith.constant 0 : index
    %161 = vector.load %arg11[%c0_62, %c0_63, %c0_64] : memref<1x64x64xf32, #tpu.memory_space<vmem>>, vector<1x64x64xf32>
    %162 = vector.shape_cast %161 : vector<1x64x64xf32> to vector<64x64xf32>
    %163 = vector.shape_cast %160 : vector<64x64xf32> to vector<1x64x64xf32>
    tpu.vector_store %arg11[%c0_62, %c0_63, %c0_64], %163 {strides = array<i32>} : memref<1x64x64xf32, #tpu.memory_space<vmem>>, vector<1x64x64xf32>,
    return
  }
  func.func @transform_0(%arg0: i32) -> (i32, i32, i32) {
    %c0_i32 = arith.constant 0 : i32
    %c0_i32_0 = arith.constant 0 : i32
    %c0_i32_1 = arith.constant 0 : i32
    return %arg0, %c0_i32, %c0_i32_0 : i32, i32, i32
  }
  func.func @transform_1(%arg0: i32) -> (i32, i32) {
    %c0_i32 = arith.constant 0 : i32
    %c0_i32_0 = arith.constant 0 : i32
    %c0_i32_1 = arith.constant 0 : i32
    return %c0_i32, %c0_i32_0 : i32, i32
  }
  func.func @transform_2(%arg0: i32) -> (i32, i32) {
    %c0_i32 = arith.constant 0 : i32
    %c0_i32_0 = arith.constant 0 : i32
    %c0_i32_1 = arith.constant 0 : i32
    return %c0_i32, %c0_i32_0 : i32, i32
  }
  func.func @transform_3(%arg0: i32) -> (i32, i32) {
    %c0_i32 = arith.constant 0 : i32
    %c0_i32_0 = arith.constant 0 : i32
    %c0_i32_1 = arith.constant 0 : i32
    return %c0_i32, %c0_i32_0 : i32, i32
  }
  func.func @transform_4(%arg0: i32) -> (i32, i32) {
    %c0_i32 = arith.constant 0 : i32
    %c0_i32_0 = arith.constant 0 : i32
    %c0_i32_1 = arith.constant 0 : i32
    return %c0_i32, %c0_i32_0 : i32, i32
  }
  func.func @transform_5(%arg0: i32) -> (i32, i32) {
    %c0_i32 = arith.constant 0 : i32
    %c0_i32_0 = arith.constant 0 : i32
    %c0_i32_1 = arith.constant 0 : i32
    return %c0_i32, %c0_i32_0 : i32, i32
  }
  func.func @transform_6(%arg0: i32) -> (i32, i32) {
    %c0_i32 = arith.constant 0 : i32
    %c0_i32_0 = arith.constant 0 : i32
    %c0_i32_1 = arith.constant 0 : i32
    return %c0_i32, %c0_i32_0 : i32, i32
  }
  func.func @transform_7(%arg0: i32) -> (i32, i32) {
    %c0_i32 = arith.constant 0 : i32
    %c0_i32_0 = arith.constant 0 : i32
    %c0_i32_1 = arith.constant 0 : i32
    return %c0_i32, %c0_i32_0 : i32, i32
  }
  func.func @transform_8(%arg0: i32) -> (i32, i32) {
    %c0_i32 = arith.constant 0 : i32
    %c0_i32_0 = arith.constant 0 : i32
    %c0_i32_1 = arith.constant 0 : i32
    return %c0_i32, %c0_i32_0 : i32, i32
  }
  func.func @transform_9(%arg0: i32) -> (i32, i32) {
    %c0_i32 = arith.constant 0 : i32
    %c0_i32_0 = arith.constant 0 : i32
    %c0_i32_1 = arith.constant 0 : i32
    return %c0_i32, %c0_i32_0 : i32, i32
  }
  func.func @transform_10(%arg0: i32) -> (i32, i32, i32) {
    %c0_i32 = arith.constant 0 : i32
    %c0_i32_0 = arith.constant 0 : i32
    %c0_i32_1 = arith.constant 0 : i32
    return %arg0, %c0_i32, %c0_i32_0 : i32, i32, i32
  }
}

</mosaic_0001>

<bundles_post_ra>
// kernel: tpu_custom_call.1
= control target key start
LH: loop header
LB: loop body
LE: loop exit
PB: predicated region body
PF: predicated region fallthrough
CT: control target
= control target key end

     0   :  { %s7061_s0 = inlined_call_operand.hbm [shape: f32[2,64,64], index: 0, kind: input, shape index: {}]   ;;  %s7062_s1 = inlined_call_operand.vmem [shape: f32[1,64], index: 1, kind: input, shape index: {}]   ;;  %s7063_s2 = inlined_call_operand.vmem [shape: f32[1,64], index: 2, kind: input, shape index: {}]   ;;  %s7064_s3 = inlined_call_operand.hbm [shape: f32[64,64], index: 3, kind: input, shape index: {}]   ;;  %s7065_s4 = inlined_call_operand.hbm [shape: f32[64,64], index: 4, kind: input, shape index: {}]   ;;  %s7066_s5 = inlined_call_operand.hbm [shape: f32[64,64], index: 5, kind: input, shape index: {}]   ;;  %s7067_s6 = inlined_call_operand.hbm [shape: f32[64,256], index: 6, kind: input, shape index: {}]   ;;  %s7068_s7 = inlined_call_operand.hbm [shape: f32[64,256], index: 7, kind: input, shape index: {}]   ;;  %s7069_s8 = inlined_call_operand.hbm [shape: f32[64,64], index: 8, kind: input, shape index: {}]   ;;  %s7070_s9 = inlined_call_operand.vmem [shape: f32[1,64], index: 9, kind: input, shape index: {}]   ;;  %s7071_s10 = inlined_call_operand.hbm [shape: f32[2,64,64], index: 10, kind: output, shape index: {}]  }
   0x1   :  { %7080 = sst [smem:[#allocation22_spill]] %s7064_s3 }
   0x2   :  { %7081 = sst [smem:[#allocation23_spill]] %s7065_s4 }
   0x3   :  { %7082 = sst [smem:[#allocation24_spill]] %s7066_s5 }
   0x4   :  { %7083 = sst [smem:[#allocation25_spill]] %s7067_s6 }
   0x5   :  { %15 = vsyncpa [#allocation3], 0 }
   0x6   :  { %17 = vsyncpa [#allocation3 + $0x1], 0 }
   0x7   :  { %18 = vsyncpa [#allocation6], 0 }
   0x8   :  { %19 = vsyncpa [#allocation9], 0 }
   0x9   :  { %20 = vsyncpa [#allocation12], 0 }
   0xa   :  { %21 = vsyncpa [#allocation4], 0 }
   0xb   :  { %23 = vsyncpa [#allocation4 + $0x1], 0  ;;  %s5756_s13 = smov 0   ;;  %s5758_s14 = smov 0  }
   0xc   :  { %s5760_s15 = smov 0   ;;  %s5762_s16 = smov 0  }
   0xd LB: > { %s5686_s17 = smov [#allocation5]   ;;  %s5777_s19 = sadd.s32 4294967295, %s5684_s16   ;;  %s5684_s16 = sphi %s5762_s16, %s7117_s16   ;;  %s5680_s15 = sphi %s5760_s15, %s7116_s15   ;;  %s5676_s14 = sphi %s5758_s14, %s7115_s14   ;;  %s5672_s13 = sphi %s5756_s13, %s7114_s13  }
   0xe   : > { %s293_s18 = sshll.u32 %s5686_s17, 4  ;;  %p4560_p0 = scmp.ge.s32.totalorder %s5684_s16, 1  ;;  %s294_s18 = int_to_ptr.vmem [resolvable:$true] %s293_s18 }
   0xf   : > { %p7074_p1 = scmp.eq.s32.totalorder %s5777_s19, 0  ;;  %p275_p2 = scmp.lt.s32.totalorder %s5684_s16, 3 }
  0x10   : > { %s5687_s21 = smov [#allocation8]   ;;  %s5688_s24 = smov [#allocation11]  }
  0x11   : > { %p5782_p3 = pnand %p4560_p0, %p275_p2  ;;  %s319_s22 = sshll.u32 %s5687_s21, 4  ;;  %s320_s22 = int_to_ptr.vmem [resolvable:$true] %s319_s22 }
  0x12   : > { %s345_s25 = sshll.u32 %s5688_s24, 4  ;;  %s5435_s27 = scalar_lea.vmem %s294_s18, 1024  ;;  %s346_s25 = int_to_ptr.vmem [resolvable:$true] %s345_s25 }
  0x13   : > { %s7084_s20 = scalar_select %p5782_p3, 1, 0 }
  0x14   : > { %p4930_p5 = pneg %p5782_p3  ;;  %p5436_p8 = scmp.ne.s32.totalorder %s294_s18, %s5435_s27 }
  0x15   : > { %p5443_p11 = scmp.lt.s32.totalorder %s294_s18, %s294_s18  ;;  %p5444_p12 = scmp.lt.s32.totalorder %s5435_s27, %s5435_s27 }
  0x16   : > { %p5791_p6 = pnand %p4930_p5, %p7074_p1 }
  0x17   : > { %p5445_p13 = por %p5444_p12, %p5443_p11 }
  0x18   : > { %p5797_p7 = pneg %p5791_p6 }
  0x1a   : > { %p5438_p9 = pnand %p5436_p8, %p5797_p7 }
  0x1c   : > { %p5439_p10 = pneg %p5438_p9 }
  0x1e   : > { %p5446_p0 = pnand %p5445_p13, %p5439_p10 }
  0x20   : > { %5449 = shalt.err (!%p5446_p0)
}
  0x21   : > { %s7072_s28 = smov 128   ;;  %s7073_s29 = smov 8  }
  0x22   : > { %s7087_s3 = sld [smem:[#allocation22_spill]]  ;;  %s5461_s12 = scalar_lea.vmem %s320_s22, 1024 }
  0x23   : > { %p5462_p2 = scmp.ne.s32.totalorder %s320_s22, %s5461_s12  ;;  %p5469_p9 = scmp.lt.s32.totalorder %s320_s22, %s320_s22 }
  0x24   : > { %p5470_p10 = scmp.lt.s32.totalorder %s5461_s12, %s5461_s12 }
  0x25   : > { %p5464_p5 = pnand %p5462_p2, %p5797_p7 }
  0x26   : > { %p5471_p11 = por %p5470_p10, %p5469_p9 }
  0x27   : > { %p5465_p8 = pneg %p5464_p5 }
  0x28   : > { %4933 = dma.hbm_to_vmem [thread:$0]  (!%p5791_p6), %s7087_s3, 1024, %s294_s18, [#allocation6], %s7072_s28, %s7072_s28, %s7073_s29  }
  0x29   : > { %p5472_p12 = pnand %p5471_p11, %p5465_p8 }
  0x2b   : > { %5475 = shalt.err (!%p5472_p12)
}
  0x2c   : > { %s7088_s5 = sld [smem:[#allocation24_spill]]  ;;  %s5487_s18 = scalar_lea.vmem %s346_s25, 2048 }
  0x2d   : > { %p5488_p13 = scmp.ne.s32.totalorder %s346_s25, %s5487_s18  ;;  %p5495_p5 = scmp.lt.s32.totalorder %s346_s25, %s346_s25 }
  0x2e   : > { %p5496_p9 = scmp.lt.s32.totalorder %s5487_s18, %s5487_s18 }
  0x2f   : > { %p5490_p0 = pnand %p5488_p13, %p5797_p7 }
  0x30   : > { %p5497_p8 = por %p5496_p9, %p5495_p5 }
  0x31   : > { %p5491_p2 = pneg %p5490_p0 }
  0x32   : > { %4939 = dma.hbm_to_vmem [thread:$0]  (!%p5791_p6), %s7088_s5, 1024, %s320_s22, [#allocation9], %s7072_s28, %s7072_s28, %s7073_s29  }
  0x33   : > { %p5498_p10 = pnand %p5497_p8, %p5491_p2 }
  0x35   : > { %5501 = shalt.err (!%p5498_p10)
}
  0x36   : > { %s5691_s24 = smov 256   ;;  %s5692_s27 = smov 16  }
  0x37   : > { %4945 = dma.hbm_to_vmem [thread:$0]  (!%p5791_p6), %s7068_s7, 2048, %s346_s25, [#allocation12], %s5691_s24, %s5691_s24, %s5692_s27  }
  0x38   : > { %s5693_s11 = smov [#allocation7]   ;;  %s5694_s17 = smov [#allocation10]  }
  0x39   : > { %s306_s12 = sshll.u32 %s5693_s11, 4  ;;  %s332_s21 = sshll.u32 %s5694_s17, 4  ;;  %s307_s12 = int_to_ptr.vmem [resolvable:$true] %s306_s12  ;;  %s333_s21 = int_to_ptr.vmem [resolvable:$true] %s332_s21 }
  0x3a   : > { %s5513_s18 = scalar_lea.vmem %s307_s12, 1024  ;;  %p5521_p0 = scmp.lt.s32.totalorder %s307_s12, %s307_s12 }
  0x3b   : > { %p5514_p11 = scmp.ne.s32.totalorder %s307_s12, %s5513_s18  ;;  %p5522_p2 = scmp.lt.s32.totalorder %s5513_s18, %s5513_s18 }
  0x3d   : > { %p5516_p12 = pnand %p5514_p11, %p5797_p7  ;;  %p5523_p5 = por %p5522_p2, %p5521_p0 }
  0x3f   : > { %p5517_p13 = pneg %p5516_p12 }
  0x41   : > { %p5524_p9 = pnand %p5523_p5, %p5517_p13 }
  0x43   : > { %5527 = shalt.err (!%p5524_p9)
}
  0x44   : > { %s7089_s4 = sld [smem:[#allocation23_spill]]  ;;  %s5539_s30 = scalar_lea.vmem %s333_s21, 2048 }
  0x45   : > { %p5540_p8 = scmp.ne.s32.totalorder %s333_s21, %s5539_s30  ;;  %p5547_p12 = scmp.lt.s32.totalorder %s333_s21, %s333_s21 }
  0x46   : > { %p5548_p0 = scmp.lt.s32.totalorder %s5539_s30, %s5539_s30 }
  0x47   : > { %p5542_p10 = pnand %p5540_p8, %p5797_p7 }
  0x48   : > { %p5549_p13 = por %p5548_p0, %p5547_p12 }
  0x49   : > { %p5543_p11 = pneg %p5542_p10 }
  0x4a   : > { %4936 = dma.hbm_to_vmem [thread:$0]  (!%p5791_p6), %s7089_s4, 1024, %s307_s12, [#allocation6], %s7072_s28, %s7072_s28, %s7073_s29  }
  0x4b   : > { %p5550_p2 = pnand %p5549_p13, %p5543_p11 }
  0x4d   : > { %5553 = shalt.err (!%p5550_p2)
}
  0x4e   : > { %s7090_s6 = sld [smem:[#allocation25_spill]]  ;;  %s5695_s12 = smov [#allocation13]  }
  0x4f   : > { %s358_s18 = sshll.u32 %s5695_s12, 4  ;;  %s359_s18 = int_to_ptr.vmem [resolvable:$true] %s358_s18 }
  0x50   : > { %s5565_s25 = scalar_lea.vmem %s359_s18, 1024  ;;  %p5573_p10 = scmp.lt.s32.totalorder %s359_s18, %s359_s18 }
  0x51   : > { %p5566_p5 = scmp.ne.s32.totalorder %s359_s18, %s5565_s25  ;;  %p5574_p11 = scmp.lt.s32.totalorder %s5565_s25, %s5565_s25 }
  0x53   : > { %p5568_p9 = pnand %p5566_p5, %p5797_p7  ;;  %p5575_p12 = por %p5574_p11, %p5573_p10 }
  0x54   : > { %4942 = dma.hbm_to_vmem [thread:$0]  (!%p5791_p6), %s7090_s6, 2048, %s333_s21, [#allocation9], %s5691_s24, %s5691_s24, %s5692_s27  }
  0x55   : > { %p5569_p8 = pneg %p5568_p9 }
  0x57   : > { %p5576_p0 = pnand %p5575_p12, %p5569_p8 }
  0x59   : > { %5579 = shalt.err (!%p5576_p0)
}
  0x5a   : > { %4948 = dma.hbm_to_vmem [thread:$0]  (!%p5791_p6), %s7069_s8, 1024, %s359_s18, [#allocation12], %s7072_s28, %s7072_s28, %s7073_s29  }
  0x5b   : > { %s4559_s23 = sadd.s32 4294967294, %s5684_s16   ;;  %s5863_s26 = sadd.s32 1, %s5684_s16  }
  0x5c   : > { %s33_s27 = ssub.s32 %s5684_s16, %s5863_s26  ;;  %s36_s21 = sadd.s32 1, %s5680_s15 }
  0x5d   : > { %p34_p7 = scmp.eq.s32.totalorder %s33_s27, 0  ;;  %p43_p13 = scmp.ne.s32.totalorder %s5680_s15, %s5676_s14 }
  0x5e   : > { %p44_p2 = scmp.eq.s32.totalorder %s5684_s16, 0  ;;  %p49_p5 = scmp.ne.s32.totalorder %s5676_s14, %s5672_s13 }
  0x5f   : > { %s5874_s30 = scalar_select %p34_p7, %s5680_s15, %s36_s21  }
  0x60   : > { %p5876_p9 = por %p44_p2, %p43_p13  ;;  %p5882_p6 = por %p7074_p1, %p49_p5 }
  0x61   : > { %p262_p8 = scmp.eq.s32.totalorder %s5777_s19, 1  ;;  %p268_p10 = scmp.eq.s32.totalorder %s4559_s23, 1 }
  0x62   : > { %s7092_s17 = scalar_select %p5882_p6, 1, 0 }
  0x63   : > { %p4963_p11 = scmp.lt.s32.totalorder %s5684_s16, 2  ;;  %s375_s12 = sand.u32 1, %s5680_s15  }
  0x64   : > { %p5889_p12 = por %p262_p8, %p43_p13  ;;  %p5893_p0 = por %p268_p10, %p49_p5 }
  0x65   : > { %s4568_s22 = sshll.u32 %s375_s12, 6  ;;  %s4724_s24 = sshll.u32 %s5684_s16, 10 }
  0x66   : > { %s7093_s18 = scalar_select %p5889_p12, 1, 0 }
  0x67   : > { %s7094_s25 = scalar_select %p5893_p0, 1, 0 }
  0x68   : > { %s5901_s28 = scalar_lea.hbm %s7061_s0, %s4724_s24  ;;  %s379_s23 = scalar_lea.vmem [#allocation2], %s4568_s22 }
  0x69   : > { %s386_s29 = sshll.u32 %s379_s23, 4  ;;  %p5907_p7 = pnand %p4963_p11, %p5876_p9  ;;  %s5903_s29 = int_to_ptr.vmem [resolvable:$true] %s386_s29 }
  0x6a   : > { %s5911_s4 = scalar_lea.sflag [#allocation3], %s375_s12  ;;  %s5580_s5 = scalar_lea.hbm %s5901_s28, 1024 }
  0x6b   : > { %p5581_p13 = scmp.ne.s32.totalorder %s5901_s28, %s5580_s5  ;;  %p5582_p2 = pneg %p5907_p7 }
  0x6c   : > { %s5585_s22 = scalar_lea.hbm %s7061_s0, 2048  ;;  %p5586_p9 = scmp.lt.s32.totalorder %s5901_s28, %s7061_s0 }
  0x6d   : > { %p5583_p5 = pnand %p5582_p2, %p5581_p13  ;;  %p5587_p10 = scmp.lt.s32.totalorder %s5585_s22, %s5580_s5 }
  0x6f   : > { %p5584_p8 = pneg %p5583_p5  ;;  %p5588_p11 = por %p5587_p10, %p5586_p9 }
  0x71   : > { %p5589_p4 = pnand %p5588_p11, %p5584_p8 }
  0x73   : > { %5592 = shalt.err (!%p5589_p4)
}
  0x74   : > { %s5593_s11 = scalar_lea.vmem %s5903_s29, 1024  ;;  %s5696_s12 = smov [#allocation2]  }
  0x75   : > { %p5594_p1 = scmp.ne.s32.totalorder %s5903_s29, %s5593_s11  ;;  %s5598_s6 = sshll.u32 %s5696_s12, 4  ;;  %s5599_s6 = int_to_ptr.vmem [resolvable:$false] %s5598_s6 }
  0x76   : > { %s5600_s24 = scalar_lea.vmem %s5599_s6, 2048  ;;  %p5601_p5 = scmp.lt.s32.totalorder %s5903_s29, %s5599_s6 }
  0x77   : > { %p5596_p0 = pnand %p5594_p1, %p5582_p2  ;;  %p5602_p12 = scmp.lt.s32.totalorder %s5600_s24, %s5593_s11 }
  0x79   : > { %p5597_p13 = pneg %p5596_p0  ;;  %p5603_p6 = por %p5602_p12, %p5601_p5 }
  0x7b   : > { %p5604_p3 = pnand %p5603_p6, %p5597_p13 }
  0x7d   : > { %5607 = shalt.err (!%p5604_p3)
}
  0x7e   : > { %s7096_s5 = smov 8   ;;  %s7097_s27 = smov 128  }
  0x7f   : > { %4952 = dma.hbm_to_vmem [thread:$0]  (!%p5907_p7), %s5901_s28, 1024, %s5903_s29, %s5911_s4, %s7097_s27, %s7097_s27, %s7096_s5  }
  0x80   : > { %p7098_p1 = scmp.ne.s32.totalorder %s7084_s20, 0 }
  0x82   : > { %398 = sbr.rel (%p7098_p1) target bundleno = 5498 (0x157a), region = 60 }
  0x87   : > { %s5938_s22 = sand.u32 1, %s5676_s14   ;;  %p7099_p3 = scmp.ne.s32.totalorder %s7092_s17, 0 }
  0x88   : > { %s4572_s6 = sshll.u32 %s5938_s22, 6  ;;  %s401_s21 = scalar_lea.sflag [#allocation3], %s5938_s22 }
  0x89   : > { %s5944_s3 = scalar_lea.vmem [#allocation2], %s4572_s6 }
  0x8a   : > { %5651 = dma.done.wait (%p7099_p3), %s401_s21, 1024  }
  0x8b   : > { %5653 = vsyncadd (%p7099_p3), %s401_s21, 4294966272  ;;  %p7100_p4 = scmp.eq.s32.totalorder %s5777_s19, 0 }
  0x8d   : > { %5655 = dma.done.wait (%p7100_p4), [#allocation6], 2048   ;;  %p7101_p6 = pmov %p7100_p4 }
  0x8e   : > { %p7102_p12 = pmov %p7100_p4 }
  0x8f   : > { %5657 = vsyncadd (%p7101_p6), [#allocation6], 4294965248 }
  0x90   : > { %5659 = dma.done.wait (%p7102_p12), [#allocation9], 3072   ;;  %p7103_p0 = pmov %p7100_p4 }
  0x92   : > { %5661 = vsyncadd (%p7103_p0), [#allocation9], 4294964224  ;;  %p7104_p7 = pmov %p7103_p0 }
  0x93   : > { %p7105_p2 = pmov %p7103_p0 }
  0x94   : > { %5663 = dma.done.wait (%p7104_p7), [#allocation12], 3072  }
  0x95   : > { %5665 = vsyncadd (%p7105_p2), [#allocation12], 4294964224  ;;  %vm473_vm0 = vcmask 523264   ;;  %v472_v0 = vld [vmem:[%s5944_s3 + $0x38] sm:$0xff]  ;;  %v471_v1 = vld [vmem:[%s5944_s3 + $0x30] sm:$0xff]  ;;  %vm1382_vm1 = vcmask 64512  }
  0x96   : > { %v470_v2 = vld [vmem:[%s5944_s3 + $0x28] sm:$0xff]  ;;  %v495_v3 = vsel %vm473_vm0, %v472_v0, 0.0  ;;  %v469_v5 = vld [vmem:[%s5944_s3 + $0x20] sm:$0xff]  ;;  %v492_v6 = vsel %vm473_vm0, %v471_v1, 0.0  ;;  %v468_v8 = vld [vmem:[%s5944_s3 + $0x18] sm:$0xff]  ;;  %s6986_s11 = scalar_lea.vmem [#allocation14], %s4572_s6 }
  0x97   : > { %v489_v4 = vsel %vm473_vm0, %v470_v2, 0.0  ;;  %496 = vadd.xlane.f32.xlu0 %v495_v3  ;;  %v486_v7 = vsel %vm473_vm0, %v469_v5, 0.0  ;;  %v467_v9 = vld [vmem:[%s5944_s3 + $0x10] sm:$0xff]  ;;  %v483_v10 = vsel %vm473_vm0, %v468_v8, 0.0  ;;  %v466_v12 = vld [vmem:[%s5944_s3 + $0x8] sm:$0xff]  ;;  %v465_v13 = vld [vmem:[%s5944_s3] sm:$0xff] }
  0x98   : > { %490 = vadd.xlane.f32.xlu1 %v489_v4  ;;  %v480_v11 = vsel %vm473_vm0, %v467_v9, 0.0  ;;  %v477_v14 = vsel %vm473_vm0, %v466_v12, 0.0  ;;  %v474_v15 = vsel %vm473_vm0, %v465_v13, 0.0  ;;  %v770_v56 = vld [vmem:[#allocation7] sm:$0xff]  ;;  %s4725_s12 = sshll.u32 %s5777_s19, 10  ;;  %s4429_s24 = sshll.u32 %s6986_s11, 4  ;;  %s7013_s24 = int_to_ptr.vmem [resolvable:$true] %s4429_s24 }
  0x99   : > { %v609_v57 = vld [vmem:[#allocation5] sm:$0xff]  ;;  %4834 = vmatprep.mubr.msk.f32.mxu1 %vm473_vm0, %v770_v56  ;;  %v1058_v56 = vld [vmem:[#allocation10 + $0x70] sm:$0xff]  ;;  %s7011_s6 = scalar_lea.hbm %s7071_s10, %s4725_s12  ;;  %s4416_s19 = scalar_lea.sflag [#allocation4], %s5938_s22 }
  0x9a   : > { %4806 = vmatprep.mubr.msk.f32.mxu0 %vm473_vm0, %v609_v57  ;;  %v1057_v57 = vld [vmem:[#allocation10 + $0x68] sm:$0xff]  ;;  %s5608_s21 = scalar_lea.vmem %s7013_s24, 1024  ;;  %p7111_p9 = scmp.ne.s32.totalorder %s7093_s18, 0 }
  0x9b   : > { %493 = vadd.xlane.f32.xlu0 %v492_v6  ;;  %p5609_p8 = scmp.ne.s32.totalorder %s7013_s24, %s5608_s21  ;;  %s5698_s4 = smov [#allocation14]  }
  0x9c   : > { %487 = vadd.xlane.f32.xlu1 %v486_v7  ;;  %s5612_s20 = sshll.u32 %s5698_s4, 4  ;;  %s5613_s20 = int_to_ptr.vmem [resolvable:$false] %s5612_s20 }
  0x9d   : > { %p5610_p10 = pnand %p5609_p8, %p7111_p9  ;;  %s5614_s28 = scalar_lea.vmem %s5613_s20, 2048 }
  0x9e   : > { %p5615_p13 = scmp.lt.s32.totalorder %s7013_s24, %s5613_s20  ;;  %p5616_p5 = scmp.lt.s32.totalorder %s5614_s28, %s5608_s21 }
  0x9f   : > { %484 = vadd.xlane.f32.xlu0 %v483_v10  ;;  %p5611_p11 = pneg %p5610_p10 }
  0xa0   : > { %481 = vadd.xlane.f32.xlu1 %v480_v11  ;;  %p5617_p1 = por %p5616_p5, %p5615_p13 }
  0xa2   : > { %p5618_p3 = pnand %p5617_p1, %p5611_p11 }
  0xa3   : > { %478 = vadd.xlane.f32.xlu0 %v477_v14 }
  0xa4   : > { %475 = vadd.xlane.f32.xlu1 %v474_v15 }
 0x120   : > { %v497_v16 = vpop.xlane.xlu0 %496 }
 0x121   : > { %v491_v17 = vpop.xlane.xlu1 %490  ;;  %v506_v18 = vmul.f32 0.015625, %v497_v16  ;;  %v4580_v16 = vld [vmem:[%s7062_s1] ss:$0 sm:$0xff] }
 0x122   : > { %v504_v19 = vmul.f32 0.015625, %v491_v17 }
 0x123   : > { %v5978_v20 = vsub.f32 %v472_v0, %v506_v18 }
 0x124   : > { %v5980_v21 = vsub.f32 %v470_v2, %v504_v19  ;;  %v494_v22 = vpop.xlane.xlu0 %493 }
 0x125   : > { %v488_v23 = vpop.xlane.xlu1 %487  ;;  %v505_v24 = vmul.f32 0.015625, %v494_v22  ;;  %v522_v26 = vmul.f32 %v5978_v20, %v5978_v20  ;;  %v4581_v22 = vld [vmem:[%s7063_s2] ss:$0 sm:$0xff] }
 0x126   : > { %v503_v25 = vmul.f32 0.015625, %v488_v23  ;;  %v520_v27 = vmul.f32 %v5980_v21, %v5980_v21 }
 0x127   : > { %v5986_v28 = vsub.f32 %v471_v1, %v505_v24  ;;  %v544_v30 = vsel %vm473_vm0, %v522_v26, 0.0 }
 0x128   : > { %v5988_v29 = vsub.f32 %v469_v5, %v503_v25  ;;  %v485_v31 = vpop.xlane.xlu0 %484  ;;  %545 = vadd.xlane.f32.xlu0 %v544_v30  ;;  %v538_v33 = vsel %vm473_vm0, %v520_v27, 0.0 }
 0x129   : > { %v482_v32 = vpop.xlane.xlu1 %481  ;;  %v502_v34 = vmul.f32 0.015625, %v485_v31  ;;  %v521_v36 = vmul.f32 %v5986_v28, %v5986_v28 }
 0x12a   : > { %v501_v35 = vmul.f32 0.015625, %v482_v32  ;;  %v519_v37 = vmul.f32 %v5988_v29, %v5988_v29 }
 0x12b   : > { %v5996_v38 = vsub.f32 %v468_v8, %v502_v34  ;;  %v541_v40 = vsel %vm473_vm0, %v521_v36, 0.0 }
 0x12c   : > { %v5998_v39 = vsub.f32 %v467_v9, %v501_v35  ;;  %539 = vadd.xlane.f32.xlu0 %v538_v33  ;;  %v479_v41 = vpop.xlane.xlu0 %478  ;;  %542 = vadd.xlane.f32.xlu1 %v541_v40  ;;  %v535_v42 = vsel %vm473_vm0, %v519_v37, 0.0 }
 0x12d   : > { %v476_v43 = vpop.xlane.xlu1 %475  ;;  %v500_v44 = vmul.f32 0.015625, %v479_v41  ;;  %v518_v45 = vmul.f32 %v5996_v38, %v5996_v38 }
 0x12e   : > { %v499_v46 = vmul.f32 0.015625, %v476_v43  ;;  %v517_v47 = vmul.f32 %v5998_v39, %v5998_v39 }
 0x12f   : > { %v6006_v48 = vsub.f32 %v466_v12, %v500_v44  ;;  %v532_v49 = vsel %vm473_vm0, %v518_v45, 0.0 }
 0x130   : > { %v6009_v50 = vsub.f32 %v465_v13, %v499_v46  ;;  %533 = vadd.xlane.f32.xlu0 %v532_v49  ;;  %536 = vadd.xlane.f32.xlu1 %v535_v42  ;;  %v529_v52 = vsel %vm473_vm0, %v517_v47, 0.0 }
 0x131   : > { %v516_v51 = vmul.f32 %v6006_v48, %v6006_v48 }
 0x132   : > { %v515_v53 = vmul.f32 %v6009_v50, %v6009_v50 }
 0x133   : > { %v526_v54 = vsel %vm473_vm0, %v516_v51, 0.0 }
 0x134   : > { %527 = vadd.xlane.f32.xlu0 %v526_v54  ;;  %530 = vadd.xlane.f32.xlu1 %v529_v52  ;;  %v523_v55 = vsel %vm473_vm0, %v515_v53, 0.0  ;;  %v1059_v52 = vld [vmem:[#allocation10 + $0x78] sm:$0xff]  ;;  %v771_v53 = vld [vmem:[#allocation7 + $0x8] sm:$0xff] }
 0x135   : > { %v610_v54 = vld [vmem:[#allocation5 + $0x8] sm:$0xff] }
 0x138   : > { %524 = vadd.xlane.f32.xlu1 %v523_v55  ;;  %v772_v55 = vld [vmem:[#allocation7 + $0x10] sm:$0xff] }
 0x1b1   : > { %v546_v58 = vpop.xlane.xlu0 %545 }
 0x1b2   : > { %v554_v59 = vmul.f32 0.015625, %v546_v58  ;;  %v773_v58 = vld [vmem:[#allocation7 + $0x18] sm:$0xff] }
 0x1b4   : > { %v562_v60 = vadd.f32 1e-05, %v554_v59  ;;  %v774_v59 = vld [vmem:[#allocation7 + $0x20] sm:$0xff] }
 0x1b5   : > { %v540_v61 = vpop.xlane.xlu0 %539  ;;  %v543_v62 = vpop.xlane.xlu1 %542 }
 0x1b6   : > { %5016 = vrsqrt.f32 %v562_v60  ;;  %v552_v63 = vmul.f32 0.015625, %v540_v61  ;;  %v553_v0 = vmul.f32 0.015625, %v543_v62  ;;  %v1056_v60 = vld [vmem:[#allocation10 + $0x60] sm:$0xff]  ;;  %v1055_v61 = vld [vmem:[#allocation10 + $0x58] sm:$0xff]  ;;  %v775_v62 = vld [vmem:[#allocation7 + $0x28] sm:$0xff] }
 0x1b8   : > { %v560_v1 = vadd.f32 1e-05, %v552_v63  ;;  %v561_v2 = vadd.f32 1e-05, %v553_v0  ;;  %v776_v63 = vld [vmem:[#allocation7 + $0x30] sm:$0xff] }
 0x1b9   : > { %v534_v3 = vpop.xlane.xlu0 %533  ;;  %v537_v4 = vpop.xlane.xlu1 %536  ;;  %v1054_v0 = vld [vmem:[#allocation10 + $0x50] sm:$0xff] }
 0x1ba   : > { %5018 = vrsqrt.f32 %v560_v1  ;;  %v550_v5 = vmul.f32 0.015625, %v534_v3  ;;  %v551_v6 = vmul.f32 0.015625, %v537_v4  ;;  %v1053_v1 = vld [vmem:[#allocation10 + $0x48] sm:$0xff]  ;;  %v1052_v3 = vld [vmem:[#allocation10 + $0x40] sm:$0xff]  ;;  %v1051_v4 = vld [vmem:[#allocation10 + $0x38] sm:$0xff] }
 0x1bb   : > { %5020 = vrsqrt.f32 %v561_v2  ;;  %v777_v2 = vld [vmem:[#allocation7 + $0x38] sm:$0xff] }
 0x1bc   : > { %v558_v7 = vadd.f32 1e-05, %v550_v5  ;;  %v559_v8 = vadd.f32 1e-05, %v551_v6  ;;  %v1050_v5 = vld [vmem:[#allocation10 + $0x30] sm:$0xff]  ;;  %v1049_v6 = vld [vmem:[#allocation10 + $0x28] sm:$0xff] }
 0x1bd   : > { %v528_v9 = vpop.xlane.xlu0 %527  ;;  %v531_v10 = vpop.xlane.xlu1 %530 }
 0x1be   : > { %5022 = vrsqrt.f32 %v558_v7  ;;  %v549_v11 = vmul.f32 0.015625, %v531_v10  ;;  %v548_v12 = vmul.f32 0.015625, %v528_v9  ;;  %v1048_v7 = vld [vmem:[#allocation10 + $0x20] sm:$0xff]  ;;  %v1046_v9 = vld [vmem:[#allocation10 + $0x10] sm:$0xff]  ;;  %v1045_v10 = vld [vmem:[#allocation10 + $0x8] sm:$0xff] }
 0x1bf   : > { %5024 = vrsqrt.f32 %v559_v8  ;;  %v1047_v8 = vld [vmem:[#allocation10 + $0x18] sm:$0xff] }
 0x1c0   : > { %v557_v13 = vadd.f32 1e-05, %v549_v11  ;;  %v556_v17 = vadd.f32 1e-05, %v548_v12  ;;  %v1044_v11 = vld [vmem:[#allocation10] sm:$0xff]  ;;  %v7078_v12 = vmov 0.0  }
 0x1c1   : > { %v525_v14 = vpop.xlane.xlu1 %524 }
 0x1c2   : > { %5026 = vrsqrt.f32 %v557_v13  ;;  %v547_v18 = vmul.f32 0.015625, %v525_v14 }
 0x1c3   : > { %v5017_v15 = vpop.eup %5016  ;;  %5028 = vrsqrt.f32 %v556_v17 }
 0x1c4   : > { %v578_v19 = vmul.f32 %v5017_v15, %v5978_v20  ;;  %v555_v25 = vadd.f32 1e-05, %v547_v18 }
 0x1c6   : > { %v593_v23 = vmul.f32 %v4580_v16, %v578_v19  ;;  %5030 = vrsqrt.f32 %v555_v25  ;;  %v611_v25 = vld [vmem:[#allocation5 + $0x10] sm:$0xff] }
 0x1c7   : > { %v5019_v24 = vpop.eup %5018 }
 0x1c8   : > { %v5021_v26 = vpop.eup %5020  ;;  %v576_v27 = vmul.f32 %v5019_v24, %v5980_v21  ;;  %v6028_v30 = vadd.f32 %v4581_v22, %v593_v23 }
 0x1c9   : > { %v577_v31 = vmul.f32 %v5021_v26, %v5986_v28  ;;  %v612_v26 = vld [vmem:[#allocation5 + $0x18] sm:$0xff] }
 0x1ca   : > { %4790 = vmatprep.subr.msk.mxu0 %vm473_vm0, %v6028_v30  ;;  %4818 = vmatprep.subr.msk.mxu1 %vm473_vm0, %v6028_v30  ;;  %v591_v32 = vmul.f32 %v4580_v16, %v576_v27  ;;  %v613_v27 = vld [vmem:[#allocation5 + $0x20] sm:$0xff] }
 0x1cb   : > { %v5023_v20 = vpop.eup %5022  ;;  %v592_v33 = vmul.f32 %v4580_v16, %v577_v31  ;;  %4791 = vmatpush3.xpose.msk.msra.mxu0 %vm473_vm0, %v6028_v30  ;;  %4819 = vmatpush3.xpose.msk.msra.mxu1 %vm473_vm0, %v6028_v30  ;;  %v615_v31 = vld [vmem:[#allocation5 + $0x30] sm:$0xff] }
 0x1cc   : > { %v5025_v21 = vpop.eup %5024  ;;  %v574_v35 = vmul.f32 %v5023_v20, %v5996_v38  ;;  %v6047_v37 = vadd.f32 %v4581_v22, %v591_v32  ;;  %v616_v20 = vld [vmem:[#allocation5 + $0x38] sm:$0xff]  ;;  %v907_v32 = vld [vmem:[#allocation8] sm:$0xff] }
 0x1cd   : > { %v575_v34 = vmul.f32 %v5025_v21, %v5988_v29  ;;  %v6040_v28 = vadd.f32 %v4581_v22, %v592_v33  ;;  %v908_v33 = vld [vmem:[#allocation8 + $0x8] sm:$0xff] }
 0x1ce   : > { %v589_v29 = vmul.f32 %v4580_v16, %v574_v35 }
 0x1cf   : > { %v590_v36 = vmul.f32 %v4580_v16, %v575_v34  ;;  %4792 = vmatprep.subr.msk.mxu0 %vm473_vm0, %v6040_v28  ;;  %4820 = vmatprep.subr.msk.mxu1 %vm473_vm0, %v6040_v28  ;;  %v5027_v40 = vpop.eup %5026 }
 0x1d0   : > { %4793 = vmatpush3.xpose.msk.msra.mxu0 %vm473_vm0, %v6040_v28  ;;  %4821 = vmatpush3.xpose.msk.msra.mxu1 %vm473_vm0, %v6040_v28  ;;  %v573_v38 = vmul.f32 %v5027_v40, %v5998_v39  ;;  %v5029_v42 = vpop.eup %5028  ;;  %v6069_v45 = vadd.f32 %v4581_v22, %v589_v29 }
 0x1d1   : > { %4794 = vmatprep.subr.msk.mxu0 %vm473_vm0, %v6047_v37  ;;  %4822 = vmatprep.subr.msk.mxu1 %vm473_vm0, %v6047_v37  ;;  %v6058_v41 = vadd.f32 %v4581_v22, %v590_v36  ;;  %v572_v43 = vmul.f32 %v5029_v42, %v6006_v48  ;;  %v909_v42 = vld [vmem:[#allocation8 + $0x10] sm:$0xff] }
 0x1d2   : > { %v588_v44 = vmul.f32 %v4580_v16, %v573_v38 }
 0x1d3   : > { %v5031_v39 = vpop.eup %5030  ;;  %v587_v46 = vmul.f32 %v4580_v16, %v572_v43  ;;  %v910_v43 = vld [vmem:[#allocation8 + $0x18] sm:$0xff] }
 0x1d4   : > { %4795 = vmatpush3.xpose.msk.msra.mxu0 %vm473_vm0, %v6047_v37  ;;  %4823 = vmatpush3.xpose.msk.msra.mxu1 %vm473_vm0, %v6047_v37  ;;  %v571_v47 = vmul.f32 %v5031_v39, %v6009_v50  ;;  %v6080_v48 = vadd.f32 %v4581_v22, %v588_v44  ;;  %v911_v44 = vld [vmem:[#allocation8 + $0x20] sm:$0xff]  ;;  %v1211_v39 = vld [vmem:[#allocation11 + $0x70] sm:$0xff] }
 0x1d5   : > { %4796 = vmatprep.subr.msk.mxu0 %vm473_vm0, %v6058_v41  ;;  %4824 = vmatprep.subr.msk.mxu1 %vm473_vm0, %v6058_v41  ;;  %v6090_v51 = vadd.f32 %v4581_v22, %v587_v46  ;;  %v1210_v46 = vld [vmem:[#allocation11 + $0x68] sm:$0xff] }
 0x1d6   : > { %v586_v49 = vmul.f32 %v4580_v16, %v571_v47  ;;  %v1209_v47 = vld [vmem:[#allocation11 + $0x60] sm:$0xff] }
 0x1d8   : > { %4797 = vmatpush3.xpose.msk.msra.mxu0 %vm473_vm0, %v6058_v41  ;;  %4825 = vmatpush3.xpose.msk.msra.mxu1 %vm473_vm0, %v6058_v41  ;;  %v6100_v50 = vadd.f32 %v4581_v22, %v586_v49  ;;  %v1208_v49 = vld [vmem:[#allocation11 + $0x58] sm:$0xff] }
 0x1d9   : > { %4798 = vmatprep.subr.msk.mxu0 %vm473_vm0, %v6069_v45  ;;  %4826 = vmatprep.subr.msk.mxu1 %vm473_vm0, %v6069_v45 }
 0x1dc   : > { %4799 = vmatpush3.xpose.msk.msra.mxu0 %vm473_vm0, %v6069_v45  ;;  %4827 = vmatpush3.xpose.msk.msra.mxu1 %vm473_vm0, %v6069_v45 }
 0x1dd   : > { %4800 = vmatprep.subr.msk.mxu0 %vm473_vm0, %v6080_v48  ;;  %4828 = vmatprep.subr.msk.mxu1 %vm473_vm0, %v6080_v48 }
 0x1e0   : > { %4801 = vmatpush3.xpose.msk.msra.mxu0 %vm473_vm0, %v6080_v48  ;;  %4829 = vmatpush3.xpose.msk.msra.mxu1 %vm473_vm0, %v6080_v48 }
 0x1e1   : > { %4802 = vmatprep.subr.msk.mxu0 %vm473_vm0, %v6090_v51  ;;  %4830 = vmatprep.subr.msk.mxu1 %vm473_vm0, %v6090_v51 }
 0x1e4   : > { %4803 = vmatpush3.xpose.msk.msra.mxu0 %vm473_vm0, %v6090_v51  ;;  %4831 = vmatpush3.xpose.msk.msra.mxu1 %vm473_vm0, %v6090_v51 }
 0x1e5   : > { %4804 = vmatprep.subr.msk.mxu0 %vm473_vm0, %v6100_v50  ;;  %4832 = vmatprep.subr.msk.mxu1 %vm473_vm0, %v6100_v50 }
 0x1e8   : > { %4805 = vmatpush3.xpose.msk.msra.mxu0 %vm473_vm0, %v6100_v50  ;;  %4833 = vmatpush3.xpose.msk.msra.mxu1 %vm473_vm0, %v6100_v50 }
 0x1e9   : > { %4846 = vmatprep.subr.msk.mxu0 %vm473_vm0, %v6028_v30  ;;  %1100 = vmatprep.subr.mxu1 %v1059_v52 }
 0x1eb   : > { %4835 = vmatmul.mubr.msk.f32.vlgmr.msra.gmra.mxu1 %vm473_vm0, %v771_v53  ;;  %4807 = vmatmul.mubr.msk.f32.vlgmr.msra.gmra.mxu0 %vm473_vm0, %v610_v54 }
 0x1ec   : > { %4847 = vmatpush3.xpose.msk.msra.mxu0 %vm473_vm0, %v6028_v30  ;;  %4837 = vmatprep.mubr.msk.f32.mxu1 %vm473_vm0, %v772_v55  ;;  %v614_v30 = vld [vmem:[#allocation5 + $0x28] sm:$0xff] }
 0x1ed   : > { %4848 = vmatprep.subr.msk.mxu0 %vm473_vm0, %v6040_v28  ;;  %1101 = vmatpush1.msra.mxu1 %v1058_v56 }
 0x1ee   : > { %1102 = vmatprep.subr.mxu1 %v1057_v57  ;;  %4809 = vmatprep.mubr.msk.f32.mxu0 %vm473_vm0, %v611_v25 }
 0x1ef   : > { %4838 = vmatmul.mubr.msk.f32.gmra.mxu1 %vm473_vm0, %v773_v58  ;;  %4810 = vmatmul.mubr.msk.f32.gmra.mxu0 %vm473_vm0, %v612_v26  ;;  %v1207_v26 = vld [vmem:[#allocation11 + $0x50] sm:$0xff] }
 0x1f0   : > { %4849 = vmatpush3.xpose.msk.msra.mxu0 %vm473_vm0, %v6040_v28  ;;  %4840 = vmatprep.mubr.msk.f32.mxu1 %vm473_vm0, %v774_v59 }
 0x1f1   : > { %4850 = vmatprep.subr.msk.mxu0 %vm473_vm0, %v6047_v37  ;;  %1103 = vmatpush1.msra.mxu1 %v1056_v60 }
 0x1f2   : > { %1104 = vmatprep.subr.mxu1 %v1055_v61  ;;  %4812 = vmatprep.mubr.msk.f32.mxu0 %vm473_vm0, %v613_v27 }
 0x1f3   : > { %4841 = vmatmul.mubr.msk.f32.gmra.mxu1 %vm473_vm0, %v775_v62  ;;  %4813 = vmatmul.mubr.msk.f32.gmra.mxu0 %vm473_vm0, %v614_v30  ;;  %v1206_v30 = vld [vmem:[#allocation11 + $0x48] sm:$0xff] }
 0x1f4   : > { %4851 = vmatpush3.xpose.msk.msra.mxu0 %vm473_vm0, %v6047_v37  ;;  %4843 = vmatprep.mubr.msk.f32.mxu1 %vm473_vm0, %v776_v63 }
 0x1f5   : > { %4852 = vmatprep.subr.msk.mxu0 %vm473_vm0, %v6058_v41  ;;  %1105 = vmatpush1.msra.mxu1 %v1054_v0 }
 0x1f6   : > { %1106 = vmatprep.subr.mxu1 %v1053_v1  ;;  %4815 = vmatprep.mubr.msk.f32.mxu0 %vm473_vm0, %v615_v31  ;;  %v1205_v31 = vld [vmem:[#allocation11 + $0x40] sm:$0xff] }
 0x1f7   : > { %4844 = vmatmul.mubr.msk.f32.gmra.mxu1 %vm473_vm0, %v777_v2  ;;  %4816 = vmatmul.mubr.msk.f32.gmra.mxu0 %vm473_vm0, %v616_v20 }
 0x1f8   : > { %4853 = vmatpush3.xpose.msk.msra.mxu0 %vm473_vm0, %v6058_v41  ;;  %1107 = vmatpush1.msra.mxu1 %v1052_v3 }
 0x1f9   : > { %4854 = vmatprep.subr.msk.mxu0 %vm473_vm0, %v6069_v45  ;;  %1108 = vmatprep.subr.mxu1 %v1051_v4 }
 0x1fa   : > { %1109 = vmatpush1.msra.mxu1 %v1050_v5  ;;  %1148 = vmatprep.mubr.f32.mxu1 %v7078_v12 }
 0x1fb   : > { %1110 = vmatprep.subr.mxu1 %v1049_v6  ;;  %4862 = vmatprep.mubr.msk.f32.mxu0 %vm473_vm0, %v907_v32  ;;  %v913_v32 = vld [vmem:[#allocation8 + $0x30] sm:$0xff] }
 0x1fc   : > { %4855 = vmatpush3.xpose.msk.msra.mxu0 %vm473_vm0, %v6069_v45  ;;  %1111 = vmatpush1.msra.mxu1 %v1048_v7  ;;  %v1212_v45 = vld [vmem:[#allocation11 + $0x78] sm:$0xff] }
 0x1fd   : > { %4856 = vmatprep.subr.msk.mxu0 %vm473_vm0, %v6080_v48  ;;  %1112 = vmatprep.subr.mxu1 %v1047_v8 }
 0x1fe   : > { %1113 = vmatpush1.msra.mxu1 %v1046_v9 }
 0x1ff   : > { %1114 = vmatprep.subr.mxu1 %v1045_v10 }
 0x200   : > { %4857 = vmatpush3.xpose.msk.msra.mxu0 %vm473_vm0, %v6080_v48  ;;  %1115 = vmatpush1.msra.mxu1 %v1044_v11  ;;  %v912_v48 = vld [vmem:[#allocation8 + $0x28] sm:$0xff] }
 0x201   : > { %4858 = vmatprep.subr.msk.mxu0 %vm473_vm0, %v6090_v51 }
 0x204   : > { %4859 = vmatpush3.xpose.msk.msra.mxu0 %vm473_vm0, %v6090_v51 }
 0x205   : > { %4860 = vmatprep.subr.msk.mxu0 %vm473_vm0, %v6100_v50 }
 0x208   : > { %4861 = vmatpush3.xpose.msk.msra.mxu0 %vm473_vm0, %v6100_v50 }
 0x209   : > { %1253 = vmatprep.subr.mxu0 %v1212_v45 }
 0x20b   : > { %4863 = vmatmul.mubr.msk.f32.vlgmr.msra.gmra.mxu0 %vm473_vm0, %v908_v33  ;;  %v1204_v33 = vld [vmem:[#allocation11 + $0x38] sm:$0xff] }
 0x20c   : > { %4865 = vmatprep.mubr.msk.f32.mxu0 %vm473_vm0, %v909_v42  ;;  %1254 = vmatpush1.msra.mxu0 %v1211_v39 }
 0x20d   : > { %1255 = vmatprep.subr.mxu0 %v1210_v46 }
 0x20e   : > { %1256 = vmatpush1.msra.mxu0 %v1209_v47 }
 0x20f   : > { %4866 = vmatmul.mubr.msk.f32.gmra.mxu0 %vm473_vm0, %v910_v43  ;;  %1257 = vmatprep.subr.mxu0 %v1208_v49  ;;  %v1198_v43 = vld [vmem:[#allocation11 + $0x8] sm:$0xff] }
 0x210   : > { %4868 = vmatprep.mubr.msk.f32.mxu0 %vm473_vm0, %v911_v44  ;;  %1258 = vmatpush1.msra.mxu0 %v1207_v26  ;;  %v1197_v44 = vld [vmem:[#allocation11] sm:$0xff] }
 0x211   : > { %1259 = vmatprep.subr.mxu0 %v1206_v30 }
 0x212   : > { %1260 = vmatpush1.msra.mxu0 %v1205_v31 }
 0x213   : > { %4869 = vmatmul.mubr.msk.f32.gmra.mxu0 %vm473_vm0, %v912_v48  ;;  %1261 = vmatprep.subr.mxu0 %v1204_v33 }
 0x214   : > { %4871 = vmatprep.mubr.msk.f32.mxu0 %vm473_vm0, %v913_v32 }
 0x2ab   : > { %v4836_v13 = vpop.f32.mrf.mxu1  ;;  %v6155_v14 = vpop.f32.mrf.mxu0 }
 0x2ad   : > { %v868_v15 = vpop.f32.mrf.mxu1  ;;  %v731_v16 = vpop.f32.mrf.mxu0 }
 0x2ae   : > { %4630 = vmatmul.mubr.msk.f32.vlgmr.msra.gmra.mxu1 %vm473_vm0, %v868_v15  ;;  %1350 = vxpose.xlu0.b32.start.end [1/1] (short) (narrow) %v731_v16, 64 }
 0x2af   : > { %1154 = vmatprep.mubr.f32.mxu1 %v7078_v12  ;;  %v4839_v17 = vpop.f32.mrf.mxu1 }
 0x2b1   : > { %v878_v18 = vpop.f32.mrf.mxu1 }
 0x2b2   : > { %4631 = vmatmul.mubr.msk.f32.gmra.mxu1 %vm473_vm0, %v4836_v13 }
 0x2b3   : > { %1160 = vmatprep.mubr.f32.mxu1 %v7078_v12  ;;  %v4842_v19 = vpop.f32.mrf.mxu1 }
 0x2b5   : > { %v888_v22 = vpop.f32.mrf.mxu1 }
 0x2b6   : > { %4632 = vmatmul.mubr.msk.f32.gmra.mxu1 %vm473_vm0, %v878_v18 }
 0x2b7   : > { %1166 = vmatprep.mubr.f32.mxu1 %v7078_v12  ;;  %v4845_v23 = vpop.f32.mrf.mxu1 }
 0x2b9   : > { %v898_v24 = vpop.f32.mrf.mxu1 }
 0x2ba   : > { %4633 = vmatmul.mubr.msk.f32.gmra.mxu1 %vm473_vm0, %v4839_v17 }
 0x2bb   : > { %1172 = vmatprep.mubr.f32.mxu1 %v7078_v12 }
 0x2be   : > { %4634 = vmatmul.mubr.msk.f32.gmra.mxu1 %vm473_vm0, %v888_v22  ;;  %v6258_v22 = vpop.f32.mrf.mxu0 }
 0x2bf   : > { %1178 = vmatprep.mubr.f32.mxu1 %v7078_v12 }
 0x2c2   : > { %4635 = vmatmul.mubr.msk.f32.gmra.mxu1 %vm473_vm0, %v4842_v19 }
 0x2c3   : > { %1184 = vmatprep.mubr.f32.mxu1 %v7078_v12 }
 0x2c6   : > { %4636 = vmatmul.mubr.msk.f32.gmra.mxu1 %vm473_vm0, %v898_v24  ;;  %v6262_v24 = vpop.f32.mrf.mxu0 }
 0x2c7   : > { %1190 = vmatprep.mubr.f32.mxu1 %v7078_v12 }
 0x2c8   : > { %v6266_v27 = vpop.f32.mrf.mxu0 }
 0x2ca   : > { %4637 = vmatmul.mubr.msk.f32.gmra.mxu1 %vm473_vm0, %v4845_v23  ;;  %v6268_v20 = vpop.f32.mrf.mxu0 }
 0x2cb   : > { %1471 = vmatprep.mubr.f32.mxu1 %v7078_v12 }
 0x32a   : > { %v1366_v21 = vpop.trf.xlu0 }
 0x32e   : > { %v1367_v34 = vpop.trf.xlu0 }
 0x332   : > { %v1368_v35 = vpop.trf.xlu0 }
 0x336   : > { %v1369_v37 = vpop.trf.xlu0 }
 0x33a   : > { %v1370_v40 = vpop.trf.xlu0 }
 0x33e   : > { %v1371_v29 = vpop.trf.xlu0 }
 0x342   : > { %v1372_v38 = vpop.trf.xlu0 }
 0x346   : > { %v1373_v41 = vpop.trf.xlu0 }
 0x36e   : > { %v1150_v28 = vpop.f32.mrf.mxu1 }
 0x370   : > { %v1152_v36 = vpop.f32.mrf.mxu1 }
 0x371   : > { %1437 = vmatprep.subr.mxu1 %v1152_v36  ;;  %v1202_v36 = vld [vmem:[#allocation11 + $0x28] sm:$0xff] }
 0x372   : > { %1438 = vmatpush1.msra.mxu1 %v1150_v28  ;;  %v6200_v51 = vpop.f32.mrf.mxu1  ;;  %v1203_v28 = vld [vmem:[#allocation11 + $0x30] sm:$0xff] }
 0x373   : > { %4646 = vmatmul.mubr.msk.f32.vlgmr.msra.gmra.mxu1 %vm1382_vm1, %v1366_v21  ;;  %1262 = vmatpush1.msra.mxu0 %v1203_v28 }
 0x374   : > { %1477 = vmatprep.mubr.f32.mxu1 %v7078_v12  ;;  %v6202_v50 = vpop.f32.mrf.mxu1  ;;  %1263 = vmatprep.subr.mxu0 %v1202_v36 }
 0x376   : > { %v6204_v52 = vpop.f32.mrf.mxu1 }
 0x377   : > { %4647 = vmatmul.mubr.msk.f32.gmra.mxu1 %vm1382_vm1, %v1367_v34  ;;  %v914_v34 = vld [vmem:[#allocation8 + $0x38] sm:$0xff] }
 0x378   : > { %1483 = vmatprep.mubr.f32.mxu1 %v7078_v12  ;;  %v6206_v53 = vpop.f32.mrf.mxu1  ;;  %4872 = vmatmul.mubr.msk.f32.gmra.mxu0 %vm473_vm0, %v914_v34 }
 0x379   : > { %1301 = vmatprep.mubr.f32.mxu0 %v7078_v12 }
 0x37a   : > { %v6208_v54 = vpop.f32.mrf.mxu1 }
 0x37b   : > { %4648 = vmatmul.mubr.msk.f32.gmra.mxu1 %vm1382_vm1, %v1368_v35  ;;  %v6273_v35 = vpop.f32.mrf.mxu0 }
 0x37c   : > { %1489 = vmatprep.mubr.f32.mxu1 %v7078_v12  ;;  %v6210_v55 = vpop.f32.mrf.mxu1 }
 0x37e   : > { %v6212_v56 = vpop.f32.mrf.mxu1 }
 0x37f   : > { %4649 = vmatmul.mubr.msk.f32.gmra.mxu1 %vm1382_vm1, %v1369_v37  ;;  %v1201_v37 = vld [vmem:[#allocation11 + $0x20] sm:$0xff] }
 0x380   : > { %1495 = vmatprep.mubr.f32.mxu1 %v7078_v12  ;;  %v6214_v57 = vpop.f32.mrf.mxu1  ;;  %1264 = vmatpush1.msra.mxu0 %v1201_v37 }
 0x382   : > { %v6216_v58 = vpop.f32.mrf.mxu1 }
 0x383   : > { %4650 = vmatmul.mubr.msk.f32.gmra.mxu1 %vm1382_vm1, %v1370_v40  ;;  %v6276_v40 = vpop.f32.mrf.mxu0 }
 0x384   : > { %1501 = vmatprep.mubr.f32.mxu1 %v7078_v12  ;;  %v6218_v59 = vpop.f32.mrf.mxu1 }
 0x385   : > { %v4864_v42 = vpop.f32.mrf.mxu0 }
 0x386   : > { %v6220_v60 = vpop.f32.mrf.mxu1 }
 0x387   : > { %4651 = vmatmul.mubr.msk.f32.gmra.mxu1 %vm1382_vm1, %v1371_v29  ;;  %v1200_v29 = vld [vmem:[#allocation11 + $0x18] sm:$0xff]  ;;  %v1005_v45 = vpop.f32.mrf.mxu0 }
 0x388   : > { %1507 = vmatprep.mubr.f32.mxu1 %v7078_v12  ;;  %v6222_v61 = vpop.f32.mrf.mxu1  ;;  %1265 = vmatprep.subr.mxu0 %v1200_v29 }
 0x38a   : > { %v6224_v62 = vpop.f32.mrf.mxu1 }
 0x38b   : > { %4652 = vmatmul.mubr.msk.f32.gmra.mxu1 %vm1382_vm1, %v1372_v38 }
 0x38c   : > { %1513 = vmatprep.mubr.f32.mxu1 %v7078_v12  ;;  %v6226_v63 = vpop.f32.mrf.mxu1 }
 0x38f   : > { %4653 = vmatmul.mubr.msk.f32.gmra.mxu1 %vm1382_vm1, %v1373_v41  ;;  %v1199_v41 = vld [vmem:[#allocation11 + $0x10] sm:$0xff] }
 0x390   : > { %1266 = vmatpush1.msra.mxu0 %v1199_v41 }
 0x391   : > { %1267 = vmatprep.subr.mxu0 %v1198_v43 }
 0x392   : > { %1268 = vmatpush1.msra.mxu0 %v1197_v44 }
 0x393   : > { %4638 = vmatmul.mubr.msk.f32.vlgmr.msra.gmra.mxu0 %vm473_vm0, %v1005_v45 }
 0x394   : > { %1307 = vmatprep.mubr.f32.mxu0 %v7078_v12 }
 0x397   : > { %4639 = vmatmul.mubr.msk.f32.gmra.mxu0 %vm473_vm0, %v4864_v42 }
 0x398   : > { %1313 = vmatprep.mubr.f32.mxu0 %v7078_v12 }
 0x433   : > { %v6228_v0 = vpop.f32.mrf.mxu1 }
 0x435   : > { %v6230_v1 = vpop.f32.mrf.mxu1 }
 0x436   : > { %v1520_v46 = vmax.f32 %v6228_v0, %v6230_v1 }
 0x437   : > { %v6232_v2 = vpop.f32.mrf.mxu1 }
 0x439   : > { %v6234_v3 = vpop.f32.mrf.mxu1 }
 0x43a   : > { %v1523_v39 = vmax.f32 %v6232_v2, %v6234_v3 }
 0x43b   : > { %v6236_v4 = vpop.f32.mrf.mxu1 }
 0x43d   : > { %v6238_v5 = vpop.f32.mrf.mxu1 }
 0x43e   : > { %v1526_v38 = vmax.f32 %v6236_v4, %v6238_v5 }
 0x43f   : > { %v6240_v6 = vpop.f32.mrf.mxu1 }
 0x441   : > { %v6242_v7 = vpop.f32.mrf.mxu1 }
 0x442   : > { %v1529_v21 = vmax.f32 %v6240_v6, %v6242_v7 }
 0x443   : > { %v6244_v8 = vpop.f32.mrf.mxu1 }
 0x445   : > { %v6246_v9 = vpop.f32.mrf.mxu1 }
 0x446   : > { %v1532_v25 = vmax.f32 %v6244_v8, %v6246_v9 }
 0x447   : > { %v6248_v10 = vpop.f32.mrf.mxu1 }
 0x449   : > { %v6250_v11 = vpop.f32.mrf.mxu1 }
 0x44a   : > { %v1535_v23 = vmax.f32 %v6248_v10, %v6250_v11 }
 0x44b   : > { %v6252_v13 = vpop.f32.mrf.mxu1 }
 0x44d   : > { %v6254_v15 = vpop.f32.mrf.mxu1 }
 0x44e   : > { %v1538_v19 = vmax.f32 %v6252_v13, %v6254_v15 }
 0x44f   : > { %v1515_v16 = vpop.f32.mrf.mxu1 }
 0x451   : > { %v1517_v17 = vpop.f32.mrf.mxu1 }
 0x452   : > { %v1541_v18 = vmax.f32 %v1515_v16, %v1517_v17 }
 0x454   : > { %1542 = vmax.xlane.f32.xlu1 %v1541_v18 }
 0x458   : > { %1539 = vmax.xlane.f32.xlu1 %v1538_v19 }
 0x45c   : > { %1536 = vmax.xlane.f32.xlu1 %v1535_v23 }
 0x460   : > { %1533 = vmax.xlane.f32.xlu1 %v1532_v25 }
 0x464   : > { %1530 = vmax.xlane.f32.xlu1 %v1529_v21 }
 0x468   : > { %1527 = vmax.xlane.f32.xlu1 %v1526_v38 }
 0x46c   : > { %1524 = vmax.xlane.f32.xlu1 %v1523_v39 }
 0x470   : > { %1521 = vmax.xlane.f32.xlu1 %v1520_v46 }
 0x4dd   : > { %v1543_v47 = vpop.xlane.xlu1 %1542 }
 0x4de   : > { %v1558_v48 = vsub.f32 %v1515_v16, %v1543_v47  ;;  %v1559_v49 = vsub.f32 %v1517_v17, %v1543_v47 }
 0x4e0   : > { %v1588_v18 = vmul.f32 1.442695, %v1558_v48  ;;  %v1590_v19 = vmul.f32 1.442695, %v1559_v49 }
 0x4e1   : > { %v1540_v23 = vpop.xlane.xlu1 %1539 }
 0x4e2   : > { %5032 = vpow2.f32 %v1588_v18  ;;  %v1556_v25 = vsub.f32 %v6252_v13, %v1540_v23  ;;  %v1557_v26 = vsub.f32 %v6254_v15, %v1540_v23 }
 0x4e3   : > { %5034 = vpow2.f32 %v1590_v19 }
 0x4e4   : > { %v1584_v30 = vmul.f32 1.442695, %v1556_v25  ;;  %v1586_v31 = vmul.f32 1.442695, %v1557_v26 }
 0x4e5   : > { %v1537_v32 = vpop.xlane.xlu1 %1536 }
 0x4e6   : > { %5036 = vpow2.f32 %v1584_v30  ;;  %v1554_v33 = vsub.f32 %v6248_v10, %v1537_v32  ;;  %v1555_v21 = vsub.f32 %v6250_v11, %v1537_v32 }
 0x4e7   : > { %5038 = vpow2.f32 %v1586_v31 }
 0x4e8   : > { %v1580_v16 = vmul.f32 1.442695, %v1554_v33  ;;  %v1582_v17 = vmul.f32 1.442695, %v1555_v21 }
 0x4e9   : > { %v1534_v34 = vpop.xlane.xlu1 %1533 }
 0x4ea   : > { %5040 = vpow2.f32 %v1580_v16  ;;  %v1552_v28 = vsub.f32 %v6244_v8, %v1534_v34  ;;  %v1553_v13 = vsub.f32 %v6246_v9, %v1534_v34 }
 0x4eb   : > { %5042 = vpow2.f32 %v1582_v17 }
 0x4ec   : > { %v1576_v15 = vmul.f32 1.442695, %v1552_v28  ;;  %v1578_v36 = vmul.f32 1.442695, %v1553_v13 }
 0x4ed   : > { %v1531_v37 = vpop.xlane.xlu1 %1530 }
 0x4ee   : > { %5044 = vpow2.f32 %v1576_v15  ;;  %v1550_v29 = vsub.f32 %v6240_v6, %v1531_v37  ;;  %v1551_v10 = vsub.f32 %v6242_v7, %v1531_v37 }
 0x4ef   : > { %v6297_v38 = vpop.eup %5032  ;;  %5046 = vpow2.f32 %v1578_v36 }
 0x4f0   : > { %v6299_v11 = vpop.eup %5034  ;;  %v1572_v41 = vmul.f32 1.442695, %v1550_v29  ;;  %v1574_v42 = vmul.f32 1.442695, %v1551_v10  ;;  %v4867_v10 = vpop.f32.mrf.mxu0 }
 0x4f1   : > { %v1528_v43 = vpop.xlane.xlu1 %1527  ;;  %v1613_v8 = vadd.f32 %v6299_v11, %v6297_v38 }
 0x4f2   : > { %5048 = vpow2.f32 %v1572_v41  ;;  %v1548_v9 = vsub.f32 %v6236_v4, %v1528_v43  ;;  %v1549_v44 = vsub.f32 %v6238_v5, %v1528_v43  ;;  %v1015_v41 = vpop.f32.mrf.mxu0 }
 0x4f3   : > { %v6305_v45 = vpop.eup %5036  ;;  %5050 = vpow2.f32 %v1574_v42  ;;  %1614 = vadd.xlane.f32.xlu1 %v1613_v8  ;;  %4640 = vmatmul.mubr.msk.f32.gmra.mxu0 %vm473_vm0, %v1015_v41 }
 0x4f4   : > { %v6307_v6 = vpop.eup %5038  ;;  %v1568_v7 = vmul.f32 1.442695, %v1548_v9  ;;  %v1570_v39 = vmul.f32 1.442695, %v1549_v44  ;;  %1319 = vmatprep.mubr.f32.mxu0 %v7078_v12  ;;  %v4870_v42 = vpop.f32.mrf.mxu0 }
 0x4f5   : > { %v1525_v46 = vpop.xlane.xlu1 %1524  ;;  %v1610_v47 = vadd.f32 %v6307_v6, %v6305_v45 }
 0x4f6   : > { %5052 = vpow2.f32 %v1568_v7  ;;  %v1546_v48 = vsub.f32 %v6232_v2, %v1525_v46  ;;  %v1547_v49 = vsub.f32 %v6234_v3, %v1525_v46  ;;  %v1025_v43 = vpop.f32.mrf.mxu0 }
 0x4f7   : > { %v6313_v4 = vpop.eup %5040  ;;  %5054 = vpow2.f32 %v1570_v39  ;;  %1611 = vadd.xlane.f32.xlu1 %v1610_v47  ;;  %4641 = vmatmul.mubr.msk.f32.gmra.mxu0 %vm473_vm0, %v4867_v10 }
 0x4f8   : > { %v6315_v5 = vpop.eup %5042  ;;  %v1564_v18 = vmul.f32 1.442695, %v1546_v48  ;;  %v1566_v19 = vmul.f32 1.442695, %v1547_v49  ;;  %1325 = vmatprep.mubr.f32.mxu0 %v7078_v12  ;;  %v4873_v8 = vpop.f32.mrf.mxu0 }
 0x4f9   : > { %v1522_v23 = vpop.xlane.xlu1 %1521  ;;  %v1607_v25 = vadd.f32 %v6315_v5, %v6313_v4 }
 0x4fa   : > { %5056 = vpow2.f32 %v1564_v18  ;;  %v1544_v26 = vsub.f32 %v6228_v0, %v1522_v23  ;;  %v1545_v30 = vsub.f32 %v6230_v1, %v1522_v23  ;;  %v1035_v9 = vpop.f32.mrf.mxu0 }
 0x4fb   : > { %v6321_v2 = vpop.eup %5044  ;;  %5058 = vpow2.f32 %v1566_v19  ;;  %1608 = vadd.xlane.f32.xlu1 %v1607_v25  ;;  %4642 = vmatmul.mubr.msk.f32.gmra.mxu0 %vm473_vm0, %v1025_v43 }
 0x4fc   : > { %v6323_v3 = vpop.eup %5046  ;;  %v1560_v31 = vmul.f32 1.442695, %v1544_v26  ;;  %v1562_v32 = vmul.f32 1.442695, %v1545_v30  ;;  %1331 = vmatprep.mubr.f32.mxu0 %v7078_v12  ;;  %v6362_v44 = vpop.f32.mrf.mxu0 }
 0x4fd   : > { %v1604_v33 = vadd.f32 %v6323_v3, %v6321_v2 }
 0x4fe   : > { %5060 = vpow2.f32 %v1560_v31  ;;  %v1305_v7 = vpop.f32.mrf.mxu0 }
 0x4ff   : > { %v6327_v21 = vpop.eup %5048  ;;  %5062 = vpow2.f32 %v1562_v32  ;;  %1605 = vadd.xlane.f32.xlu1 %v1604_v33  ;;  %4643 = vmatmul.mubr.msk.f32.gmra.mxu0 %vm473_vm0, %v4870_v42 }
 0x500   : > { %v6329_v16 = vpop.eup %5050  ;;  %1337 = vmatprep.mubr.f32.mxu0 %v7078_v12  ;;  %v6364_v39 = vpop.f32.mrf.mxu0 }
 0x501   : > { %v1601_v0 = vadd.f32 %v6329_v16, %v6327_v21 }
 0x502   : > { %v1311_v46 = vpop.f32.mrf.mxu0 }
 0x503   : > { %v6333_v1 = vpop.eup %5052  ;;  %1602 = vadd.xlane.f32.xlu0 %v1601_v0  ;;  %4644 = vmatmul.mubr.msk.f32.gmra.mxu0 %vm473_vm0, %v1035_v9 }
 0x504   : > { %v6335_v17 = vpop.eup %5054  ;;  %1343 = vmatprep.mubr.f32.mxu0 %v7078_v12  ;;  %2063 = vmatprep.mubr.f32.mxu1 %v1311_v46 }
 0x505   : > { %v1598_v34 = vadd.f32 %v6335_v17, %v6333_v1 }
 0x507   : > { %v6339_v28 = vpop.eup %5056  ;;  %1599 = vadd.xlane.f32.xlu1 %v1598_v34  ;;  %4645 = vmatmul.mubr.msk.f32.gmra.mxu0 %vm473_vm0, %v4873_v8 }
 0x508   : > { %v6341_v13 = vpop.eup %5058  ;;  %1704 = vmatprep.mubr.f32.mxu0 %v1305_v7 }
 0x509   : > { %v1595_v15 = vadd.f32 %v6341_v13, %v6339_v28 }
 0x50b   : > { %v6345_v36 = vpop.eup %5060  ;;  %1596 = vadd.xlane.f32.xlu1 %v1595_v15 }
 0x50c   : > { %v6347_v37 = vpop.eup %5062 }
 0x50d   : > { %v1592_v29 = vadd.f32 %v6347_v37, %v6345_v36 }
 0x50f   : > { %1593 = vadd.xlane.f32.xlu1 %v1592_v29 }
 0x542   : > { %1710 = vxpose.xlu1.b32.start.end [1/1] (short) (narrow) %v6155_v14, 64 }
 0x57c   : > { %v1615_v47 = vpop.xlane.xlu1 %1614 }
 0x57d   : > { %5064 = vrcp.f32 %v1615_v47 }
 0x580   : > { %v1612_v48 = vpop.xlane.xlu1 %1611 }
 0x581   : > { %5066 = vrcp.f32 %v1612_v48 }
 0x584   : > { %v1609_v49 = vpop.xlane.xlu1 %1608 }
 0x585   : > { %5068 = vrcp.f32 %v1609_v49 }
 0x588   : > { %v1606_v18 = vpop.xlane.xlu1 %1605 }
 0x589   : > { %5070 = vrcp.f32 %v1606_v18 }
 0x58a   : > { %v5065_v19 = vpop.eup %5064 }
 0x58b   : > { %v1639_v23 = vmul.f32 %v5065_v19, %v6299_v11  ;;  %v1638_v25 = vmul.f32 %v5065_v19, %v6297_v38 }
 0x58c   : > { %v1603_v26 = vpop.xlane.xlu0 %1602 }
 0x58d   : > { %5072 = vrcp.f32 %v1603_v26  ;;  %1656 = vmatprep.subr.mxu0 %v1639_v23 }
 0x58e   : > { %v5067_v30 = vpop.eup %5066  ;;  %1657 = vmatpush1.xpose.msra.mxu0 %v1638_v25 }
 0x58f   : > { %v1637_v14 = vmul.f32 %v5067_v30, %v6307_v6  ;;  %v1636_v31 = vmul.f32 %v5067_v30, %v6305_v45 }
 0x590   : > { %v1600_v32 = vpop.xlane.xlu1 %1599 }
 0x591   : > { %5074 = vrcp.f32 %v1600_v32  ;;  %1658 = vmatprep.subr.mxu0 %v1637_v14 }
 0x592   : > { %v5069_v33 = vpop.eup %5068  ;;  %1659 = vmatpush1.xpose.msra.mxu0 %v1636_v31 }
 0x593   : > { %v1635_v0 = vmul.f32 %v5069_v33, %v6315_v5  ;;  %v1634_v11 = vmul.f32 %v5069_v33, %v6313_v4 }
 0x594   : > { %v1597_v34 = vpop.xlane.xlu1 %1596 }
 0x595   : > { %5076 = vrcp.f32 %v1597_v34  ;;  %1660 = vmatprep.subr.mxu0 %v1635_v0 }
 0x596   : > { %v5071_v38 = vpop.eup %5070  ;;  %1661 = vmatpush1.xpose.msra.mxu0 %v1634_v11 }
 0x597   : > { %v1633_v15 = vmul.f32 %v5071_v38, %v6323_v3  ;;  %v1632_v6 = vmul.f32 %v5071_v38, %v6321_v2 }
 0x598   : > { %v1594_v29 = vpop.xlane.xlu1 %1593 }
 0x599   : > { %5078 = vrcp.f32 %v1594_v29  ;;  %1662 = vmatprep.subr.mxu0 %v1633_v15 }
 0x59a   : > { %v5073_v45 = vpop.eup %5072  ;;  %1663 = vmatpush1.xpose.msra.mxu0 %v1632_v6 }
 0x59b   : > { %v1631_v10 = vmul.f32 %v5073_v45, %v6329_v16  ;;  %v1630_v5 = vmul.f32 %v5073_v45, %v6327_v21 }
 0x59d   : > { %1664 = vmatprep.subr.mxu0 %v1631_v10 }
 0x59e   : > { %v5075_v4 = vpop.eup %5074  ;;  %1665 = vmatpush1.xpose.msra.mxu0 %v1630_v5 }
 0x59f   : > { %v1629_v41 = vmul.f32 %v5075_v4, %v6335_v17  ;;  %v1628_v42 = vmul.f32 %v5075_v4, %v6333_v1 }
 0x5a1   : > { %1666 = vmatprep.subr.mxu0 %v1629_v41 }
 0x5a2   : > { %v5077_v3 = vpop.eup %5076  ;;  %1667 = vmatpush1.xpose.msra.mxu0 %v1628_v42 }
 0x5a3   : > { %v1627_v2 = vmul.f32 %v5077_v3, %v6341_v13  ;;  %v1626_v43 = vmul.f32 %v5077_v3, %v6339_v28 }
 0x5a5   : > { %1668 = vmatprep.subr.mxu0 %v1627_v2 }
 0x5a6   : > { %v5079_v8 = vpop.eup %5078  ;;  %1669 = vmatpush1.xpose.msra.mxu0 %v1626_v43 }
 0x5a7   : > { %v1625_v16 = vmul.f32 %v5079_v8, %v6347_v37  ;;  %v1624_v21 = vmul.f32 %v5079_v8, %v6345_v36 }
 0x5a9   : > { %1670 = vmatprep.subr.mxu0 %v1625_v16 }
 0x5aa   : > { %1671 = vmatpush1.xpose.msra.mxu0 %v1624_v21 }
 0x5ab   : > { %1796 = vmatprep.subr.mxu0 %v6202_v50 }
 0x5ad   : > { %1705 = vmatmul.mubr.f32.vlgmr.msra.gmra.mxu0 %v6362_v44 }
 0x5ae   : > { %1797 = vmatpush1.msra.mxu0 %v6200_v51  ;;  %1830 = vmatprep.mubr.f32.mxu0 %v7078_v12 }
 0x5b3   : > { %v6400_v37 = vpop.f32.mrf.mxu0 }
 0x5b5   : > { %v1317_v44 = vpop.f32.mrf.mxu0 }
 0x5b7   : > { %v6404_v7 = vpop.f32.mrf.mxu0 }
 0x5b9   : > { %v6406_v46 = vpop.f32.mrf.mxu0 }
 0x5bb   : > { %v6408_v47 = vpop.f32.mrf.mxu0 }
 0x5bd   : > { %v6410_v48 = vpop.f32.mrf.mxu0 }
 0x5be   : > { %v1726_v1 = vpop.trf.xlu1 }
 0x5bf   : > { %4654 = vmatmul.mubr.msk.f32.vlgmr.msra.gmra.mxu0 %vm1382_vm1, %v1726_v1  ;;  %v6412_v49 = vpop.f32.mrf.mxu0 }
 0x5c0   : > { %1836 = vmatprep.mubr.f32.mxu0 %v7078_v12 }
 0x5c1   : > { %v6414_v18 = vpop.f32.mrf.mxu0 }
 0x5c2   : > { %v1727_v17 = vpop.trf.xlu1 }
 0x5c3   : > { %4655 = vmatmul.mubr.msk.f32.gmra.mxu0 %vm1382_vm1, %v1727_v17  ;;  %v6416_v19 = vpop.f32.mrf.mxu0 }
 0x5c4   : > { %1842 = vmatprep.mubr.f32.mxu0 %v7078_v12  ;;  %7106 = vst [vmem:[#allocation20_spill] sm:$0xff] %v6416_v19 }
 0x5c5   : > { %v6418_v23 = vpop.f32.mrf.mxu0 }
 0x5c6   : > { %v1728_v28 = vpop.trf.xlu1 }
 0x5c7   : > { %4656 = vmatmul.mubr.msk.f32.gmra.mxu0 %vm1382_vm1, %v1728_v28  ;;  %v6420_v25 = vpop.f32.mrf.mxu0 }
 0x5c8   : > { %1848 = vmatprep.mubr.f32.mxu0 %v7078_v12 }
 0x5c9   : > { %v6422_v26 = vpop.f32.mrf.mxu0 }
 0x5ca   : > { %v1729_v50 = vpop.trf.xlu1 }
 0x5cb   : > { %4657 = vmatmul.mubr.msk.f32.gmra.mxu0 %vm1382_vm1, %v1729_v50 }
 0x5cc   : > { %1854 = vmatprep.mubr.f32.mxu0 %v7078_v12 }
 0x5ce   : > { %v1730_v51 = vpop.trf.xlu1 }
 0x5cf   : > { %4658 = vmatmul.mubr.msk.f32.gmra.mxu0 %vm1382_vm1, %v1730_v51 }
 0x5d0   : > { %1860 = vmatprep.mubr.f32.mxu0 %v7078_v12 }
 0x5d2   : > { %v1731_v13 = vpop.trf.xlu1 }
 0x5d3   : > { %4659 = vmatmul.mubr.msk.f32.gmra.mxu0 %vm1382_vm1, %v1731_v13 }
 0x5d4   : > { %1866 = vmatprep.mubr.f32.mxu0 %v7078_v12 }
 0x5d6   : > { %v1732_v36 = vpop.trf.xlu1 }
 0x5d7   : > { %4660 = vmatmul.mubr.msk.f32.gmra.mxu0 %vm1382_vm1, %v1732_v36 }
 0x5d8   : > { %1872 = vmatprep.mubr.f32.mxu0 %v7078_v12 }
 0x5da   : > { %v1733_v9 = vpop.trf.xlu1 }
 0x5db   : > { %4661 = vmatmul.mubr.msk.f32.gmra.mxu0 %vm1382_vm1, %v1733_v9 }
 0x5dc   : > { %2422 = vmatprep.mubr.f32.mxu0 %v1317_v44 }
 0x66d   : > { %v6424_v30 = vpop.f32.mrf.mxu0 }
 0x66e   : > { %7107 = vst [vmem:[#allocation21_spill] sm:$0xff] %v6424_v30 }
 0x66f   : > { %v1708_v14 = vpop.f32.mrf.mxu0 }
 0x67f   : > { %v6426_v31 = vpop.f32.mrf.mxu0 }
 0x681   : > { %v6428_v32 = vpop.f32.mrf.mxu0 }
 0x682   : > { %v1879_v17 = vmax.f32 %v6426_v31, %v6428_v32 }
 0x683   : > { %v6430_v33 = vpop.f32.mrf.mxu0 }
 0x685   : > { %v6432_v0 = vpop.f32.mrf.mxu0 }
 0x686   : > { %v1882_v1 = vmax.f32 %v6430_v33, %v6432_v0 }
 0x687   : > { %v6434_v11 = vpop.f32.mrf.mxu0 }
 0x689   : > { %v6436_v34 = vpop.f32.mrf.mxu0 }
 0x68a   : > { %v1885_v21 = vmax.f32 %v6434_v11, %v6436_v34 }
 0x68b   : > { %v1850_v38 = vpop.f32.mrf.mxu0 }
 0x68d   : > { %v1852_v15 = vpop.f32.mrf.mxu0 }
 0x68e   : > { %v1888_v16 = vmax.f32 %v1850_v38, %v1852_v15 }
 0x68f   : > { %v1856_v6 = vpop.f32.mrf.mxu0 }
 0x691   : > { %v1858_v29 = vpop.f32.mrf.mxu0 }
 0x692   : > { %v1891_v8 = vmax.f32 %v1856_v6, %v1858_v29 }
 0x693   : > { %v1862_v45 = vpop.f32.mrf.mxu0 }
 0x695   : > { %v1864_v10 = vpop.f32.mrf.mxu0 }
 0x696   : > { %v1894_v2 = vmax.f32 %v1862_v45, %v1864_v10 }
 0x697   : > { %v1868_v5 = vpop.f32.mrf.mxu0 }
 0x699   : > { %v1870_v4 = vpop.f32.mrf.mxu0 }
 0x69a   : > { %v1897_v41 = vmax.f32 %v1868_v5, %v1870_v4 }
 0x69b   : > { %v1874_v42 = vpop.f32.mrf.mxu0 }
 0x69c   : > { %1898 = vmax.xlane.f32.xlu0 %v1897_v41 }
 0x69d   : > { %v1876_v3 = vpop.f32.mrf.mxu0 }
 0x69e   : > { %v1900_v43 = vmax.f32 %v1874_v42, %v1876_v3 }
 0x6a0   : > { %1895 = vmax.xlane.f32.xlu0 %v1894_v2  ;;  %1901 = vmax.xlane.f32.xlu1 %v1900_v43 }
 0x6a4   : > { %1892 = vmax.xlane.f32.xlu0 %v1891_v8 }
 0x6a8   : > { %1889 = vmax.xlane.f32.xlu0 %v1888_v16 }
 0x6ac   : > { %1886 = vmax.xlane.f32.xlu0 %v1885_v21 }
 0x6b0   : > { %1883 = vmax.xlane.f32.xlu0 %v1882_v1 }
 0x6b4   : > { %1880 = vmax.xlane.f32.xlu0 %v1879_v17 }
 0x725   : > { %v1899_v28 = vpop.xlane.xlu0 %1898 }
 0x726   : > { %v1915_v13 = vsub.f32 %v1868_v5, %v1899_v28  ;;  %v1916_v9 = vsub.f32 %v1870_v4, %v1899_v28 }
 0x728   : > { %v1943_v43 = vmul.f32 1.442695, %v1915_v13  ;;  %v1945_v16 = vmul.f32 1.442695, %v1916_v9 }
 0x729   : > { %v1896_v50 = vpop.xlane.xlu0 %1895  ;;  %v1902_v51 = vpop.xlane.xlu1 %1901 }
 0x72a   : > { %v1917_v36 = vsub.f32 %v1874_v42, %v1902_v51  ;;  %v1918_v44 = vsub.f32 %v1876_v3, %v1902_v51  ;;  %v1913_v8 = vsub.f32 %v1862_v45, %v1896_v50  ;;  %v1914_v21 = vsub.f32 %v1864_v10, %v1896_v50 }
 0x72c   : > { %v1947_v14 = vmul.f32 1.442695, %v1917_v36  ;;  %v1949_v41 = vmul.f32 1.442695, %v1918_v44  ;;  %v1939_v12 = vmul.f32 1.442695, %v1913_v8 }
 0x72d   : > { %v1893_v2 = vpop.xlane.xlu0 %1892  ;;  %v1941_v19 = vmul.f32 1.442695, %v1914_v21 }
 0x72e   : > { %5080 = vpow2.f32 %v1947_v14  ;;  %v1911_v17 = vsub.f32 %v1856_v6, %v1893_v2  ;;  %v1912_v30 = vsub.f32 %v1858_v29, %v1893_v2 }
 0x72f   : > { %5082 = vpow2.f32 %v1949_v41 }
 0x730   : > { %5084 = vpow2.f32 %v1943_v43  ;;  %v1935_v4 = vmul.f32 1.442695, %v1911_v17  ;;  %v1937_v3 = vmul.f32 1.442695, %v1912_v30 }
 0x731   : > { %v1890_v1 = vpop.xlane.xlu0 %1889  ;;  %5086 = vpow2.f32 %v1945_v16 }
 0x732   : > { %5088 = vpow2.f32 %v1939_v12  ;;  %v1909_v42 = vsub.f32 %v1850_v38, %v1890_v1  ;;  %v1910_v28 = vsub.f32 %v1852_v15, %v1890_v1 }
 0x733   : > { %5090 = vpow2.f32 %v1941_v19 }
 0x734   : > { %5092 = vpow2.f32 %v1935_v4  ;;  %v1931_v45 = vmul.f32 1.442695, %v1909_v42  ;;  %v1933_v50 = vmul.f32 1.442695, %v1910_v28 }
 0x735   : > { %v1887_v5 = vpop.xlane.xlu0 %1886  ;;  %5094 = vpow2.f32 %v1937_v3 }
 0x736   : > { %v1907_v10 = vsub.f32 %v6434_v11, %v1887_v5  ;;  %v1908_v13 = vsub.f32 %v6436_v34, %v1887_v5  ;;  %5096 = vpow2.f32 %v1931_v45 }
 0x737   : > { %5098 = vpow2.f32 %v1933_v50 }
 0x738   : > { %v1927_v29 = vmul.f32 1.442695, %v1907_v10  ;;  %v1929_v19 = vmul.f32 1.442695, %v1908_v13 }
 0x739   : > { %v1884_v51 = vpop.xlane.xlu0 %1883 }
 0x73a   : > { %v1905_v12 = vsub.f32 %v6430_v33, %v1884_v51  ;;  %v1906_v30 = vsub.f32 %v6432_v0, %v1884_v51  ;;  %5100 = vpow2.f32 %v1927_v29 }
 0x73b   : > { %v5081_v6 = vpop.eup %5080  ;;  %5102 = vpow2.f32 %v1929_v19 }
 0x73c   : > { %v5083_v36 = vpop.eup %5082  ;;  %v1923_v11 = vmul.f32 1.442695, %v1905_v12  ;;  %v1925_v41 = vmul.f32 1.442695, %v1906_v30 }
 0x73d   : > { %v6447_v9 = vpop.eup %5084  ;;  %v1881_v38 = vpop.xlane.xlu0 %1880  ;;  %v1972_v15 = vadd.f32 %v5083_v36, %v5081_v6 }
 0x73e   : > { %v5087_v44 = vpop.eup %5086  ;;  %v1903_v34 = vsub.f32 %v6426_v31, %v1881_v38  ;;  %v1904_v2 = vsub.f32 %v6428_v32, %v1881_v38  ;;  %5104 = vpow2.f32 %v1923_v11 }
 0x73f   : > { %1973 = vadd.xlane.f32.xlu0 %v1972_v15  ;;  %v5089_v14 = vpop.eup %5088  ;;  %v1969_v33 = vadd.f32 %v5087_v44, %v6447_v9  ;;  %5106 = vpow2.f32 %v1925_v41 }
 0x740   : > { %v5091_v43 = vpop.eup %5090  ;;  %v1919_v8 = vmul.f32 1.442695, %v1903_v34  ;;  %v1921_v16 = vmul.f32 1.442695, %v1904_v2 }
 0x741   : > { %v5093_v0 = vpop.eup %5092  ;;  %v1966_v21 = vadd.f32 %v5091_v43, %v5089_v14 }
 0x742   : > { %v5095_v1 = vpop.eup %5094  ;;  %5108 = vpow2.f32 %v1919_v8 }
 0x743   : > { %1970 = vadd.xlane.f32.xlu0 %v1969_v33  ;;  %v5097_v17 = vpop.eup %5096  ;;  %5110 = vpow2.f32 %v1921_v16  ;;  %v1963_v31 = vadd.f32 %v5095_v1, %v5093_v0 }
 0x744   : > { %v5099_v5 = vpop.eup %5098 }
 0x745   : > { %v1960_v32 = vadd.f32 %v5099_v5, %v5097_v17 }
 0x747   : > { %1967 = vadd.xlane.f32.xlu0 %v1966_v21  ;;  %v5101_v4 = vpop.eup %5100 }
 0x748   : > { %v5103_v42 = vpop.eup %5102 }
 0x749   : > { %v1957_v28 = vadd.f32 %v5103_v42, %v5101_v4 }
 0x74b   : > { %1964 = vadd.xlane.f32.xlu0 %v1963_v31  ;;  %v5105_v3 = vpop.eup %5104 }
 0x74c   : > { %v5107_v51 = vpop.eup %5106 }
 0x74d   : > { %v1954_v10 = vadd.f32 %v5107_v51, %v5105_v3 }
 0x74f   : > { %1961 = vadd.xlane.f32.xlu0 %v1960_v32  ;;  %v5109_v45 = vpop.eup %5108 }
 0x750   : > { %v5111_v50 = vpop.eup %5110 }
 0x751   : > { %v1951_v13 = vadd.f32 %v5111_v50, %v5109_v45 }
 0x753   : > { %1958 = vadd.xlane.f32.xlu0 %v1957_v28 }
 0x757   : > { %1955 = vadd.xlane.f32.xlu0 %v1954_v10 }
 0x75b   : > { %1952 = vadd.xlane.f32.xlu0 %v1951_v13 }
 0x788   : > { %2069 = vxpose.xlu0.b32.start.end [1/1] (short) (narrow) %v6262_v24, 64 }
 0x7c8   : > { %v1974_v29 = vpop.xlane.xlu0 %1973 }
 0x7c9   : > { %5112 = vrcp.f32 %v1974_v29 }
 0x7cc   : > { %v1971_v12 = vpop.xlane.xlu0 %1970 }
 0x7cd   : > { %5114 = vrcp.f32 %v1971_v12 }
 0x7d0   : > { %v1968_v19 = vpop.xlane.xlu0 %1967 }
 0x7d1   : > { %5116 = vrcp.f32 %v1968_v19 }
 0x7d4   : > { %v1965_v30 = vpop.xlane.xlu0 %1964 }
 0x7d5   : > { %5118 = vrcp.f32 %v1965_v30 }
 0x7d6   : > { %v5113_v38 = vpop.eup %5112 }
 0x7d7   : > { %v1998_v15 = vmul.f32 %v5113_v38, %v5083_v36  ;;  %v1997_v11 = vmul.f32 %v5113_v38, %v5081_v6 }
 0x7d8   : > { %v1962_v34 = vpop.xlane.xlu0 %1961 }
 0x7d9   : > { %5120 = vrcp.f32 %v1962_v34  ;;  %2015 = vmatprep.subr.mxu1 %v1998_v15 }
 0x7da   : > { %v5115_v41 = vpop.eup %5114  ;;  %2016 = vmatpush1.xpose.msra.mxu1 %v1997_v11 }
 0x7db   : > { %v1996_v2 = vmul.f32 %v5115_v41, %v5087_v44  ;;  %v1995_v33 = vmul.f32 %v5115_v41, %v6447_v9 }
 0x7dc   : > { %v1959_v24 = vpop.xlane.xlu0 %1958 }
 0x7dd   : > { %5122 = vrcp.f32 %v1959_v24  ;;  %2017 = vmatprep.subr.mxu1 %v1996_v2 }
 0x7de   : > { %v5117_v8 = vpop.eup %5116  ;;  %2018 = vmatpush1.xpose.msra.mxu1 %v1995_v33 }
 0x7df   : > { %v1994_v16 = vmul.f32 %v5117_v8, %v5091_v43  ;;  %v1993_v21 = vmul.f32 %v5117_v8, %v5089_v14 }
 0x7e0   : > { %v1956_v31 = vpop.xlane.xlu0 %1955 }
 0x7e1   : > { %5124 = vrcp.f32 %v1956_v31  ;;  %2019 = vmatprep.subr.mxu1 %v1994_v16 }
 0x7e2   : > { %v5119_v36 = vpop.eup %5118  ;;  %2020 = vmatpush1.xpose.msra.mxu1 %v1993_v21 }
 0x7e3   : > { %v1992_v6 = vmul.f32 %v5119_v36, %v5095_v1  ;;  %v1991_v32 = vmul.f32 %v5119_v36, %v5093_v0 }
 0x7e4   : > { %v1953_v28 = vpop.xlane.xlu0 %1952 }
 0x7e5   : > { %5126 = vrcp.f32 %v1953_v28  ;;  %2021 = vmatprep.subr.mxu1 %v1992_v6 }
 0x7e6   : > { %v5121_v44 = vpop.eup %5120  ;;  %2022 = vmatpush1.xpose.msra.mxu1 %v1991_v32 }
 0x7e7   : > { %v1990_v9 = vmul.f32 %v5121_v44, %v5099_v5  ;;  %v1989_v10 = vmul.f32 %v5121_v44, %v5097_v17  ;;  %v7108_v17 = vmov 0.0  }
 0x7e9   : > { %2023 = vmatprep.subr.mxu1 %v1990_v9 }
 0x7ea   : > { %v5123_v13 = vpop.eup %5122  ;;  %2024 = vmatpush1.xpose.msra.mxu1 %v1989_v10 }
 0x7eb   : > { %v1988_v29 = vmul.f32 %v5123_v13, %v5103_v42  ;;  %v1987_v43 = vmul.f32 %v5123_v13, %v5101_v4 }
 0x7ed   : > { %2025 = vmatprep.subr.mxu1 %v1988_v29 }
 0x7ee   : > { %v5125_v14 = vpop.eup %5124  ;;  %2026 = vmatpush1.xpose.msra.mxu1 %v1987_v43 }
 0x7ef   : > { %v1986_v12 = vmul.f32 %v5125_v14, %v5107_v51  ;;  %v1985_v19 = vmul.f32 %v5125_v14, %v5105_v3 }
 0x7f1   : > { %2027 = vmatprep.subr.mxu1 %v1986_v12 }
 0x7f2   : > { %v5127_v1 = vpop.eup %5126  ;;  %2028 = vmatpush1.xpose.msra.mxu1 %v1985_v19 }
 0x7f3   : > { %v1984_v0 = vmul.f32 %v5127_v1, %v5111_v50  ;;  %v1983_v30 = vmul.f32 %v5127_v1, %v5109_v45 }
 0x7f5   : > { %2029 = vmatprep.subr.mxu1 %v1984_v0 }
 0x7f6   : > { %2030 = vmatpush1.xpose.msra.mxu1 %v1983_v30 }
 0x7f7   : > { %2155 = vmatprep.subr.mxu1 %v6206_v53 }
 0x7f9   : > { %2064 = vmatmul.mubr.f32.vlgmr.msra.gmra.mxu1 %v6364_v39 }
 0x7fa   : > { %2156 = vmatpush1.msra.mxu1 %v6204_v52  ;;  %2189 = vmatprep.mubr.f32.mxu1 %v7108_v17 }
 0x804   : > { %v2085_v5 = vpop.trf.xlu0 }
 0x805   : > { %4662 = vmatmul.mubr.msk.f32.vlgmr.msra.gmra.mxu1 %vm1382_vm1, %v2085_v5 }
 0x806   : > { %2195 = vmatprep.mubr.f32.mxu1 %v7108_v17 }
 0x808   : > { %v2086_v4 = vpop.trf.xlu0 }
 0x809   : > { %4663 = vmatmul.mubr.msk.f32.gmra.mxu1 %vm1382_vm1, %v2086_v4 }
 0x80a   : > { %2201 = vmatprep.mubr.f32.mxu1 %v7108_v17 }
 0x80c   : > { %v2087_v42 = vpop.trf.xlu0 }
 0x80d   : > { %4664 = vmatmul.mubr.msk.f32.gmra.mxu1 %vm1382_vm1, %v2087_v42 }
 0x80e   : > { %2207 = vmatprep.mubr.f32.mxu1 %v7108_v17 }
 0x810   : > { %v2088_v53 = vpop.trf.xlu0 }
 0x811   : > { %4665 = vmatmul.mubr.msk.f32.gmra.mxu1 %vm1382_vm1, %v2088_v53 }
 0x812   : > { %2213 = vmatprep.mubr.f32.mxu1 %v7108_v17 }
 0x814   : > { %v2089_v52 = vpop.trf.xlu0 }
 0x815   : > { %4666 = vmatmul.mubr.msk.f32.gmra.mxu1 %vm1382_vm1, %v2089_v52 }
 0x816   : > { %2219 = vmatprep.mubr.f32.mxu1 %v7108_v17 }
 0x818   : > { %v2090_v39 = vpop.trf.xlu0 }
 0x819   : > { %4667 = vmatmul.mubr.msk.f32.gmra.mxu1 %vm1382_vm1, %v2090_v39 }
 0x81a   : > { %2225 = vmatprep.mubr.f32.mxu1 %v7108_v17 }
 0x81c   : > { %v2091_v3 = vpop.trf.xlu0 }
 0x81d   : > { %4668 = vmatmul.mubr.msk.f32.gmra.mxu1 %vm1382_vm1, %v2091_v3 }
 0x81e   : > { %2231 = vmatprep.mubr.f32.mxu1 %v7108_v17 }
 0x820   : > { %v2092_v51 = vpop.trf.xlu0 }
 0x821   : > { %4669 = vmatmul.mubr.msk.f32.gmra.mxu1 %vm1382_vm1, %v2092_v51 }
 0x822   : > { %2781 = vmatprep.mubr.f32.mxu1 %v6406_v46 }
 0x8b9   : > { %v6475_v45 = vpop.f32.mrf.mxu1 }
 0x8bb   : > { %v2067_v50 = vpop.f32.mrf.mxu1 }
 0x8c5   : > { %v6477_v38 = vpop.f32.mrf.mxu1 }
 0x8c7   : > { %v6479_v15 = vpop.f32.mrf.mxu1 }
 0x8c8   : > { %v2238_v14 = vmax.f32 %v6477_v38, %v6479_v15 }
 0x8c9   : > { %v6481_v11 = vpop.f32.mrf.mxu1 }
 0x8cb   : > { %v6483_v34 = vpop.f32.mrf.mxu1 }
 0x8cc   : > { %v2241_v43 = vmax.f32 %v6481_v11, %v6483_v34 }
 0x8cd   : > { %v6485_v41 = vpop.f32.mrf.mxu1 }
 0x8cf   : > { %v6487_v2 = vpop.f32.mrf.mxu1 }
 0x8d0   : > { %v2244_v29 = vmax.f32 %v6485_v41, %v6487_v2 }
 0x8d1   : > { %v2209_v33 = vpop.f32.mrf.mxu1 }
 0x8d3   : > { %v2211_v24 = vpop.f32.mrf.mxu1 }
 0x8d4   : > { %v2247_v13 = vmax.f32 %v2209_v33, %v2211_v24 }
 0x8d5   : > { %v2215_v8 = vpop.f32.mrf.mxu1 }
 0x8d7   : > { %v2217_v16 = vpop.f32.mrf.mxu1 }
 0x8d8   : > { %v2250_v10 = vmax.f32 %v2215_v8, %v2217_v16 }
 0x8d9   : > { %v2221_v46 = vpop.f32.mrf.mxu1 }
 0x8db   : > { %v2223_v21 = vpop.f32.mrf.mxu1 }
 0x8dc   : > { %v2253_v9 = vmax.f32 %v2221_v46, %v2223_v21 }
 0x8dd   : > { %v2227_v31 = vpop.f32.mrf.mxu1 }
 0x8df   : > { %v2229_v36 = vpop.f32.mrf.mxu1 }
 0x8e0   : > { %v2256_v44 = vmax.f32 %v2227_v31, %v2229_v36 }
 0x8e1   : > { %v2233_v6 = vpop.f32.mrf.mxu1 }
 0x8e3   : > { %v2235_v32 = vpop.f32.mrf.mxu1 }
 0x8e4   : > { %v2259_v28 = vmax.f32 %v2233_v6, %v2235_v32 }
 0x8e6   : > { %2260 = vmax.xlane.f32.xlu1 %v2259_v28 }
 0x8ea   : > { %2257 = vmax.xlane.f32.xlu1 %v2256_v44 }
 0x8ee   : > { %2254 = vmax.xlane.f32.xlu1 %v2253_v9 }
 0x8f2   : > { %2251 = vmax.xlane.f32.xlu1 %v2250_v10 }
 0x8f6   : > { %2248 = vmax.xlane.f32.xlu1 %v2247_v13 }
 0x8fa   : > { %2245 = vmax.xlane.f32.xlu1 %v2244_v29 }
 0x8fe   : > { %2242 = vmax.xlane.f32.xlu1 %v2241_v43 }
 0x902   : > { %2239 = vmax.xlane.f32.xlu1 %v2238_v14 }
 0x96f   : > { %v2261_v12 = vpop.xlane.xlu1 %2260 }
 0x970   : > { %v2276_v19 = vsub.f32 %v2233_v6, %v2261_v12  ;;  %v2277_v1 = vsub.f32 %v2235_v32, %v2261_v12 }
 0x972   : > { %v2306_v0 = vmul.f32 1.442695, %v2276_v19  ;;  %v2308_v30 = vmul.f32 1.442695, %v2277_v1 }
 0x973   : > { %v2258_v5 = vpop.xlane.xlu1 %2257 }
 0x974   : > { %5128 = vpow2.f32 %v2306_v0  ;;  %v2274_v4 = vsub.f32 %v2227_v31, %v2258_v5  ;;  %v2275_v42 = vsub.f32 %v2229_v36, %v2258_v5 }
 0x975   : > { %5130 = vpow2.f32 %v2308_v30 }
 0x976   : > { %v2302_v53 = vmul.f32 1.442695, %v2274_v4  ;;  %v2304_v52 = vmul.f32 1.442695, %v2275_v42 }
 0x977   : > { %v2255_v39 = vpop.xlane.xlu1 %2254 }
 0x978   : > { %5132 = vpow2.f32 %v2302_v53  ;;  %v2272_v3 = vsub.f32 %v2221_v46, %v2255_v39  ;;  %v2273_v51 = vsub.f32 %v2223_v21, %v2255_v39 }
 0x979   : > { %5134 = vpow2.f32 %v2304_v52 }
 0x97a   : > { %v2298_v50 = vmul.f32 1.442695, %v2272_v3  ;;  %v2300_v28 = vmul.f32 1.442695, %v2273_v51 }
 0x97b   : > { %v2252_v44 = vpop.xlane.xlu1 %2251 }
 0x97c   : > { %5136 = vpow2.f32 %v2298_v50  ;;  %v2270_v6 = vsub.f32 %v2215_v8, %v2252_v44  ;;  %v2271_v32 = vsub.f32 %v2217_v16, %v2252_v44 }
 0x97d   : > { %5138 = vpow2.f32 %v2300_v28 }
 0x97e   : > { %v2294_v9 = vmul.f32 1.442695, %v2270_v6  ;;  %v2296_v10 = vmul.f32 1.442695, %v2271_v32 }
 0x97f   : > { %v2249_v13 = vpop.xlane.xlu1 %2248 }
 0x980   : > { %5140 = vpow2.f32 %v2294_v9  ;;  %v2268_v31 = vsub.f32 %v2209_v33, %v2249_v13  ;;  %v2269_v36 = vsub.f32 %v2211_v24, %v2249_v13 }
 0x981   : > { %v6495_v29 = vpop.eup %5128  ;;  %5142 = vpow2.f32 %v2296_v10 }
 0x982   : > { %v6497_v43 = vpop.eup %5130  ;;  %v2290_v46 = vmul.f32 1.442695, %v2268_v31  ;;  %v2292_v21 = vmul.f32 1.442695, %v2269_v36 }
 0x983   : > { %v2246_v14 = vpop.xlane.xlu1 %2245  ;;  %v2331_v12 = vadd.f32 %v6497_v43, %v6495_v29 }
 0x984   : > { %5144 = vpow2.f32 %v2290_v46  ;;  %v2266_v8 = vsub.f32 %v6485_v41, %v2246_v14  ;;  %v2267_v16 = vsub.f32 %v6487_v2, %v2246_v14 }
 0x985   : > { %v6503_v19 = vpop.eup %5132  ;;  %5146 = vpow2.f32 %v2292_v21  ;;  %2332 = vadd.xlane.f32.xlu1 %v2331_v12 }
 0x986   : > { %v5135_v33 = vpop.eup %5134  ;;  %v2286_v24 = vmul.f32 1.442695, %v2266_v8  ;;  %v2288_v1 = vmul.f32 1.442695, %v2267_v16 }
 0x987   : > { %v2243_v0 = vpop.xlane.xlu1 %2242  ;;  %v2328_v30 = vadd.f32 %v5135_v33, %v6503_v19 }
 0x988   : > { %5148 = vpow2.f32 %v2286_v24  ;;  %v2264_v5 = vsub.f32 %v6481_v11, %v2243_v0  ;;  %v2265_v4 = vsub.f32 %v6483_v34, %v2243_v0 }
 0x989   : > { %v5137_v42 = vpop.eup %5136  ;;  %5150 = vpow2.f32 %v2288_v1  ;;  %2329 = vadd.xlane.f32.xlu1 %v2328_v30 }
 0x98a   : > { %v5139_v41 = vpop.eup %5138  ;;  %v2282_v2 = vmul.f32 1.442695, %v2264_v5  ;;  %v2284_v53 = vmul.f32 1.442695, %v2265_v4 }
 0x98b   : > { %v2240_v52 = vpop.xlane.xlu1 %2239  ;;  %v2325_v39 = vadd.f32 %v5139_v41, %v5137_v42 }
 0x98c   : > { %5152 = vpow2.f32 %v2282_v2  ;;  %v2262_v3 = vsub.f32 %v6477_v38, %v2240_v52  ;;  %v2263_v51 = vsub.f32 %v6479_v15, %v2240_v52 }
 0x98d   : > { %v5141_v50 = vpop.eup %5140  ;;  %5154 = vpow2.f32 %v2284_v53  ;;  %2326 = vadd.xlane.f32.xlu1 %v2325_v39 }
 0x98e   : > { %v5143_v28 = vpop.eup %5142  ;;  %v2278_v11 = vmul.f32 1.442695, %v2262_v3  ;;  %v2280_v44 = vmul.f32 1.442695, %v2263_v51 }
 0x98f   : > { %v2322_v34 = vadd.f32 %v5143_v28, %v5141_v50 }
 0x990   : > { %5156 = vpow2.f32 %v2278_v11 }
 0x991   : > { %v5145_v6 = vpop.eup %5144  ;;  %5158 = vpow2.f32 %v2280_v44  ;;  %2323 = vadd.xlane.f32.xlu1 %v2322_v34 }
 0x992   : > { %v5147_v32 = vpop.eup %5146 }
 0x993   : > { %v2319_v9 = vadd.f32 %v5147_v32, %v5145_v6 }
 0x995   : > { %v5149_v10 = vpop.eup %5148  ;;  %2320 = vadd.xlane.f32.xlu0 %v2319_v9 }
 0x996   : > { %v5151_v13 = vpop.eup %5150 }
 0x997   : > { %v2316_v31 = vadd.f32 %v5151_v13, %v5149_v10 }
 0x999   : > { %v5153_v38 = vpop.eup %5152  ;;  %2317 = vadd.xlane.f32.xlu1 %v2316_v31 }
 0x99a   : > { %v5155_v15 = vpop.eup %5154 }
 0x99b   : > { %v2313_v36 = vadd.f32 %v5155_v15, %v5153_v38 }
 0x99d   : > { %v5157_v46 = vpop.eup %5156  ;;  %2314 = vadd.xlane.f32.xlu1 %v2313_v36 }
 0x99e   : > { %v5159_v21 = vpop.eup %5158 }
 0x99f   : > { %v2310_v14 = vadd.f32 %v5159_v21, %v5157_v46 }
 0x9a1   : > { %2311 = vadd.xlane.f32.xlu1 %v2310_v14 }
 0x9d4   : > { %2428 = vxpose.xlu1.b32.start.end [1/1] (short) (narrow) %v6258_v22, 64 }
 0xa0e   : > { %v2333_v12 = vpop.xlane.xlu1 %2332 }
 0xa0f   : > { %5160 = vrcp.f32 %v2333_v12 }
 0xa12   : > { %v2330_v8 = vpop.xlane.xlu1 %2329 }
 0xa13   : > { %5162 = vrcp.f32 %v2330_v8 }
 0xa16   : > { %v2327_v16 = vpop.xlane.xlu1 %2326 }
 0xa17   : > { %5164 = vrcp.f32 %v2327_v16 }
 0xa1a   : > { %v2324_v24 = vpop.xlane.xlu1 %2323 }
 0xa1b   : > { %5166 = vrcp.f32 %v2324_v24 }
 0xa1c   : > { %v5161_v1 = vpop.eup %5160 }
 0xa1d   : > { %v2357_v0 = vmul.f32 %v5161_v1, %v6497_v43  ;;  %v2356_v30 = vmul.f32 %v5161_v1, %v6495_v29 }
 0xa1e   : > { %v2321_v5 = vpop.xlane.xlu0 %2320 }
 0xa1f   : > { %5168 = vrcp.f32 %v2321_v5  ;;  %2374 = vmatprep.subr.mxu0 %v2357_v0 }
 0xa20   : > { %v5163_v4 = vpop.eup %5162  ;;  %2375 = vmatpush1.xpose.msra.mxu0 %v2356_v30 }
 0xa21   : > { %v2355_v2 = vmul.f32 %v5163_v4, %v5135_v33  ;;  %v2354_v22 = vmul.f32 %v5163_v4, %v6503_v19 }
 0xa22   : > { %v2318_v53 = vpop.xlane.xlu1 %2317 }
 0xa23   : > { %5170 = vrcp.f32 %v2318_v53  ;;  %2376 = vmatprep.subr.mxu0 %v2355_v2 }
 0xa24   : > { %v5165_v52 = vpop.eup %5164  ;;  %2377 = vmatpush1.xpose.msra.mxu0 %v2354_v22 }
 0xa25   : > { %v2353_v39 = vmul.f32 %v5165_v52, %v5139_v41  ;;  %v2352_v3 = vmul.f32 %v5165_v52, %v5137_v42 }
 0xa26   : > { %v2315_v51 = vpop.xlane.xlu1 %2314 }
 0xa27   : > { %5172 = vrcp.f32 %v2315_v51  ;;  %2378 = vmatprep.subr.mxu0 %v2353_v39 }
 0xa28   : > { %v5167_v43 = vpop.eup %5166  ;;  %2379 = vmatpush1.xpose.msra.mxu0 %v2352_v3 }
 0xa29   : > { %v2351_v29 = vmul.f32 %v5167_v43, %v5143_v28  ;;  %v2350_v11 = vmul.f32 %v5167_v43, %v5141_v50 }
 0xa2a   : > { %v2312_v44 = vpop.xlane.xlu1 %2311 }
 0xa2b   : > { %5174 = vrcp.f32 %v2312_v44  ;;  %2380 = vmatprep.subr.mxu0 %v2351_v29 }
 0xa2c   : > { %v5169_v33 = vpop.eup %5168  ;;  %2381 = vmatpush1.xpose.msra.mxu0 %v2350_v11 }
 0xa2d   : > { %v2349_v19 = vmul.f32 %v5169_v33, %v5147_v32  ;;  %v2348_v34 = vmul.f32 %v5169_v33, %v5145_v6 }
 0xa2f   : > { %2382 = vmatprep.subr.mxu0 %v2349_v19 }
 0xa30   : > { %v5171_v9 = vpop.eup %5170  ;;  %2383 = vmatpush1.xpose.msra.mxu0 %v2348_v34 }
 0xa31   : > { %v2347_v31 = vmul.f32 %v5171_v9, %v5151_v13  ;;  %v2346_v41 = vmul.f32 %v5171_v9, %v5149_v10 }
 0xa33   : > { %2384 = vmatprep.subr.mxu0 %v2347_v31 }
 0xa34   : > { %v5173_v42 = vpop.eup %5172  ;;  %2385 = vmatpush1.xpose.msra.mxu0 %v2346_v41 }
 0xa35   : > { %v2345_v36 = vmul.f32 %v5173_v42, %v5155_v15  ;;  %v2344_v14 = vmul.f32 %v5173_v42, %v5153_v38 }
 0xa37   : > { %2386 = vmatprep.subr.mxu0 %v2345_v36 }
 0xa38   : > { %v5175_v28 = vpop.eup %5174  ;;  %2387 = vmatpush1.xpose.msra.mxu0 %v2344_v14 }
 0xa39   : > { %v2343_v50 = vmul.f32 %v5175_v28, %v5159_v21  ;;  %v2342_v12 = vmul.f32 %v5175_v28, %v5157_v46 }
 0xa3b   : > { %2388 = vmatprep.subr.mxu0 %v2343_v50 }
 0xa3c   : > { %2389 = vmatpush1.xpose.msra.mxu0 %v2342_v12 }
 0xa3d   : > { %2514 = vmatprep.subr.mxu0 %v6210_v55 }
 0xa3f   : > { %2423 = vmatmul.mubr.f32.vlgmr.msra.gmra.mxu0 %v6400_v37 }
 0xa40   : > { %2515 = vmatpush1.msra.mxu0 %v6208_v54  ;;  %2548 = vmatprep.mubr.f32.mxu0 %v7108_v17 }
 0xa50   : > { %v2444_v6 = vpop.trf.xlu1 }
 0xa51   : > { %4670 = vmatmul.mubr.msk.f32.vlgmr.msra.gmra.mxu0 %vm1382_vm1, %v2444_v6 }
 0xa52   : > { %2554 = vmatprep.mubr.f32.mxu0 %v7108_v17 }
 0xa54   : > { %v2445_v32 = vpop.trf.xlu1 }
 0xa55   : > { %4671 = vmatmul.mubr.msk.f32.gmra.mxu0 %vm1382_vm1, %v2445_v32 }
 0xa56   : > { %2560 = vmatprep.mubr.f32.mxu0 %v7108_v17 }
 0xa58   : > { %v2446_v10 = vpop.trf.xlu1 }
 0xa59   : > { %4672 = vmatmul.mubr.msk.f32.gmra.mxu0 %vm1382_vm1, %v2446_v10 }
 0xa5a   : > { %2566 = vmatprep.mubr.f32.mxu0 %v7108_v17 }
 0xa5c   : > { %v2447_v55 = vpop.trf.xlu1 }
 0xa5d   : > { %4673 = vmatmul.mubr.msk.f32.gmra.mxu0 %vm1382_vm1, %v2447_v55 }
 0xa5e   : > { %2572 = vmatprep.mubr.f32.mxu0 %v7108_v17 }
 0xa60   : > { %v2448_v54 = vpop.trf.xlu1 }
 0xa61   : > { %4674 = vmatmul.mubr.msk.f32.gmra.mxu0 %vm1382_vm1, %v2448_v54 }
 0xa62   : > { %2578 = vmatprep.mubr.f32.mxu0 %v7108_v17 }
 0xa64   : > { %v2449_v37 = vpop.trf.xlu1 }
 0xa65   : > { %4675 = vmatmul.mubr.msk.f32.gmra.mxu0 %vm1382_vm1, %v2449_v37 }
 0xa66   : > { %2584 = vmatprep.mubr.f32.mxu0 %v7108_v17 }
 0xa68   : > { %v2450_v13 = vpop.trf.xlu1 }
 0xa69   : > { %4676 = vmatmul.mubr.msk.f32.gmra.mxu0 %vm1382_vm1, %v2450_v13 }
 0xa6a   : > { %2590 = vmatprep.mubr.f32.mxu0 %v7108_v17 }
 0xa6c   : > { %v2451_v38 = vpop.trf.xlu1 }
 0xa6d   : > { %4677 = vmatmul.mubr.msk.f32.gmra.mxu0 %vm1382_vm1, %v2451_v38 }
 0xa6e   : > { %3140 = vmatprep.mubr.f32.mxu0 %v6410_v48 }
 0xaff   : > { %v6534_v15 = vpop.f32.mrf.mxu0 }
 0xb01   : > { %v2426_v46 = vpop.f32.mrf.mxu0 }
 0xb11   : > { %v6536_v21 = vpop.f32.mrf.mxu0 }
 0xb13   : > { %v6538_v8 = vpop.f32.mrf.mxu0 }
 0xb14   : > { %v2597_v34 = vmax.f32 %v6536_v21, %v6538_v8 }
 0xb15   : > { %v6540_v16 = vpop.f32.mrf.mxu0 }
 0xb17   : > { %v6542_v24 = vpop.f32.mrf.mxu0 }
 0xb18   : > { %v2600_v19 = vmax.f32 %v6540_v16, %v6542_v24 }
 0xb19   : > { %v6544_v1 = vpop.f32.mrf.mxu0 }
 0xb1b   : > { %v6546_v0 = vpop.f32.mrf.mxu0 }
 0xb1c   : > { %v2603_v33 = vmax.f32 %v6544_v1, %v6546_v0 }
 0xb1d   : > { %v2568_v30 = vpop.f32.mrf.mxu0 }
 0xb1f   : > { %v2570_v5 = vpop.f32.mrf.mxu0 }
 0xb20   : > { %v2606_v44 = vmax.f32 %v2568_v30, %v2570_v5 }
 0xb21   : > { %v2574_v4 = vpop.f32.mrf.mxu0 }
 0xb23   : > { %v2576_v2 = vpop.f32.mrf.mxu0 }
 0xb24   : > { %v2609_v11 = vmax.f32 %v2574_v4, %v2576_v2 }
 0xb25   : > { %v2580_v48 = vpop.f32.mrf.mxu0 }
 0xb27   : > { %v2582_v22 = vpop.f32.mrf.mxu0 }
 0xb28   : > { %v2612_v29 = vmax.f32 %v2580_v48, %v2582_v22 }
 0xb29   : > { %v2586_v53 = vpop.f32.mrf.mxu0 }
 0xb2b   : > { %v2588_v52 = vpop.f32.mrf.mxu0 }
 0xb2c   : > { %v2615_v39 = vmax.f32 %v2586_v53, %v2588_v52 }
 0xb2d   : > { %v2592_v3 = vpop.f32.mrf.mxu0 }
 0xb2e   : > { %2616 = vmax.xlane.f32.xlu0 %v2615_v39 }
 0xb2f   : > { %v2594_v51 = vpop.f32.mrf.mxu0 }
 0xb30   : > { %v2618_v43 = vmax.f32 %v2592_v3, %v2594_v51 }
 0xb32   : > { %2613 = vmax.xlane.f32.xlu0 %v2612_v29  ;;  %2619 = vmax.xlane.f32.xlu1 %v2618_v43 }
 0xb36   : > { %2610 = vmax.xlane.f32.xlu0 %v2609_v11 }
 0xb3a   : > { %2607 = vmax.xlane.f32.xlu0 %v2606_v44 }
 0xb3e   : > { %2604 = vmax.xlane.f32.xlu0 %v2603_v33 }
 0xb42   : > { %2601 = vmax.xlane.f32.xlu0 %v2600_v19 }
 0xb46   : > { %2598 = vmax.xlane.f32.xlu0 %v2597_v34 }
 0xbb7   : > { %v2617_v9 = vpop.xlane.xlu0 %2616 }
 0xbb8   : > { %v2633_v42 = vsub.f32 %v2586_v53, %v2617_v9  ;;  %v2634_v14 = vsub.f32 %v2588_v52, %v2617_v9 }
 0xbba   : > { %v2661_v32 = vmul.f32 1.442695, %v2633_v42  ;;  %v2663_v55 = vmul.f32 1.442695, %v2634_v14 }
 0xbbb   : > { %v2614_v31 = vpop.xlane.xlu0 %2613  ;;  %v2620_v41 = vpop.xlane.xlu1 %2619 }
 0xbbc   : > { %v2635_v36 = vsub.f32 %v2592_v3, %v2620_v41  ;;  %v2636_v28 = vsub.f32 %v2594_v51, %v2620_v41  ;;  %v2631_v10 = vsub.f32 %v2580_v48, %v2614_v31  ;;  %v2632_v54 = vsub.f32 %v2582_v22, %v2614_v31 }
 0xbbe   : > { %v2665_v50 = vmul.f32 1.442695, %v2635_v36  ;;  %v2667_v12 = vmul.f32 1.442695, %v2636_v28  ;;  %v2657_v13 = vmul.f32 1.442695, %v2631_v10 }
 0xbbf   : > { %v2611_v6 = vpop.xlane.xlu0 %2610  ;;  %v2659_v46 = vmul.f32 1.442695, %v2632_v54 }
 0xbc0   : > { %5176 = vpow2.f32 %v2665_v50  ;;  %v2629_v38 = vsub.f32 %v2574_v4, %v2611_v6  ;;  %v2630_v39 = vsub.f32 %v2576_v2, %v2611_v6 }
 0xbc1   : > { %5178 = vpow2.f32 %v2667_v12 }
 0xbc2   : > { %5180 = vpow2.f32 %v2661_v32  ;;  %v2653_v52 = vmul.f32 1.442695, %v2629_v38  ;;  %v2655_v51 = vmul.f32 1.442695, %v2630_v39 }
 0xbc3   : > { %v2608_v37 = vpop.xlane.xlu0 %2607  ;;  %5182 = vpow2.f32 %v2663_v55 }
 0xbc4   : > { %5184 = vpow2.f32 %v2657_v13  ;;  %v2627_v3 = vsub.f32 %v2568_v30, %v2608_v37  ;;  %v2628_v43 = vsub.f32 %v2570_v5, %v2608_v37 }
 0xbc5   : > { %5186 = vpow2.f32 %v2659_v46 }
 0xbc6   : > { %5188 = vpow2.f32 %v2653_v52  ;;  %v2649_v48 = vmul.f32 1.442695, %v2627_v3  ;;  %v2651_v11 = vmul.f32 1.442695, %v2628_v43 }
 0xbc7   : > { %v2605_v53 = vpop.xlane.xlu0 %2604  ;;  %5190 = vpow2.f32 %v2655_v51 }
 0xbc8   : > { %v2625_v22 = vsub.f32 %v6544_v1, %v2605_v53  ;;  %v2626_v44 = vsub.f32 %v6546_v0, %v2605_v53  ;;  %5192 = vpow2.f32 %v2649_v48 }
 0xbc9   : > { %5194 = vpow2.f32 %v2651_v11 }
 0xbca   : > { %v2645_v2 = vmul.f32 1.442695, %v2625_v22  ;;  %v2647_v30 = vmul.f32 1.442695, %v2626_v44 }
 0xbcb   : > { %v2602_v29 = vpop.xlane.xlu0 %2601 }
 0xbcc   : > { %v2623_v19 = vsub.f32 %v6540_v16, %v2602_v29  ;;  %v2624_v5 = vsub.f32 %v6542_v24, %v2602_v29  ;;  %5196 = vpow2.f32 %v2645_v2 }
 0xbcd   : > { %v5177_v4 = vpop.eup %5176  ;;  %5198 = vpow2.f32 %v2647_v30 }
 0xbce   : > { %v5179_v33 = vpop.eup %5178  ;;  %v2641_v1 = vmul.f32 1.442695, %v2623_v19  ;;  %v2643_v36 = vmul.f32 1.442695, %v2624_v5 }
 0xbcf   : > { %v6557_v34 = vpop.eup %5180  ;;  %v2599_v9 = vpop.xlane.xlu0 %2598  ;;  %v2690_v31 = vadd.f32 %v5179_v33, %v5177_v4 }
 0xbd0   : > { %v5183_v41 = vpop.eup %5182  ;;  %v2621_v0 = vsub.f32 %v6536_v21, %v2599_v9  ;;  %v2622_v14 = vsub.f32 %v6538_v8, %v2599_v9  ;;  %5200 = vpow2.f32 %v2641_v1 }
 0xbd1   : > { %2691 = vadd.xlane.f32.xlu0 %v2690_v31  ;;  %v5185_v42 = vpop.eup %5184  ;;  %v2687_v16 = vadd.f32 %v5183_v41, %v6557_v34  ;;  %5202 = vpow2.f32 %v2643_v36 }
 0xbd2   : > { %v5187_v28 = vpop.eup %5186  ;;  %v2637_v50 = vmul.f32 1.442695, %v2621_v0  ;;  %v2639_v12 = vmul.f32 1.442695, %v2622_v14 }
 0xbd3   : > { %v5189_v24 = vpop.eup %5188  ;;  %v2684_v6 = vadd.f32 %v5187_v28, %v5185_v42 }
 0xbd4   : > { %v5191_v32 = vpop.eup %5190  ;;  %5204 = vpow2.f32 %v2637_v50 }
 0xbd5   : > { %2688 = vadd.xlane.f32.xlu0 %v2687_v16  ;;  %v5193_v10 = vpop.eup %5192  ;;  %5206 = vpow2.f32 %v2639_v12  ;;  %v2681_v21 = vadd.f32 %v5191_v32, %v5189_v24 }
 0xbd6   : > { %v5195_v55 = vpop.eup %5194 }
 0xbd7   : > { %v2678_v8 = vadd.f32 %v5195_v55, %v5193_v10 }
 0xbd9   : > { %2685 = vadd.xlane.f32.xlu0 %v2684_v6  ;;  %v5197_v54 = vpop.eup %5196 }
 0xbda   : > { %v5199_v37 = vpop.eup %5198 }
 0xbdb   : > { %v2675_v38 = vadd.f32 %v5199_v37, %v5197_v54 }
 0xbdd   : > { %2682 = vadd.xlane.f32.xlu0 %v2681_v21  ;;  %v5201_v13 = vpop.eup %5200 }
 0xbde   : > { %v5203_v46 = vpop.eup %5202 }
 0xbdf   : > { %v2672_v53 = vadd.f32 %v5203_v46, %v5201_v13 }
 0xbe1   : > { %2679 = vadd.xlane.f32.xlu0 %v2678_v8  ;;  %v5205_v39 = vpop.eup %5204 }
 0xbe2   : > { %v5207_v52 = vpop.eup %5206 }
 0xbe3   : > { %v2669_v3 = vadd.f32 %v5207_v52, %v5205_v39 }
 0xbe5   : > { %2676 = vadd.xlane.f32.xlu0 %v2675_v38 }
 0xbe9   : > { %2673 = vadd.xlane.f32.xlu0 %v2672_v53 }
 0xbed   : > { %2670 = vadd.xlane.f32.xlu0 %v2669_v3 }
 0xc1a   : > { %2787 = vxpose.xlu0.b32.start.end [1/1] (short) (narrow) %v6268_v20, 64 }
 0xc5a   : > { %v2692_v51 = vpop.xlane.xlu0 %2691 }
 0xc5b   : > { %5208 = vrcp.f32 %v2692_v51 }
 0xc5e   : > { %v2689_v43 = vpop.xlane.xlu0 %2688 }
 0xc5f   : > { %5210 = vrcp.f32 %v2689_v43 }
 0xc62   : > { %v2686_v29 = vpop.xlane.xlu0 %2685 }
 0xc63   : > { %5212 = vrcp.f32 %v2686_v29 }
 0xc66   : > { %v2683_v48 = vpop.xlane.xlu0 %2682 }
 0xc67   : > { %5214 = vrcp.f32 %v2683_v48 }
 0xc68   : > { %v5209_v22 = vpop.eup %5208 }
 0xc69   : > { %v2716_v11 = vmul.f32 %v5209_v22, %v5179_v33  ;;  %v2715_v44 = vmul.f32 %v5209_v22, %v5177_v4 }
 0xc6a   : > { %v2680_v2 = vpop.xlane.xlu0 %2679 }
 0xc6b   : > { %5216 = vrcp.f32 %v2680_v2  ;;  %2733 = vmatprep.subr.mxu1 %v2716_v11 }
 0xc6c   : > { %v5211_v19 = vpop.eup %5210  ;;  %2734 = vmatpush1.xpose.msra.mxu1 %v2715_v44 }
 0xc6d   : > { %v2714_v30 = vmul.f32 %v5211_v19, %v5183_v41  ;;  %v2713_v5 = vmul.f32 %v5211_v19, %v6557_v34 }
 0xc6e   : > { %v2677_v20 = vpop.xlane.xlu0 %2676 }
 0xc6f   : > { %5218 = vrcp.f32 %v2677_v20  ;;  %2735 = vmatprep.subr.mxu1 %v2714_v30 }
 0xc70   : > { %v5213_v9 = vpop.eup %5212  ;;  %2736 = vmatpush1.xpose.msra.mxu1 %v2713_v5 }
 0xc71   : > { %v2712_v31 = vmul.f32 %v5213_v9, %v5187_v28  ;;  %v2711_v1 = vmul.f32 %v5213_v9, %v5185_v42 }
 0xc72   : > { %v2674_v0 = vpop.xlane.xlu0 %2673 }
 0xc73   : > { %5220 = vrcp.f32 %v2674_v0  ;;  %2737 = vmatprep.subr.mxu1 %v2712_v31 }
 0xc74   : > { %v5215_v33 = vpop.eup %5214  ;;  %2738 = vmatpush1.xpose.msra.mxu1 %v2711_v1 }
 0xc75   : > { %v2710_v4 = vmul.f32 %v5215_v33, %v5191_v32  ;;  %v2709_v36 = vmul.f32 %v5215_v33, %v5189_v24 }
 0xc76   : > { %v2671_v14 = vpop.xlane.xlu0 %2670 }
 0xc77   : > { %5222 = vrcp.f32 %v2671_v14  ;;  %2739 = vmatprep.subr.mxu1 %v2710_v4 }
 0xc78   : > { %v5217_v41 = vpop.eup %5216  ;;  %2740 = vmatpush1.xpose.msra.mxu1 %v2709_v36 }
 0xc79   : > { %v2708_v34 = vmul.f32 %v5217_v41, %v5195_v55  ;;  %v2707_v16 = vmul.f32 %v5217_v41, %v5193_v10 }
 0xc7b   : > { %2741 = vmatprep.subr.mxu1 %v2708_v34 }
 0xc7c   : > { %v5219_v50 = vpop.eup %5218  ;;  %2742 = vmatpush1.xpose.msra.mxu1 %v2707_v16 }
 0xc7d   : > { %v2706_v12 = vmul.f32 %v5219_v50, %v5199_v37  ;;  %v2705_v28 = vmul.f32 %v5219_v50, %v5197_v54 }
 0xc7f   : > { %2743 = vmatprep.subr.mxu1 %v2706_v12 }
 0xc80   : > { %v5221_v42 = vpop.eup %5220  ;;  %2744 = vmatpush1.xpose.msra.mxu1 %v2705_v28 }
 0xc81   : > { %v2704_v6 = vmul.f32 %v5221_v42, %v5203_v46  ;;  %v2703_v21 = vmul.f32 %v5221_v42, %v5201_v13 }
 0xc83   : > { %2745 = vmatprep.subr.mxu1 %v2704_v6 }
 0xc84   : > { %v5223_v32 = vpop.eup %5222  ;;  %2746 = vmatpush1.xpose.msra.mxu1 %v2703_v21 }
 0xc85   : > { %v2702_v24 = vmul.f32 %v5223_v32, %v5207_v52  ;;  %v2701_v8 = vmul.f32 %v5223_v32, %v5205_v39 }
 0xc87   : > { %2747 = vmatprep.subr.mxu1 %v2702_v24 }
 0xc88   : > { %2748 = vmatpush1.xpose.msra.mxu1 %v2701_v8 }
 0xc89   : > { %2873 = vmatprep.subr.mxu1 %v6214_v57 }
 0xc8b   : > { %2782 = vmatmul.mubr.f32.vlgmr.msra.gmra.mxu1 %v6404_v7 }
 0xc8c   : > { %2874 = vmatpush1.msra.mxu1 %v6212_v56  ;;  %2907 = vmatprep.mubr.f32.mxu1 %v7108_v17 }
 0xc96   : > { %v2803_v10 = vpop.trf.xlu0 }
 0xc97   : > { %4678 = vmatmul.mubr.msk.f32.vlgmr.msra.gmra.mxu1 %vm1382_vm1, %v2803_v10 }
 0xc98   : > { %2913 = vmatprep.mubr.f32.mxu1 %v7108_v17 }
 0xc9a   : > { %v2804_v55 = vpop.trf.xlu0 }
 0xc9b   : > { %4679 = vmatmul.mubr.msk.f32.gmra.mxu1 %vm1382_vm1, %v2804_v55 }
 0xc9c   : > { %2919 = vmatprep.mubr.f32.mxu1 %v7108_v17 }
 0xc9e   : > { %v2805_v54 = vpop.trf.xlu0 }
 0xc9f   : > { %4680 = vmatmul.mubr.msk.f32.gmra.mxu1 %vm1382_vm1, %v2805_v54 }
 0xca0   : > { %2925 = vmatprep.mubr.f32.mxu1 %v7108_v17 }
 0xca2   : > { %v2806_v57 = vpop.trf.xlu0 }
 0xca3   : > { %4681 = vmatmul.mubr.msk.f32.gmra.mxu1 %vm1382_vm1, %v2806_v57 }
 0xca4   : > { %2931 = vmatprep.mubr.f32.mxu1 %v7108_v17 }
 0xca6   : > { %v2807_v56 = vpop.trf.xlu0 }
 0xca7   : > { %4682 = vmatmul.mubr.msk.f32.gmra.mxu1 %vm1382_vm1, %v2807_v56 }
 0xca8   : > { %2937 = vmatprep.mubr.f32.mxu1 %v7108_v17 }
 0xcaa   : > { %v2808_v7 = vpop.trf.xlu0 }
 0xcab   : > { %4683 = vmatmul.mubr.msk.f32.gmra.mxu1 %vm1382_vm1, %v2808_v7 }
 0xcac   : > { %2943 = vmatprep.mubr.f32.mxu1 %v7108_v17 }
 0xcae   : > { %v2809_v37 = vpop.trf.xlu0 }
 0xcaf   : > { %4684 = vmatmul.mubr.msk.f32.gmra.mxu1 %vm1382_vm1, %v2809_v37 }
 0xcb0   : > { %2949 = vmatprep.mubr.f32.mxu1 %v7108_v17 }
 0xcb2   : > { %v2810_v13 = vpop.trf.xlu0 }
 0xcb3   : > { %4685 = vmatmul.mubr.msk.f32.gmra.mxu1 %vm1382_vm1, %v2810_v13 }
 0xcb4   : > { %3499 = vmatprep.mubr.f32.mxu1 %v6414_v18 }
 0xd4b   : > { %v6585_v38 = vpop.f32.mrf.mxu1 }
 0xd4d   : > { %v2785_v46 = vpop.f32.mrf.mxu1 }
 0xd57   : > { %v6587_v39 = vpop.f32.mrf.mxu1 }
 0xd59   : > { %v6589_v53 = vpop.f32.mrf.mxu1 }
 0xd5a   : > { %v2956_v36 = vmax.f32 %v6587_v39, %v6589_v53 }
 0xd5b   : > { %v6591_v52 = vpop.f32.mrf.mxu1 }
 0xd5d   : > { %v6593_v3 = vpop.f32.mrf.mxu1 }
 0xd5e   : > { %v2959_v4 = vmax.f32 %v6591_v52, %v6593_v3 }
 0xd5f   : > { %v6595_v51 = vpop.f32.mrf.mxu1 }
 0xd61   : > { %v6597_v43 = vpop.f32.mrf.mxu1 }
 0xd62   : > { %v2962_v33 = vmax.f32 %v6595_v51, %v6597_v43 }
 0xd63   : > { %v2927_v29 = vpop.f32.mrf.mxu1 }
 0xd65   : > { %v2929_v48 = vpop.f32.mrf.mxu1 }
 0xd66   : > { %v2965_v0 = vmax.f32 %v2927_v29, %v2929_v48 }
 0xd67   : > { %v2933_v22 = vpop.f32.mrf.mxu1 }
 0xd69   : > { %v2935_v11 = vpop.f32.mrf.mxu1 }
 0xd6a   : > { %v2968_v1 = vmax.f32 %v2933_v22, %v2935_v11 }
 0xd6b   : > { %v2939_v18 = vpop.f32.mrf.mxu1 }
 0xd6d   : > { %v2941_v44 = vpop.f32.mrf.mxu1 }
 0xd6e   : > { %v2971_v31 = vmax.f32 %v2939_v18, %v2941_v44 }
 0xd6f   : > { %v2945_v2 = vpop.f32.mrf.mxu1 }
 0xd71   : > { %v2947_v19 = vpop.f32.mrf.mxu1 }
 0xd72   : > { %v2974_v9 = vmax.f32 %v2945_v2, %v2947_v19 }
 0xd73   : > { %v2951_v30 = vpop.f32.mrf.mxu1 }
 0xd75   : > { %v2953_v5 = vpop.f32.mrf.mxu1 }
 0xd76   : > { %v2977_v20 = vmax.f32 %v2951_v30, %v2953_v5 }
 0xd78   : > { %2978 = vmax.xlane.f32.xlu1 %v2977_v20 }
 0xd7c   : > { %2975 = vmax.xlane.f32.xlu1 %v2974_v9 }
 0xd80   : > { %2972 = vmax.xlane.f32.xlu1 %v2971_v31 }
 0xd84   : > { %2969 = vmax.xlane.f32.xlu1 %v2968_v1 }
 0xd88   : > { %2966 = vmax.xlane.f32.xlu1 %v2965_v0 }
 0xd8c   : > { %2963 = vmax.xlane.f32.xlu1 %v2962_v33 }
 0xd90   : > { %2960 = vmax.xlane.f32.xlu1 %v2959_v4 }
 0xd94   : > { %2957 = vmax.xlane.f32.xlu1 %v2956_v36 }
 0xe01   : > { %v2979_v14 = vpop.xlane.xlu1 %2978 }
 0xe02   : > { %v2994_v41 = vsub.f32 %v2951_v30, %v2979_v14  ;;  %v2995_v34 = vsub.f32 %v2953_v5, %v2979_v14 }
 0xe04   : > { %v3024_v16 = vmul.f32 1.442695, %v2994_v41  ;;  %v3026_v50 = vmul.f32 1.442695, %v2995_v34 }
 0xe05   : > { %v2976_v12 = vpop.xlane.xlu1 %2975 }
 0xe06   : > { %5224 = vpow2.f32 %v3024_v16  ;;  %v2992_v28 = vsub.f32 %v2945_v2, %v2976_v12  ;;  %v2993_v42 = vsub.f32 %v2947_v19, %v2976_v12 }
 0xe07   : > { %5226 = vpow2.f32 %v3026_v50 }
 0xe08   : > { %v3020_v6 = vmul.f32 1.442695, %v2992_v28  ;;  %v3022_v21 = vmul.f32 1.442695, %v2993_v42 }
 0xe09   : > { %v2973_v32 = vpop.xlane.xlu1 %2972 }
 0xe0a   : > { %5228 = vpow2.f32 %v3020_v6  ;;  %v2990_v24 = vsub.f32 %v2939_v18, %v2973_v32  ;;  %v2991_v8 = vsub.f32 %v2941_v44, %v2973_v32 }
 0xe0b   : > { %5230 = vpow2.f32 %v3022_v21 }
 0xe0c   : > { %v3016_v10 = vmul.f32 1.442695, %v2990_v24  ;;  %v3018_v55 = vmul.f32 1.442695, %v2991_v8 }
 0xe0d   : > { %v2970_v54 = vpop.xlane.xlu1 %2969 }
 0xe0e   : > { %5232 = vpow2.f32 %v3016_v10  ;;  %v2988_v57 = vsub.f32 %v2933_v22, %v2970_v54  ;;  %v2989_v56 = vsub.f32 %v2935_v11, %v2970_v54 }
 0xe0f   : > { %5234 = vpow2.f32 %v3018_v55 }
 0xe10   : > { %v3012_v7 = vmul.f32 1.442695, %v2988_v57  ;;  %v3014_v37 = vmul.f32 1.442695, %v2989_v56 }
 0xe11   : > { %v2967_v13 = vpop.xlane.xlu1 %2966 }
 0xe12   : > { %5236 = vpow2.f32 %v3012_v7  ;;  %v2986_v46 = vsub.f32 %v2927_v29, %v2967_v13  ;;  %v2987_v2 = vsub.f32 %v2929_v48, %v2967_v13 }
 0xe13   : > { %v6605_v19 = vpop.eup %5224  ;;  %5238 = vpow2.f32 %v3014_v37 }
 0xe14   : > { %v6607_v30 = vpop.eup %5226  ;;  %v3008_v18 = vmul.f32 1.442695, %v2986_v46  ;;  %v3010_v44 = vmul.f32 1.442695, %v2987_v2 }
 0xe15   : > { %v2964_v5 = vpop.xlane.xlu1 %2963  ;;  %v3049_v20 = vadd.f32 %v6607_v30, %v6605_v19 }
 0xe16   : > { %5240 = vpow2.f32 %v3008_v18  ;;  %v2984_v22 = vsub.f32 %v6595_v51, %v2964_v5  ;;  %v2985_v11 = vsub.f32 %v6597_v43, %v2964_v5 }
 0xe17   : > { %v6613_v9 = vpop.eup %5228  ;;  %5242 = vpow2.f32 %v3010_v44  ;;  %3050 = vadd.xlane.f32.xlu1 %v3049_v20 }
 0xe18   : > { %v5231_v29 = vpop.eup %5230  ;;  %v3004_v48 = vmul.f32 1.442695, %v2984_v22  ;;  %v3006_v31 = vmul.f32 1.442695, %v2985_v11 }
 0xe19   : > { %v2961_v1 = vpop.xlane.xlu1 %2960  ;;  %v3046_v0 = vadd.f32 %v5231_v29, %v6613_v9 }
 0xe1a   : > { %5244 = vpow2.f32 %v3004_v48  ;;  %v2982_v33 = vsub.f32 %v6591_v52, %v2961_v1  ;;  %v2983_v4 = vsub.f32 %v6593_v3, %v2961_v1 }
 0xe1b   : > { %v5233_v36 = vpop.eup %5232  ;;  %5246 = vpow2.f32 %v3006_v31  ;;  %3047 = vadd.xlane.f32.xlu1 %v3046_v0 }
 0xe1c   : > { %v5235_v51 = vpop.eup %5234  ;;  %v3000_v43 = vmul.f32 1.442695, %v2982_v33  ;;  %v3002_v14 = vmul.f32 1.442695, %v2983_v4 }
 0xe1d   : > { %v2958_v41 = vpop.xlane.xlu1 %2957  ;;  %v3043_v34 = vadd.f32 %v5235_v51, %v5233_v36 }
 0xe1e   : > { %5248 = vpow2.f32 %v3000_v43  ;;  %v2980_v16 = vsub.f32 %v6587_v39, %v2958_v41  ;;  %v2981_v50 = vsub.f32 %v6589_v53, %v2958_v41 }
 0xe1f   : > { %v5237_v12 = vpop.eup %5236  ;;  %5250 = vpow2.f32 %v3002_v14  ;;  %3044 = vadd.xlane.f32.xlu1 %v3043_v34 }
 0xe20   : > { %v5239_v28 = vpop.eup %5238  ;;  %v2996_v52 = vmul.f32 1.442695, %v2980_v16  ;;  %v2998_v42 = vmul.f32 1.442695, %v2981_v50 }
 0xe21   : > { %v3040_v3 = vadd.f32 %v5239_v28, %v5237_v12 }
 0xe22   : > { %5252 = vpow2.f32 %v2996_v52 }
 0xe23   : > { %v5241_v6 = vpop.eup %5240  ;;  %5254 = vpow2.f32 %v2998_v42  ;;  %3041 = vadd.xlane.f32.xlu1 %v3040_v3 }
 0xe24   : > { %v5243_v21 = vpop.eup %5242 }
 0xe25   : > { %v3037_v32 = vadd.f32 %v5243_v21, %v5241_v6 }
 0xe27   : > { %v5245_v24 = vpop.eup %5244  ;;  %3038 = vadd.xlane.f32.xlu0 %v3037_v32 }
 0xe28   : > { %v5247_v8 = vpop.eup %5246 }
 0xe29   : > { %v3034_v10 = vadd.f32 %v5247_v8, %v5245_v24 }
 0xe2b   : > { %v5249_v39 = vpop.eup %5248  ;;  %3035 = vadd.xlane.f32.xlu1 %v3034_v10 }
 0xe2c   : > { %v5251_v53 = vpop.eup %5250 }
 0xe2d   : > { %v3031_v55 = vadd.f32 %v5251_v53, %v5249_v39 }
 0xe2f   : > { %v5253_v54 = vpop.eup %5252  ;;  %3032 = vadd.xlane.f32.xlu1 %v3031_v55 }
 0xe30   : > { %v5255_v57 = vpop.eup %5254 }
 0xe31   : > { %v3028_v56 = vadd.f32 %v5255_v57, %v5253_v54 }
 0xe33   : > { %3029 = vadd.xlane.f32.xlu1 %v3028_v56 }
 0xe66   : > { %3146 = vxpose.xlu1.b32.start.end [1/1] (short) (narrow) %v6266_v27, 64 }
 0xea0   : > { %v3051_v7 = vpop.xlane.xlu1 %3050 }
 0xea1   : > { %5256 = vrcp.f32 %v3051_v7 }
 0xea4   : > { %v3048_v37 = vpop.xlane.xlu1 %3047 }
 0xea5   : > { %5258 = vrcp.f32 %v3048_v37 }
 0xea8   : > { %v3045_v13 = vpop.xlane.xlu1 %3044 }
 0xea9   : > { %5260 = vrcp.f32 %v3045_v13 }
 0xeac   : > { %v3042_v46 = vpop.xlane.xlu1 %3041 }
 0xead   : > { %5262 = vrcp.f32 %v3042_v46 }
 0xeae   : > { %v5257_v2 = vpop.eup %5256 }
 0xeaf   : > { %v3075_v18 = vmul.f32 %v5257_v2, %v6607_v30  ;;  %v3074_v44 = vmul.f32 %v5257_v2, %v6605_v19 }
 0xeb0   : > { %v3039_v5 = vpop.xlane.xlu0 %3038 }
 0xeb1   : > { %5264 = vrcp.f32 %v3039_v5  ;;  %3092 = vmatprep.subr.mxu0 %v3075_v18 }
 0xeb2   : > { %v5259_v20 = vpop.eup %5258  ;;  %3093 = vmatpush1.xpose.msra.mxu0 %v3074_v44 }
 0xeb3   : > { %v3073_v22 = vmul.f32 %v5259_v20, %v5231_v29  ;;  %v3072_v27 = vmul.f32 %v5259_v20, %v6613_v9 }
 0xeb4   : > { %v3036_v11 = vpop.xlane.xlu1 %3035 }
 0xeb5   : > { %5266 = vrcp.f32 %v3036_v11  ;;  %3094 = vmatprep.subr.mxu0 %v3073_v22 }
 0xeb6   : > { %v5261_v48 = vpop.eup %5260  ;;  %3095 = vmatpush1.xpose.msra.mxu0 %v3072_v27 }
 0xeb7   : > { %v3071_v31 = vmul.f32 %v5261_v48, %v5235_v51  ;;  %v3070_v1 = vmul.f32 %v5261_v48, %v5233_v36 }
 0xeb8   : > { %v3033_v0 = vpop.xlane.xlu1 %3032 }
 0xeb9   : > { %5268 = vrcp.f32 %v3033_v0  ;;  %3096 = vmatprep.subr.mxu0 %v3071_v31 }
 0xeba   : > { %v5263_v30 = vpop.eup %5262  ;;  %3097 = vmatpush1.xpose.msra.mxu0 %v3070_v1 }
 0xebb   : > { %v3069_v19 = vmul.f32 %v5263_v30, %v5239_v28  ;;  %v3068_v33 = vmul.f32 %v5263_v30, %v5237_v12 }
 0xebc   : > { %v3030_v4 = vpop.xlane.xlu1 %3029 }
 0xebd   : > { %5270 = vrcp.f32 %v3030_v4  ;;  %3098 = vmatprep.subr.mxu0 %v3069_v19 }
 0xebe   : > { %v5265_v29 = vpop.eup %5264  ;;  %3099 = vmatpush1.xpose.msra.mxu0 %v3068_v33 }
 0xebf   : > { %v3067_v9 = vmul.f32 %v5265_v29, %v5243_v21  ;;  %v3066_v43 = vmul.f32 %v5265_v29, %v5241_v6 }
 0xec1   : > { %3100 = vmatprep.subr.mxu0 %v3067_v9 }
 0xec2   : > { %v5267_v14 = vpop.eup %5266  ;;  %3101 = vmatpush1.xpose.msra.mxu0 %v3066_v43 }
 0xec3   : > { %v3065_v41 = vmul.f32 %v5267_v14, %v5247_v8  ;;  %v3064_v51 = vmul.f32 %v5267_v14, %v5245_v24 }
 0xec5   : > { %3102 = vmatprep.subr.mxu0 %v3065_v41 }
 0xec6   : > { %v5269_v36 = vpop.eup %5268  ;;  %3103 = vmatpush1.xpose.msra.mxu0 %v3064_v51 }
 0xec7   : > { %v3063_v34 = vmul.f32 %v5269_v36, %v5251_v53  ;;  %v3062_v16 = vmul.f32 %v5269_v36, %v5249_v39 }
 0xec9   : > { %3104 = vmatprep.subr.mxu0 %v3063_v34 }
 0xeca   : > { %v5271_v50 = vpop.eup %5270  ;;  %3105 = vmatpush1.xpose.msra.mxu0 %v3062_v16 }
 0xecb   : > { %v3061_v12 = vmul.f32 %v5271_v50, %v5255_v57  ;;  %v3060_v28 = vmul.f32 %v5271_v50, %v5253_v54 }
 0xecd   : > { %3106 = vmatprep.subr.mxu0 %v3061_v12 }
 0xece   : > { %3107 = vmatpush1.xpose.msra.mxu0 %v3060_v28 }
 0xecf   : > { %3232 = vmatprep.subr.mxu0 %v6218_v59 }
 0xed1   : > { %3141 = vmatmul.mubr.f32.vlgmr.msra.gmra.mxu0 %v6408_v47 }
 0xed2   : > { %3233 = vmatpush1.msra.mxu0 %v6216_v58  ;;  %3266 = vmatprep.mubr.f32.mxu0 %v7108_v17 }
 0xed3   : > { %3950 = vmatprep.subr.mxu0 %v6226_v63 }
 0xee2   : > { %v3162_v52 = vpop.trf.xlu1 }
 0xee3   : > { %4686 = vmatmul.mubr.msk.f32.vlgmr.msra.gmra.mxu0 %vm1382_vm1, %v3162_v52 }
 0xee4   : > { %3951 = vmatpush1.msra.mxu0 %v6224_v62  ;;  %3272 = vmatprep.mubr.f32.mxu0 %v7108_v17 }
 0xee6   : > { %v3163_v42 = vpop.trf.xlu1 }
 0xee7   : > { %4687 = vmatmul.mubr.msk.f32.gmra.mxu0 %vm1382_vm1, %v3163_v42 }
 0xee8   : > { %3278 = vmatprep.mubr.f32.mxu0 %v7108_v17 }
 0xeea   : > { %v3164_v59 = vpop.trf.xlu1 }
 0xeeb   : > { %4688 = vmatmul.mubr.msk.f32.gmra.mxu0 %vm1382_vm1, %v3164_v59 }
 0xeec   : > { %3284 = vmatprep.mubr.f32.mxu0 %v7108_v17 }
 0xeee   : > { %v3165_v58 = vpop.trf.xlu1 }
 0xeef   : > { %4689 = vmatmul.mubr.msk.f32.gmra.mxu0 %vm1382_vm1, %v3165_v58 }
 0xef0   : > { %3290 = vmatprep.mubr.f32.mxu0 %v7108_v17 }
 0xef2   : > { %v3166_v63 = vpop.trf.xlu1 }
 0xef3   : > { %4690 = vmatmul.mubr.msk.f32.gmra.mxu0 %vm1382_vm1, %v3166_v63 }
 0xef4   : > { %3296 = vmatprep.mubr.f32.mxu0 %v7108_v17 }
 0xef6   : > { %v3167_v62 = vpop.trf.xlu1 }
 0xef7   : > { %4691 = vmatmul.mubr.msk.f32.gmra.mxu0 %vm1382_vm1, %v3167_v62 }
 0xef8   : > { %3302 = vmatprep.mubr.f32.mxu0 %v7108_v17 }
 0xefa   : > { %v3168_v47 = vpop.trf.xlu1 }
 0xefb   : > { %4692 = vmatmul.mubr.msk.f32.gmra.mxu0 %vm1382_vm1, %v3168_v47 }
 0xefc   : > { %3308 = vmatprep.mubr.f32.mxu0 %v7108_v17 }
 0xefe   : > { %v3169_v3 = vpop.trf.xlu1 }
 0xeff   : > { %4693 = vmatmul.mubr.msk.f32.gmra.mxu0 %vm1382_vm1, %v3169_v3 }
 0xf00   : > { %3984 = vmatprep.mubr.f32.mxu0 %v7108_v17 }
 0xf91   : > { %v6646_v6 = vpop.f32.mrf.mxu0 }
 0xf93   : > { %v3144_v21 = vpop.f32.mrf.mxu0 }
 0xfa3   : > { %v6648_v32 = vpop.f32.mrf.mxu0 }
 0xfa5   : > { %v6650_v24 = vpop.f32.mrf.mxu0 }
 0xfa6   : > { %v3315_v31 = vmax.f32 %v6648_v32, %v6650_v24 }
 0xfa7   : > { %v6652_v8 = vpop.f32.mrf.mxu0 }
 0xfa9   : > { %v6654_v10 = vpop.f32.mrf.mxu0 }
 0xfaa   : > { %v3318_v48 = vmax.f32 %v6652_v8, %v6654_v10 }
 0xfab   : > { %v6656_v39 = vpop.f32.mrf.mxu0 }
 0xfad   : > { %v6658_v53 = vpop.f32.mrf.mxu0 }
 0xfae   : > { %v3321_v11 = vmax.f32 %v6656_v39, %v6658_v53 }
 0xfaf   : > { %v3286_v55 = vpop.f32.mrf.mxu0 }
 0xfb1   : > { %v3288_v54 = vpop.f32.mrf.mxu0 }
 0xfb2   : > { %v3324_v27 = vmax.f32 %v3286_v55, %v3288_v54 }
 0xfb3   : > { %v3292_v57 = vpop.f32.mrf.mxu0 }
 0xfb5   : > { %v3294_v56 = vpop.f32.mrf.mxu0 }
 0xfb6   : > { %v3327_v22 = vmax.f32 %v3292_v57, %v3294_v56 }
 0xfb7   : > { %v3298_v7 = vpop.f32.mrf.mxu0 }
 0xfb9   : > { %v3300_v37 = vpop.f32.mrf.mxu0 }
 0xfba   : > { %v3330_v5 = vmax.f32 %v3298_v7, %v3300_v37 }
 0xfbb   : > { %v3304_v13 = vpop.f32.mrf.mxu0 }
 0xfbd   : > { %v3306_v46 = vpop.f32.mrf.mxu0 }
 0xfbe   : > { %v3333_v2 = vmax.f32 %v3304_v13, %v3306_v46 }
 0xfbf   : > { %v3310_v18 = vpop.f32.mrf.mxu0 }
 0xfc0   : > { %3334 = vmax.xlane.f32.xlu0 %v3333_v2 }
 0xfc1   : > { %v3312_v44 = vpop.f32.mrf.mxu0 }
 0xfc2   : > { %v3336_v20 = vmax.f32 %v3310_v18, %v3312_v44 }
 0xfc4   : > { %3331 = vmax.xlane.f32.xlu0 %v3330_v5  ;;  %3337 = vmax.xlane.f32.xlu1 %v3336_v20 }
 0xfc8   : > { %3328 = vmax.xlane.f32.xlu0 %v3327_v22 }
 0xfcc   : > { %3325 = vmax.xlane.f32.xlu0 %v3324_v27 }
 0xfd0   : > { %3322 = vmax.xlane.f32.xlu0 %v3321_v11 }
 0xfd4   : > { %3319 = vmax.xlane.f32.xlu0 %v3318_v48 }
 0xfd8   : > { %3316 = vmax.xlane.f32.xlu0 %v3315_v31 }
 0xff7   : > { %3864 = vxpose.xlu1.b32.start.end [1/1] (short) (narrow) %v6273_v35, 64 }
0x1049   : > { %v3335_v1 = vpop.xlane.xlu0 %3334 }
0x104a   : > { %v3351_v19 = vsub.f32 %v3304_v13, %v3335_v1  ;;  %v3352_v4 = vsub.f32 %v3306_v46, %v3335_v1 }
0x104c   : > { %v3379_v41 = vmul.f32 1.442695, %v3351_v19  ;;  %v3381_v36 = vmul.f32 1.442695, %v3352_v4 }
0x104d   : > { %v3332_v0 = vpop.xlane.xlu0 %3331  ;;  %v3338_v30 = vpop.xlane.xlu1 %3337 }
0x104e   : > { %v3353_v33 = vsub.f32 %v3310_v18, %v3338_v30  ;;  %v3354_v29 = vsub.f32 %v3312_v44, %v3338_v30  ;;  %v3349_v51 = vsub.f32 %v3298_v7, %v3332_v0  ;;  %v3350_v34 = vsub.f32 %v3300_v37, %v3332_v0 }
0x1050   : > { %v3383_v9 = vmul.f32 1.442695, %v3353_v33  ;;  %v3385_v43 = vmul.f32 1.442695, %v3354_v29  ;;  %v3375_v50 = vmul.f32 1.442695, %v3349_v51 }
0x1051   : > { %v3329_v14 = vpop.xlane.xlu0 %3328  ;;  %v3377_v12 = vmul.f32 1.442695, %v3350_v34 }
0x1052   : > { %5272 = vpow2.f32 %v3383_v9  ;;  %v3347_v35 = vsub.f32 %v3292_v57, %v3329_v14  ;;  %v3348_v28 = vsub.f32 %v3294_v56, %v3329_v14 }
0x1053   : > { %5274 = vpow2.f32 %v3385_v43 }
0x1054   : > { %5276 = vpow2.f32 %v3379_v41  ;;  %v3371_v42 = vmul.f32 1.442695, %v3347_v35  ;;  %v3373_v58 = vmul.f32 1.442695, %v3348_v28 }
0x1055   : > { %v3326_v16 = vpop.xlane.xlu0 %3325  ;;  %5278 = vpow2.f32 %v3381_v36 }
0x1056   : > { %5280 = vpow2.f32 %v3375_v50  ;;  %v3345_v59 = vsub.f32 %v3286_v55, %v3326_v16  ;;  %v3346_v63 = vsub.f32 %v3288_v54, %v3326_v16 }
0x1057   : > { %5282 = vpow2.f32 %v3377_v12 }
0x1058   : > { %5284 = vpow2.f32 %v3371_v42  ;;  %v3367_v47 = vmul.f32 1.442695, %v3345_v59  ;;  %v3369_v21 = vmul.f32 1.442695, %v3346_v63 }
0x1059   : > { %v3323_v52 = vpop.xlane.xlu0 %3322  ;;  %5286 = vpow2.f32 %v3373_v58 }
0x105a   : > { %v3343_v3 = vsub.f32 %v6656_v39, %v3323_v52  ;;  %v3344_v7 = vsub.f32 %v6658_v53, %v3323_v52  ;;  %5288 = vpow2.f32 %v3367_v47 }
0x105b   : > { %5290 = vpow2.f32 %v3369_v21 }
0x105c   : > { %v3363_v56 = vmul.f32 1.442695, %v3343_v3  ;;  %v3365_v54 = vmul.f32 1.442695, %v3344_v7 }
0x105d   : > { %v3320_v62 = vpop.xlane.xlu0 %3319 }
0x105e   : > { %v3341_v55 = vsub.f32 %v6652_v8, %v3320_v62  ;;  %v3342_v46 = vsub.f32 %v6654_v10, %v3320_v62  ;;  %5292 = vpow2.f32 %v3363_v56 }
0x105f   : > { %v6669_v57 = vpop.eup %5272  ;;  %5294 = vpow2.f32 %v3365_v54 }
0x1060   : > { %v6671_v37 = vpop.eup %5274  ;;  %v3359_v53 = vmul.f32 1.442695, %v3341_v55  ;;  %v3361_v8 = vmul.f32 1.442695, %v3342_v46 }
0x1061   : > { %v6674_v13 = vpop.eup %5276  ;;  %v3317_v2 = vpop.xlane.xlu0 %3316  ;;  %v3408_v39 = vadd.f32 %v6671_v37, %v6669_v57 }
0x1062   : > { %v6679_v18 = vpop.eup %5278  ;;  %v3339_v44 = vsub.f32 %v6648_v32, %v3317_v2  ;;  %v3340_v20 = vsub.f32 %v6650_v24, %v3317_v2  ;;  %5296 = vpow2.f32 %v3359_v53 }
0x1063   : > { %3409 = vadd.xlane.f32.xlu0 %v3408_v39  ;;  %v6682_v5 = vpop.eup %5280  ;;  %v3405_v10 = vadd.f32 %v6679_v18, %v6674_v13  ;;  %5298 = vpow2.f32 %v3361_v8 }
0x1064   : > { %v6687_v22 = vpop.eup %5282  ;;  %v3355_v27 = vmul.f32 1.442695, %v3339_v44  ;;  %v3357_v48 = vmul.f32 1.442695, %v3340_v20 }
0x1065   : > { %v6689_v11 = vpop.eup %5284  ;;  %v3402_v32 = vadd.f32 %v6687_v22, %v6682_v5 }
0x1066   : > { %v6693_v31 = vpop.eup %5286  ;;  %5300 = vpow2.f32 %v3355_v27 }
0x1067   : > { %3406 = vadd.xlane.f32.xlu0 %v3405_v10  ;;  %v6695_v24 = vpop.eup %5288  ;;  %5302 = vpow2.f32 %v3357_v48  ;;  %v3399_v1 = vadd.f32 %v6693_v31, %v6689_v11 }
0x1068   : > { %v6699_v0 = vpop.eup %5290 }
0x1069   : > { %v3396_v19 = vadd.f32 %v6699_v0, %v6695_v24 }
0x106b   : > { %3403 = vadd.xlane.f32.xlu0 %v3402_v32  ;;  %v6701_v30 = vpop.eup %5292 }
0x106c   : > { %v6705_v4 = vpop.eup %5294 }
0x106d   : > { %v3393_v9 = vadd.f32 %v6705_v4, %v6701_v30 }
0x106f   : > { %3400 = vadd.xlane.f32.xlu0 %v3399_v1  ;;  %v6709_v29 = vpop.eup %5296 }
0x1070   : > { %v6713_v14 = vpop.eup %5298 }
0x1071   : > { %v3390_v51 = vadd.f32 %v6713_v14, %v6709_v29 }
0x1073   : > { %v3880_v33 = vpop.trf.xlu1  ;;  %3397 = vadd.xlane.f32.xlu0 %v3396_v19  ;;  %v6717_v41 = vpop.eup %5300 }
0x1074   : > { %4702 = vmatmul.mubr.msk.f32.vlgmr.msra.gmra.mxu0 %vm1382_vm1, %v3880_v33  ;;  %v6721_v34 = vpop.eup %5302 }
0x1075   : > { %3990 = vmatprep.mubr.f32.mxu0 %v7108_v17  ;;  %v3387_v16 = vadd.f32 %v6721_v34, %v6717_v41 }
0x1077   : > { %v3881_v43 = vpop.trf.xlu1  ;;  %3394 = vadd.xlane.f32.xlu0 %v3393_v9 }
0x1078   : > { %4703 = vmatmul.mubr.msk.f32.gmra.mxu0 %vm1382_vm1, %v3881_v43 }
0x1079   : > { %3996 = vmatprep.mubr.f32.mxu0 %v7108_v17 }
0x107b   : > { %v3882_v36 = vpop.trf.xlu1  ;;  %3391 = vadd.xlane.f32.xlu0 %v3390_v51 }
0x107c   : > { %4704 = vmatmul.mubr.msk.f32.gmra.mxu0 %vm1382_vm1, %v3882_v36 }
0x107d   : > { %4002 = vmatprep.mubr.f32.mxu0 %v7108_v17 }
0x107f   : > { %v3883_v50 = vpop.trf.xlu1  ;;  %3388 = vadd.xlane.f32.xlu0 %v3387_v16 }
0x1080   : > { %4705 = vmatmul.mubr.msk.f32.gmra.mxu0 %vm1382_vm1, %v3883_v50 }
0x1081   : > { %4008 = vmatprep.mubr.f32.mxu0 %v7108_v17 }
0x1083   : > { %v3884_v35 = vpop.trf.xlu1 }
0x1084   : > { %4706 = vmatmul.mubr.msk.f32.gmra.mxu0 %vm1382_vm1, %v3884_v35 }
0x1085   : > { %4014 = vmatprep.mubr.f32.mxu0 %v7108_v17 }
0x1087   : > { %v3885_v12 = vpop.trf.xlu1 }
0x1088   : > { %4707 = vmatmul.mubr.msk.f32.gmra.mxu0 %vm1382_vm1, %v3885_v12 }
0x1089   : > { %4020 = vmatprep.mubr.f32.mxu0 %v7108_v17 }
0x108b   : > { %v3886_v28 = vpop.trf.xlu1 }
0x108c   : > { %4708 = vmatmul.mubr.msk.f32.gmra.mxu0 %vm1382_vm1, %v3886_v28 }
0x108d   : > { %4026 = vmatprep.mubr.f32.mxu0 %v7108_v17 }
0x108f   : > { %v3887_v52 = vpop.trf.xlu1 }
0x1090   : > { %4709 = vmatmul.mubr.msk.f32.gmra.mxu0 %vm1382_vm1, %v3887_v52 }
0x1091   : > { %4217 = vmatprep.mubr.f32.mxu0 %v6422_v26 }
0x10ac   : > { %3505 = vxpose.xlu0.b32.start.end [1/1] (short) (narrow) %v6276_v40, 64 }
0x10ec   : > { %v3410_v42 = vpop.xlane.xlu0 %3409 }
0x10ed   : > { %5304 = vrcp.f32 %v3410_v42 }
0x10f0   : > { %v3407_v59 = vpop.xlane.xlu0 %3406 }
0x10f1   : > { %5306 = vrcp.f32 %v3407_v59 }
0x10f4   : > { %v3404_v58 = vpop.xlane.xlu0 %3403 }
0x10f5   : > { %5308 = vrcp.f32 %v3404_v58 }
0x10f8   : > { %v3401_v63 = vpop.xlane.xlu0 %3400 }
0x10f9   : > { %5310 = vrcp.f32 %v3401_v63 }
0x10fa   : > { %v5305_v62 = vpop.eup %5304 }
0x10fb   : > { %v3434_v47 = vmul.f32 %v5305_v62, %v6671_v37  ;;  %v3433_v3 = vmul.f32 %v5305_v62, %v6669_v57 }
0x10fc   : > { %v3398_v21 = vpop.xlane.xlu0 %3397 }
0x10fd   : > { %5312 = vrcp.f32 %v3398_v21  ;;  %3451 = vmatprep.subr.mxu1 %v3434_v47 }
0x10fe   : > { %v5307_v7 = vpop.eup %5306  ;;  %3452 = vmatpush1.xpose.msra.mxu1 %v3433_v3 }
0x10ff   : > { %v3432_v40 = vmul.f32 %v5307_v7, %v6679_v18  ;;  %v3431_v26 = vmul.f32 %v5307_v7, %v6674_v13 }
0x1100   : > { %v3395_v56 = vpop.xlane.xlu0 %3394 }
0x1101   : > { %5314 = vrcp.f32 %v3395_v56  ;;  %3453 = vmatprep.subr.mxu1 %v3432_v40 }
0x1102   : > { %v5309_v55 = vpop.eup %5308  ;;  %3454 = vmatpush1.xpose.msra.mxu1 %v3431_v26 }
0x1103   : > { %v3430_v54 = vmul.f32 %v5309_v55, %v6687_v22  ;;  %v3429_v37 = vmul.f32 %v5309_v55, %v6682_v5 }
0x1104   : > { %v3392_v46 = vpop.xlane.xlu0 %3391 }
0x1105   : > { %5316 = vrcp.f32 %v3392_v46  ;;  %3455 = vmatprep.subr.mxu1 %v3430_v54 }
0x1106   : > { %v5311_v57 = vpop.eup %5310  ;;  %3456 = vmatpush1.xpose.msra.mxu1 %v3429_v37 }
0x1107   : > { %v3428_v2 = vmul.f32 %v5311_v57, %v6693_v31  ;;  %v3427_v39 = vmul.f32 %v5311_v57, %v6689_v11 }
0x1108   : > { %v3389_v18 = vpop.xlane.xlu0 %3388 }
0x1109   : > { %5318 = vrcp.f32 %v3389_v18  ;;  %3457 = vmatprep.subr.mxu1 %v3428_v2 }
0x110a   : > { %v5313_v13 = vpop.eup %5312  ;;  %3458 = vmatpush1.xpose.msra.mxu1 %v3427_v39 }
0x110b   : > { %v3426_v53 = vmul.f32 %v5313_v13, %v6699_v0  ;;  %v3425_v44 = vmul.f32 %v5313_v13, %v6695_v24 }
0x110d   : > { %3459 = vmatprep.subr.mxu1 %v3426_v53 }
0x110e   : > { %v5315_v5 = vpop.eup %5314  ;;  %3460 = vmatpush1.xpose.msra.mxu1 %v3425_v44 }
0x110f   : > { %v3424_v8 = vmul.f32 %v5315_v5, %v6705_v4  ;;  %v3423_v20 = vmul.f32 %v5315_v5, %v6701_v30 }
0x1111   : > { %3461 = vmatprep.subr.mxu1 %v3424_v8 }
0x1112   : > { %v5317_v10 = vpop.eup %5316  ;;  %3462 = vmatpush1.xpose.msra.mxu1 %v3423_v20 }
0x1113   : > { %v3422_v22 = vmul.f32 %v5317_v10, %v6713_v14  ;;  %v3421_v27 = vmul.f32 %v5317_v10, %v6709_v29 }
0x1115   : > { %3463 = vmatprep.subr.mxu1 %v3422_v22 }
0x1116   : > { %v5319_v11 = vpop.eup %5318  ;;  %3464 = vmatpush1.xpose.msra.mxu1 %v3421_v27 }
0x1117   : > { %v3420_v48 = vmul.f32 %v5319_v11, %v6721_v34  ;;  %v3419_v32 = vmul.f32 %v5319_v11, %v6717_v41 }
0x1119   : > { %3465 = vmatprep.subr.mxu1 %v3420_v48 }
0x111a   : > { %3466 = vmatpush1.xpose.msra.mxu1 %v3419_v32 }
0x111b   : > { %3591 = vmatprep.subr.mxu1 %v6222_v61 }
0x111d   : > { %3500 = vmatmul.mubr.f32.vlgmr.msra.gmra.mxu1 %v6412_v49 }
0x111e   : > { %3592 = vmatpush1.msra.mxu1 %v6220_v60  ;;  %3625 = vmatprep.mubr.f32.mxu1 %v7108_v17 }
0x1128   : > { %v3521_v31 = vpop.trf.xlu0 }
0x1129   : > { %4694 = vmatmul.mubr.msk.f32.vlgmr.msra.gmra.mxu1 %vm1382_vm1, %v3521_v31 }
0x112a   : > { %3631 = vmatprep.mubr.f32.mxu1 %v7108_v17 }
0x112c   : > { %v3522_v24 = vpop.trf.xlu0 }
0x112d   : > { %4695 = vmatmul.mubr.msk.f32.gmra.mxu1 %vm1382_vm1, %v3522_v24 }
0x112e   : > { %3637 = vmatprep.mubr.f32.mxu1 %v7108_v17 }
0x1130   : > { %v3523_v1 = vpop.trf.xlu0 }
0x1131   : > { %4696 = vmatmul.mubr.msk.f32.gmra.mxu1 %vm1382_vm1, %v3523_v1 }
0x1132   : > { %3643 = vmatprep.mubr.f32.mxu1 %v7108_v17 }
0x1134   : > { %v6764_v61 = vpop.f32.mrf.mxu0  ;;  %v3524_v60 = vpop.trf.xlu0 }
0x1135   : > { %4697 = vmatmul.mubr.msk.f32.gmra.mxu1 %vm1382_vm1, %v3524_v60 }
0x1136   : > { %v6766_v49 = vpop.f32.mrf.mxu0  ;;  %3649 = vmatprep.mubr.f32.mxu1 %v7108_v17 }
0x1137   : > { %v4033_v62 = vmax.f32 %v6764_v61, %v6766_v49 }
0x1138   : > { %v6770_v0 = vpop.f32.mrf.mxu0  ;;  %v3525_v30 = vpop.trf.xlu0 }
0x1139   : > { %4698 = vmatmul.mubr.msk.f32.gmra.mxu1 %vm1382_vm1, %v3525_v30 }
0x113a   : > { %v6772_v19 = vpop.f32.mrf.mxu0  ;;  %3655 = vmatprep.mubr.f32.mxu1 %v7108_v17 }
0x113b   : > { %v4036_v63 = vmax.f32 %v6770_v0, %v6772_v19 }
0x113c   : > { %v6776_v33 = vpop.f32.mrf.mxu0  ;;  %v3526_v4 = vpop.trf.xlu0 }
0x113d   : > { %4699 = vmatmul.mubr.msk.f32.gmra.mxu1 %vm1382_vm1, %v3526_v4 }
0x113e   : > { %v6778_v29 = vpop.f32.mrf.mxu0  ;;  %3661 = vmatprep.mubr.f32.mxu1 %v7108_v17 }
0x1140   : > { %v6782_v9 = vpop.f32.mrf.mxu0  ;;  %v3527_v43 = vpop.trf.xlu0 }
0x1141   : > { %4700 = vmatmul.mubr.msk.f32.gmra.mxu1 %vm1382_vm1, %v3527_v43 }
0x1142   : > { %v6784_v14 = vpop.f32.mrf.mxu0  ;;  %3667 = vmatprep.mubr.f32.mxu1 %v7108_v17 }
0x1143   : > { %v4042_v17 = vmax.f32 %v6782_v9, %v6784_v14 }
0x1144   : > { %v4010_v41 = vpop.f32.mrf.mxu0  ;;  %v3528_v51 = vpop.trf.xlu0 }
0x1145   : > { %4701 = vmatmul.mubr.msk.f32.gmra.mxu1 %vm1382_vm1, %v3528_v51 }
0x1146   : > { %v4012_v36 = vpop.f32.mrf.mxu0  ;;  %3858 = vmatprep.mubr.f32.mxu1 %v6418_v23  ;;  %v4039_v23 = vmax.f32 %v6776_v33, %v6778_v29 }
0x1147   : > { %v4045_v58 = vmax.f32 %v4010_v41, %v4012_v36 }
0x1148   : > { %v4016_v34 = vpop.f32.mrf.mxu0 }
0x114a   : > { %v4018_v16 = vpop.f32.mrf.mxu0 }
0x114b   : > { %v4048_v59 = vmax.f32 %v4016_v34, %v4018_v16 }
0x114c   : > { %v4022_v50 = vpop.f32.mrf.mxu0 }
0x114e   : > { %v4024_v35 = vpop.f32.mrf.mxu0 }
0x114f   : > { %v4051_v42 = vmax.f32 %v4022_v50, %v4024_v35 }
0x1150   : > { %v4028_v12 = vpop.f32.mrf.mxu0 }
0x1152   : > { %v4030_v28 = vpop.f32.mrf.mxu0 }
0x1153   : > { %v4054_v52 = vmax.f32 %v4028_v12, %v4030_v28 }
0x1155   : > { %4055 = vmax.xlane.f32.xlu1 %v4054_v52 }
0x1159   : > { %4052 = vmax.xlane.f32.xlu1 %v4051_v42 }
0x115d   : > { %4049 = vmax.xlane.f32.xlu1 %v4048_v59 }
0x1161   : > { %4046 = vmax.xlane.f32.xlu1 %v4045_v58 }
0x1165   : > { %4043 = vmax.xlane.f32.xlu1 %v4042_v17 }
0x1169   : > { %4040 = vmax.xlane.f32.xlu1 %v4039_v23 }
0x116d   : > { %4037 = vmax.xlane.f32.xlu1 %v4036_v63 }
0x1171   : > { %4034 = vmax.xlane.f32.xlu1 %v4033_v62 }
0x11dd   : > { %v6798_v3 = vpop.f32.mrf.mxu1 }
0x11de   : > { %v4056_v47 = vpop.xlane.xlu1 %4055 }
0x11df   : > { %v4071_v21 = vsub.f32 %v4028_v12, %v4056_v47  ;;  %v4072_v7 = vsub.f32 %v4030_v28, %v4056_v47  ;;  %v3503_v40 = vpop.f32.mrf.mxu1 }
0x11e1   : > { %v4101_v26 = vmul.f32 1.442695, %v4071_v21  ;;  %v4103_v56 = vmul.f32 1.442695, %v4072_v7 }
0x11e2   : > { %v4053_v55 = vpop.xlane.xlu1 %4052 }
0x11e3   : > { %5320 = vpow2.f32 %v4101_v26  ;;  %v4069_v54 = vsub.f32 %v4022_v50, %v4053_v55  ;;  %v4070_v37 = vsub.f32 %v4024_v35, %v4053_v55 }
0x11e4   : > { %5322 = vpow2.f32 %v4103_v56 }
0x11e5   : > { %v4097_v46 = vmul.f32 1.442695, %v4069_v54  ;;  %v4099_v57 = vmul.f32 1.442695, %v4070_v37 }
0x11e6   : > { %v4050_v2 = vpop.xlane.xlu1 %4049 }
0x11e7   : > { %5324 = vpow2.f32 %v4097_v46  ;;  %v4067_v39 = vsub.f32 %v4016_v34, %v4050_v2  ;;  %v4068_v18 = vsub.f32 %v4018_v16, %v4050_v2 }
0x11e8   : > { %5326 = vpow2.f32 %v4099_v57 }
0x11e9   : > { %v4093_v13 = vmul.f32 1.442695, %v4067_v39  ;;  %v4095_v53 = vmul.f32 1.442695, %v4068_v18  ;;  %v6800_v5 = vpop.f32.mrf.mxu1 }
0x11ea   : > { %v4047_v44 = vpop.xlane.xlu1 %4046 }
0x11eb   : > { %5328 = vpow2.f32 %v4093_v13  ;;  %v4065_v8 = vsub.f32 %v4010_v41, %v4047_v44  ;;  %v4066_v20 = vsub.f32 %v4012_v36, %v4047_v44  ;;  %v6802_v10 = vpop.f32.mrf.mxu1 }
0x11ec   : > { %5330 = vpow2.f32 %v4095_v53 }
0x11ed   : > { %v4089_v22 = vmul.f32 1.442695, %v4065_v8  ;;  %v4091_v27 = vmul.f32 1.442695, %v4066_v20  ;;  %v6804_v48 = vpop.f32.mrf.mxu1 }
0x11ee   : > { %v4044_v11 = vpop.xlane.xlu1 %4043 }
0x11ef   : > { %5332 = vpow2.f32 %v4089_v22  ;;  %v4063_v32 = vsub.f32 %v6782_v9, %v4044_v11  ;;  %v4064_v31 = vsub.f32 %v6784_v14, %v4044_v11  ;;  %v6812_v60 = vpop.f32.mrf.mxu1 }
0x11f0   : > { %v6808_v24 = vpop.eup %5320  ;;  %5334 = vpow2.f32 %v4091_v27 }
0x11f1   : > { %v6810_v1 = vpop.eup %5322  ;;  %v4085_v30 = vmul.f32 1.442695, %v4063_v32  ;;  %v4087_v4 = vmul.f32 1.442695, %v4064_v31  ;;  %v6816_v51 = vpop.f32.mrf.mxu1 }
0x11f2   : > { %v4041_v43 = vpop.xlane.xlu1 %4040  ;;  %v4126_v41 = vadd.f32 %v6810_v1, %v6808_v24 }
0x11f3   : > { %5336 = vpow2.f32 %v4085_v30  ;;  %v4061_v9 = vsub.f32 %v6776_v33, %v4041_v43  ;;  %v4062_v14 = vsub.f32 %v6778_v29, %v4041_v43  ;;  %v6824_v16 = vpop.f32.mrf.mxu1 }
0x11f4   : > { %v6820_v36 = vpop.eup %5324  ;;  %5338 = vpow2.f32 %v4087_v4  ;;  %4127 = vadd.xlane.f32.xlu1 %v4126_v41 }
0x11f5   : > { %v6822_v34 = vpop.eup %5326  ;;  %v4081_v50 = vmul.f32 1.442695, %v4061_v9  ;;  %v4083_v35 = vmul.f32 1.442695, %v4062_v14  ;;  %v6828_v52 = vpop.f32.mrf.mxu1  ;;  %v3680_v9 = vmax.f32 %v6816_v51, %v6824_v16  ;;  %v3677_v14 = vmax.f32 %v6804_v48, %v6812_v60 }
0x11f6   : > { %v4038_v12 = vpop.xlane.xlu1 %4037  ;;  %v4123_v28 = vadd.f32 %v6822_v34, %v6820_v36 }
0x11f7   : > { %5340 = vpow2.f32 %v4081_v50  ;;  %v4059_v33 = vsub.f32 %v6770_v0, %v4038_v12  ;;  %v4060_v29 = vsub.f32 %v6772_v19, %v4038_v12  ;;  %v6836_v58 = vpop.f32.mrf.mxu1  ;;  %v3674_v50 = vmax.f32 %v6800_v5, %v6802_v10 }
0x11f8   : > { %v6832_v42 = vpop.eup %5328  ;;  %5342 = vpow2.f32 %v4083_v35  ;;  %4124 = vadd.xlane.f32.xlu1 %v4123_v28  ;;  %v3683_v41 = vmax.f32 %v6828_v52, %v6836_v58 }
0x11f9   : > { %v6834_v59 = vpop.eup %5330  ;;  %v4077_v17 = vmul.f32 1.442695, %v4059_v33  ;;  %v4079_v23 = vmul.f32 1.442695, %v4060_v29  ;;  %v6840_v47 = vpop.f32.mrf.mxu1 }
0x11fa   : > { %v4035_v63 = vpop.xlane.xlu1 %4034  ;;  %v4120_v62 = vadd.f32 %v6834_v59, %v6832_v42 }
0x11fb   : > { %5344 = vpow2.f32 %v4077_v17  ;;  %v4057_v0 = vsub.f32 %v6764_v61, %v4035_v63  ;;  %v4058_v19 = vsub.f32 %v6766_v49, %v4035_v63  ;;  %v6848_v40 = vpop.f32.mrf.mxu1 }
0x11fc   : > { %v6844_v21 = vpop.eup %5332  ;;  %5346 = vpow2.f32 %v4079_v23  ;;  %4121 = vadd.xlane.f32.xlu1 %v4120_v62  ;;  %v3686_v43 = vmax.f32 %v6840_v47, %v6848_v40 }
0x11fd   : > { %v6846_v7 = vpop.eup %5334  ;;  %v4073_v26 = vmul.f32 1.442695, %v4057_v0  ;;  %v4075_v56 = vmul.f32 1.442695, %v4058_v19  ;;  %v6852_v54 = vpop.f32.mrf.mxu1 }
0x11fe   : > { %v4117_v55 = vadd.f32 %v6846_v7, %v6844_v21 }
0x11ff   : > { %5348 = vpow2.f32 %v4073_v26  ;;  %v6858_v49 = vpop.f32.mrf.mxu1 }
0x1200   : > { %v6854_v37 = vpop.eup %5336  ;;  %5350 = vpow2.f32 %v4075_v56  ;;  %4118 = vadd.xlane.f32.xlu1 %v4117_v55  ;;  %v3689_v4 = vmax.f32 %v6852_v54, %v6858_v49 }
0x1201   : > { %v6856_v61 = vpop.eup %5338  ;;  %v6862_v57 = vpop.f32.mrf.mxu1 }
0x1202   : > { %v4114_v46 = vadd.f32 %v6856_v61, %v6854_v37 }
0x1203   : > { %v6868_v18 = vpop.f32.mrf.mxu1 }
0x1204   : > { %v6864_v2 = vpop.eup %5340  ;;  %4115 = vadd.xlane.f32.xlu1 %v4114_v46  ;;  %v3692_v31 = vmax.f32 %v6862_v57, %v6868_v18 }
0x1205   : > { %v6866_v39 = vpop.eup %5342  ;;  %v3669_v53 = vpop.f32.mrf.mxu1 }
0x1206   : > { %v4111_v13 = vadd.f32 %v6866_v39, %v6864_v2 }
0x1207   : > { %v3671_v20 = vpop.f32.mrf.mxu1 }
0x1208   : > { %v6872_v44 = vpop.eup %5344  ;;  %4112 = vadd.xlane.f32.xlu1 %v4111_v13  ;;  %v3695_v22 = vmax.f32 %v3669_v53, %v3671_v20 }
0x1209   : > { %v6874_v8 = vpop.eup %5346 }
0x120a   : > { %v4108_v27 = vadd.f32 %v6874_v8, %v6872_v44  ;;  %3696 = vmax.xlane.f32.xlu0 %v3695_v22 }
0x120c   : > { %v6878_v11 = vpop.eup %5348  ;;  %4109 = vadd.xlane.f32.xlu1 %v4108_v27 }
0x120d   : > { %v6880_v32 = vpop.eup %5350 }
0x120e   : > { %v4105_v30 = vadd.f32 %v6880_v32, %v6878_v11  ;;  %3693 = vmax.xlane.f32.xlu0 %v3692_v31 }
0x1210   : > { %4106 = vadd.xlane.f32.xlu1 %v4105_v30 }
0x1212   : > { %3690 = vmax.xlane.f32.xlu0 %v3689_v4 }
0x1216   : > { %3687 = vmax.xlane.f32.xlu0 %v3686_v43 }
0x121a   : > { %3684 = vmax.xlane.f32.xlu0 %v3683_v41 }
0x121e   : > { %3681 = vmax.xlane.f32.xlu0 %v3680_v9 }
0x1222   : > { %3678 = vmax.xlane.f32.xlu0 %v3677_v14 }
0x1226   : > { %3675 = vmax.xlane.f32.xlu0 %v3674_v50 }
0x127d   : > { %v4128_v35 = vpop.xlane.xlu1 %4127 }
0x127e   : > { %5352 = vrcp.f32 %v4128_v35 }
0x1281   : > { %v4125_v12 = vpop.xlane.xlu1 %4124 }
0x1282   : > { %5354 = vrcp.f32 %v4125_v12 }
0x1285   : > { %v4122_v28 = vpop.xlane.xlu1 %4121 }
0x1286   : > { %5356 = vrcp.f32 %v4122_v28 }
0x1289   : > { %v4119_v33 = vpop.xlane.xlu1 %4118 }
0x128a   : > { %5358 = vrcp.f32 %v4119_v33 }
0x128b   : > { %v5353_v29 = vpop.eup %5352 }
0x128c   : > { %v4152_v17 = vmul.f32 %v5353_v29, %v6810_v1  ;;  %v4151_v23 = vmul.f32 %v5353_v29, %v6808_v24 }
0x128d   : > { %v4116_v63 = vpop.xlane.xlu1 %4115 }
0x128e   : > { %5360 = vrcp.f32 %v4116_v63  ;;  %4169 = vmatprep.subr.mxu0 %v4152_v17 }
0x128f   : > { %v5355_v62 = vpop.eup %5354  ;;  %4170 = vmatpush1.xpose.msra.mxu0 %v4151_v23 }
0x1290   : > { %v4150_v0 = vmul.f32 %v5355_v62, %v6822_v34  ;;  %v4149_v19 = vmul.f32 %v5355_v62, %v6820_v36 }
0x1291   : > { %v4113_v26 = vpop.xlane.xlu1 %4112 }
0x1292   : > { %5362 = vrcp.f32 %v4113_v26  ;;  %4171 = vmatprep.subr.mxu0 %v4150_v0 }
0x1293   : > { %v5357_v56 = vpop.eup %5356  ;;  %4172 = vmatpush1.xpose.msra.mxu0 %v4149_v19  ;;  %v3697_v46 = vpop.xlane.xlu0 %3696 }
0x1294   : > { %v4148_v55 = vmul.f32 %v5357_v56, %v6834_v59  ;;  %v4147_v1 = vmul.f32 %v5357_v56, %v6832_v42  ;;  %v3712_v13 = vsub.f32 %v3669_v53, %v3697_v46  ;;  %v3713_v22 = vsub.f32 %v3671_v20, %v3697_v46 }
0x1295   : > { %v4110_v24 = vpop.xlane.xlu1 %4109 }
0x1296   : > { %5364 = vrcp.f32 %v4110_v24  ;;  %4173 = vmatprep.subr.mxu0 %v4148_v55  ;;  %v3742_v34 = vmul.f32 1.442695, %v3712_v13  ;;  %v3744_v31 = vmul.f32 1.442695, %v3713_v22 }
0x1297   : > { %v5359_v27 = vpop.eup %5358  ;;  %4174 = vmatpush1.xpose.msra.mxu0 %v4147_v1  ;;  %v3694_v4 = vpop.xlane.xlu0 %3693 }
0x1298   : > { %v4146_v36 = vmul.f32 %v5359_v27, %v6846_v7  ;;  %v4145_v30 = vmul.f32 %v5359_v27, %v6844_v21  ;;  %5366 = vpow2.f32 %v3742_v34  ;;  %v3710_v59 = vsub.f32 %v6862_v57, %v3694_v4 }
0x1299   : > { %v4107_v43 = vpop.xlane.xlu1 %4106  ;;  %v3711_v42 = vsub.f32 %v6868_v18, %v3694_v4  ;;  %5368 = vpow2.f32 %v3744_v31 }
0x129a   : > { %4175 = vmatprep.subr.mxu0 %v4146_v36  ;;  %v3738_v20 = vmul.f32 1.442695, %v3710_v59  ;;  %5370 = vrcp.f32 %v4107_v43 }
0x129b   : > { %v5361_v53 = vpop.eup %5360  ;;  %4176 = vmatpush1.xpose.msra.mxu0 %v4145_v30  ;;  %v3740_v41 = vmul.f32 1.442695, %v3711_v42  ;;  %v3691_v14 = vpop.xlane.xlu0 %3690 }
0x129c   : > { %v4144_v9 = vmul.f32 %v5361_v53, %v6856_v61  ;;  %v4143_v7 = vmul.f32 %v5361_v53, %v6854_v37  ;;  %5372 = vpow2.f32 %v3738_v20  ;;  %v3708_v21 = vsub.f32 %v6852_v54, %v3691_v14 }
0x129d   : > { %v3709_v50 = vsub.f32 %v6858_v49, %v3691_v14  ;;  %5374 = vpow2.f32 %v3740_v41 }
0x129e   : > { %4177 = vmatprep.subr.mxu0 %v4144_v9  ;;  %v3734_v18 = vmul.f32 1.442695, %v3708_v21 }
0x129f   : > { %v5363_v57 = vpop.eup %5362  ;;  %4178 = vmatpush1.xpose.msra.mxu0 %v4143_v7  ;;  %v3736_v35 = vmul.f32 1.442695, %v3709_v50  ;;  %v3688_v33 = vpop.xlane.xlu0 %3687 }
0x12a0   : > { %v4142_v12 = vmul.f32 %v5363_v57, %v6866_v39  ;;  %v4141_v28 = vmul.f32 %v5363_v57, %v6864_v2  ;;  %5376 = vpow2.f32 %v3734_v18  ;;  %v3706_v61 = vsub.f32 %v6840_v47, %v3688_v33  ;;  %v7109_v18 = vld [vmem:[#allocation21_spill] sm:$0xff] }
0x12a1   : > { %v3707_v37 = vsub.f32 %v6848_v40, %v3688_v33  ;;  %5378 = vpow2.f32 %v3736_v35 }
0x12a2   : > { %4179 = vmatprep.subr.mxu0 %v4142_v12  ;;  %v3730_v49 = vmul.f32 1.442695, %v3706_v61 }
0x12a3   : > { %v5365_v54 = vpop.eup %5364  ;;  %4180 = vmatpush1.xpose.msra.mxu0 %v4141_v28  ;;  %v3732_v29 = vmul.f32 1.442695, %v3707_v37  ;;  %v3685_v63 = vpop.xlane.xlu0 %3684 }
0x12a4   : > { %v4140_v17 = vmul.f32 %v5365_v54, %v6874_v8  ;;  %v4139_v23 = vmul.f32 %v5365_v54, %v6872_v44  ;;  %5380 = vpow2.f32 %v3730_v49  ;;  %v3704_v2 = vsub.f32 %v6828_v52, %v3685_v63 }
0x12a5   : > { %v3705_v39 = vsub.f32 %v6836_v58, %v3685_v63  ;;  %v6920_v47 = vpop.eup %5366  ;;  %5382 = vpow2.f32 %v3732_v29 }
0x12a6   : > { %4181 = vmatprep.subr.mxu0 %v4140_v17  ;;  %v6922_v40 = vpop.eup %5368  ;;  %v3726_v62 = vmul.f32 1.442695, %v3704_v2 }
0x12a7   : > { %4182 = vmatpush1.xpose.msra.mxu0 %v4139_v23  ;;  %v3728_v0 = vmul.f32 1.442695, %v3705_v39  ;;  %v5371_v19 = vpop.eup %5370  ;;  %v3682_v26 = vpop.xlane.xlu0 %3681  ;;  %v3767_v44 = vadd.f32 %v6922_v40, %v6920_v47 }
0x12a8   : > { %5384 = vpow2.f32 %v3726_v62  ;;  %v3702_v8 = vsub.f32 %v6816_v51, %v3682_v26  ;;  %v3703_v52 = vsub.f32 %v6824_v16, %v3682_v26  ;;  %v4138_v58 = vmul.f32 %v5371_v19, %v6880_v32 }
0x12a9   : > { %v6929_v56 = vpop.eup %5372  ;;  %5386 = vpow2.f32 %v3728_v0  ;;  %3768 = vadd.xlane.f32.xlu0 %v3767_v44  ;;  %v4137_v55 = vmul.f32 %v5371_v19, %v6878_v11 }
0x12aa   : > { %v6932_v1 = vpop.eup %5374  ;;  %v3722_v46 = vmul.f32 1.442695, %v3702_v8  ;;  %v3724_v24 = vmul.f32 1.442695, %v3703_v52  ;;  %4183 = vmatprep.subr.mxu0 %v4138_v58 }
0x12ab   : > { %v3679_v13 = vpop.xlane.xlu0 %3678  ;;  %4184 = vmatpush1.xpose.msra.mxu0 %v4137_v55  ;;  %v3764_v51 = vadd.f32 %v6932_v1, %v6929_v56 }
0x12ac   : > { %5388 = vpow2.f32 %v3722_v46  ;;  %v3700_v16 = vsub.f32 %v6804_v48, %v3679_v13  ;;  %v3701_v32 = vsub.f32 %v6812_v60, %v3679_v13  ;;  %v7110_v46 = vld [vmem:[#allocation20_spill] sm:$0xff] }
0x12ad   : > { %v6938_v22 = vpop.eup %5376  ;;  %5390 = vpow2.f32 %v3724_v24  ;;  %3765 = vadd.xlane.f32.xlu0 %v3764_v51  ;;  %v4230_v51 = vld [vmem:[#allocation13 + $0x38] sm:$0xff] }
0x12ae   : > { %v6940_v11 = vpop.eup %5378  ;;  %v3718_v27 = vmul.f32 1.442695, %v3700_v16  ;;  %v3720_v34 = vmul.f32 1.442695, %v3701_v32  ;;  %4218 = vmatmul.mubr.f32.vlgmr.msra.gmra.mxu0 %v6420_v25  ;;  %v4229_v16 = vld [vmem:[#allocation13 + $0x30] sm:$0xff]  ;;  %v4228_v32 = vld [vmem:[#allocation13 + $0x28] sm:$0xff] }
0x12af   : > { %v3676_v31 = vpop.xlane.xlu0 %3675  ;;  %v3761_v36 = vadd.f32 %v6940_v11, %v6938_v22 }
0x12b0   : > { %5392 = vpow2.f32 %v3718_v27  ;;  %v3698_v30 = vsub.f32 %v6800_v5, %v3676_v31  ;;  %v3699_v48 = vsub.f32 %v6802_v10, %v3676_v31  ;;  %v4225_v27 = vld [vmem:[#allocation13 + $0x10] sm:$0xff]  ;;  %v4223_v31 = vld [vmem:[#allocation13] sm:$0xff] }
0x12b1   : > { %v6947_v60 = vpop.eup %5380  ;;  %5394 = vpow2.f32 %v3720_v34  ;;  %3762 = vadd.xlane.f32.xlu0 %v3761_v36  ;;  %v4224_v34 = vld [vmem:[#allocation13 + $0x8] sm:$0xff] }
0x12b2   : > { %v5383_v4 = vpop.eup %5382  ;;  %v3714_v43 = vmul.f32 1.442695, %v3698_v30  ;;  %v3716_v59 = vmul.f32 1.442695, %v3699_v48 }
0x12b3   : > { %v3758_v42 = vadd.f32 %v5383_v4, %v6947_v60 }
0x12b4   : > { %5396 = vpow2.f32 %v3714_v43 }
0x12b5   : > { %v5385_v25 = vpop.eup %5384  ;;  %5398 = vpow2.f32 %v3716_v59  ;;  %3759 = vadd.xlane.f32.xlu0 %v3758_v42 }
0x12b6   : > { %v5387_v53 = vpop.eup %5386 }
0x12b7   : > { %v3755_v20 = vadd.f32 %v5387_v53, %v5385_v25 }
0x12b9   : > { %v5389_v41 = vpop.eup %5388  ;;  %3756 = vadd.xlane.f32.xlu0 %v3755_v20  ;;  %v4710_v20 = vld [vmem:[%s7070_s9] ss:$0 sm:$0xff] }
0x12ba   : > { %v5391_v5 = vpop.eup %5390 }
0x12bb   : > { %v3752_v9 = vadd.f32 %v5391_v5, %v5389_v41 }
0x12bd   : > { %v6950_v10 = vpop.eup %5392  ;;  %3753 = vadd.xlane.f32.xlu0 %v3752_v9 }
0x12be   : > { %v5395_v14 = vpop.eup %5394 }
0x12bf   : > { %v3749_v7 = vadd.f32 %v5395_v14, %v6950_v10 }
0x12c1   : > { %v6953_v21 = vpop.eup %5396  ;;  %3750 = vadd.xlane.f32.xlu0 %v3749_v7 }
0x12c2   : > { %v5399_v50 = vpop.eup %5398 }
0x12c3   : > { %v3746_v57 = vadd.f32 %v5399_v50, %v6953_v21 }
0x12c5   : > { %3747 = vadd.xlane.f32.xlu0 %v3746_v57 }
0x12f2   : > { %4238 = vxpose.xlu0.b32.start [1/8] (short) (narrow) %v7109_v18, 64 }
0x12f6   : > { %4239 = vxpose.xlu0.b32.cont [2/8] (short) (narrow) %v6475_v45, 64 }
0x12fa   : > { %4240 = vxpose.xlu0.b32.cont [3/8] (short) (narrow) %v6534_v15, 64 }
0x12fe   : > { %4241 = vxpose.xlu0.b32.cont [4/8] (short) (narrow) %v6585_v38, 64 }
0x1302   : > { %4242 = vxpose.xlu0.b32.cont [5/8] (short) (narrow) %v6646_v6, 64 }
0x1306   : > { %4243 = vxpose.xlu0.b32.cont [6/8] (short) (narrow) %v6798_v3, 64 }
0x1332   : > { %v3769_v35 = vpop.xlane.xlu0 %3768 }
0x1333   : > { %5400 = vrcp.f32 %v3769_v35 }
0x1336   : > { %v3766_v12 = vpop.xlane.xlu0 %3765 }
0x1337   : > { %5402 = vrcp.f32 %v3766_v12  ;;  %v5418_v12 = vld [vmem:[%s5944_s3 + $0x18] sm:$0xff] }
0x133a   : > { %v3763_v28 = vpop.xlane.xlu0 %3762 }
0x133b   : > { %5404 = vrcp.f32 %v3763_v28 }
0x133e   : > { %v3760_v33 = vpop.xlane.xlu0 %3759 }
0x133f   : > { %5406 = vrcp.f32 %v3760_v33 }
0x1340   : > { %v5401_v61 = vpop.eup %5400 }
0x1341   : > { %v3793_v37 = vmul.f32 %v5401_v61, %v6922_v40  ;;  %v3792_v45 = vmul.f32 %v5401_v61, %v6920_v47  ;;  %v5419_v61 = vld [vmem:[%s5944_s3 + $0x10] sm:$0xff] }
0x1342   : > { %v3757_v15 = vpop.xlane.xlu0 %3756 }
0x1343   : > { %5408 = vrcp.f32 %v3757_v15  ;;  %3810 = vmatprep.subr.mxu1 %v3793_v37 }
0x1344   : > { %v5403_v38 = vpop.eup %5402  ;;  %3811 = vmatpush1.xpose.msra.mxu1 %v3792_v45 }
0x1345   : > { %v3791_v6 = vmul.f32 %v5403_v38, %v6932_v1  ;;  %v3790_v3 = vmul.f32 %v5403_v38, %v6929_v56 }
0x1346   : > { %v3754_v54 = vpop.xlane.xlu0 %3753 }
0x1347   : > { %5410 = vrcp.f32 %v3754_v54  ;;  %3812 = vmatprep.subr.mxu1 %v3791_v6  ;;  %v5420_v6 = vld [vmem:[%s5944_s3 + $0x28] sm:$0xff] }
0x1348   : > { %v5405_v49 = vpop.eup %5404  ;;  %3813 = vmatpush1.xpose.msra.mxu1 %v3790_v3 }
0x1349   : > { %v3789_v29 = vmul.f32 %v5405_v49, %v6940_v11  ;;  %v3788_v17 = vmul.f32 %v5405_v49, %v6938_v22  ;;  %v4227_v22 = vld [vmem:[#allocation13 + $0x20] sm:$0xff]  ;;  %v4226_v11 = vld [vmem:[#allocation13 + $0x18] sm:$0xff] }
0x134a   : > { %v3751_v23 = vpop.xlane.xlu0 %3750  ;;  %v5421_v49 = vld [vmem:[%s5944_s3 + $0x20] sm:$0xff] }
0x134b   : > { %5412 = vrcp.f32 %v3751_v23  ;;  %3814 = vmatprep.subr.mxu1 %v3789_v29 }
0x134c   : > { %v5407_v63 = vpop.eup %5406  ;;  %3815 = vmatpush1.xpose.msra.mxu1 %v3788_v17 }
0x134d   : > { %v3787_v2 = vmul.f32 %v5407_v63, %v5383_v4  ;;  %v3786_v39 = vmul.f32 %v5407_v63, %v6947_v60 }
0x134e   : > { %v3748_v47 = vpop.xlane.xlu0 %3747 }
0x134f   : > { %5414 = vrcp.f32 %v3748_v47  ;;  %3816 = vmatprep.subr.mxu1 %v3787_v2  ;;  %v5422_v2 = vld [vmem:[%s5944_s3 + $0x38] sm:$0xff] }
0x1350   : > { %v5409_v40 = vpop.eup %5408  ;;  %3817 = vmatpush1.xpose.msra.mxu1 %v3786_v39 }
0x1351   : > { %v3785_v62 = vmul.f32 %v5409_v40, %v5387_v53  ;;  %v3784_v0 = vmul.f32 %v5409_v40, %v5385_v25  ;;  %v5423_v40 = vld [vmem:[%s5944_s3 + $0x30] sm:$0xff] }
0x1353   : > { %3818 = vmatprep.subr.mxu1 %v3785_v62 }
0x1354   : > { %v5411_v19 = vpop.eup %5410  ;;  %3819 = vmatpush1.xpose.msra.mxu1 %v3784_v0 }
0x1355   : > { %v3783_v26 = vmul.f32 %v5411_v19, %v5391_v5  ;;  %v3782_v44 = vmul.f32 %v5411_v19, %v5389_v41 }
0x1357   : > { %3820 = vmatprep.subr.mxu1 %v3783_v26 }
0x1358   : > { %v5413_v8 = vpop.eup %5412  ;;  %3821 = vmatpush1.xpose.msra.mxu1 %v3782_v44 }
0x1359   : > { %v3781_v52 = vmul.f32 %v5413_v8, %v5395_v14  ;;  %v3780_v58 = vmul.f32 %v5413_v8, %v6950_v10  ;;  %v5416_v10 = vld [vmem:[%s5944_s3 + $0x8] sm:$0xff] }
0x135b   : > { %3822 = vmatprep.subr.mxu1 %v3781_v52 }
0x135c   : > { %v5415_v56 = vpop.eup %5414  ;;  %3823 = vmatpush1.xpose.msra.mxu1 %v3780_v58 }
0x135d   : > { %v3779_v55 = vmul.f32 %v5415_v56, %v5399_v50  ;;  %v3778_v1 = vmul.f32 %v5415_v56, %v6953_v21  ;;  %v5417_v21 = vld [vmem:[%s5944_s3] sm:$0xff] }
0x135f   : > { %3824 = vmatprep.subr.mxu1 %v3779_v55 }
0x1360   : > { %3825 = vmatpush1.xpose.msra.mxu1 %v3778_v1 }
0x1361   : > { %4874 = vmatprep.subr.mxu1 %v4230_v51 }
0x1363   : > { %3859 = vmatmul.mubr.f32.vlgmr.msra.gmra.mxu1 %v7110_v46 }
0x1364   : > { %4875 = vmatpush3.msra.mxu1 %v4230_v51 }
0x1365   : > { %4876 = vmatprep.subr.mxu1 %v4229_v16 }
0x1366   : > { %4877 = vmatpush3.msra.mxu1 %v4229_v16 }
0x1367   : > { %4878 = vmatprep.subr.mxu1 %v4228_v32 }
0x1368   : > { %4879 = vmatpush3.msra.mxu1 %v4228_v32 }
0x1369   : > { %4880 = vmatprep.subr.mxu1 %v4227_v22 }
0x136a   : > { %4881 = vmatpush3.msra.mxu1 %v4227_v22 }
0x136b   : > { %4882 = vmatprep.subr.mxu1 %v4226_v11 }
0x136c   : > { %4883 = vmatpush3.msra.mxu1 %v4226_v11 }
0x136d   : > { %4884 = vmatprep.subr.mxu1 %v4225_v27 }
0x136e   : > { %v4219_v24 = vpop.f32.mrf.mxu0  ;;  %4885 = vmatpush3.msra.mxu1 %v4225_v27 }
0x136f   : > { %4886 = vmatprep.subr.mxu1 %v4224_v34 }
0x1370   : > { %v4221_v13 = vpop.f32.mrf.mxu0  ;;  %4887 = vmatpush3.msra.mxu1 %v4224_v34 }
0x1371   : > { %4888 = vmatprep.subr.mxu1 %v4223_v31 }
0x1372   : > { %4889 = vmatpush3.msra.mxu1 %v4223_v31 }
0x1423   : > { %v3860_v36 = vpop.f32.mrf.mxu1 }
0x1424   : > { %4244 = vxpose.xlu0.b32.cont [7/8] (short) (narrow) %v3860_v36, 64 }
0x1425   : > { %v3862_v30 = vpop.f32.mrf.mxu1 }
0x1428   : > { %4245 = vxpose.xlu0.b32.end [8/8] (short) (narrow) %v4219_v24, 64 }
0x1488   : > { %v4254_v48 = vpop.trf.xlu0 }
0x1489   : > { %4890 = vmatprep.mubr.msk.f32.mxu1 %vm473_vm0, %v4254_v48 }
0x148c   : > { %v4255_v60 = vpop.trf.xlu0 }
0x148d   : > { %4891 = vmatmul.mubr.msk.f32.vlgmr.msra.gmra.mxu1 %vm473_vm0, %v4255_v60 }
0x1490   : > { %v4256_v4 = vpop.trf.xlu0 }
0x1491   : > { %4893 = vmatprep.mubr.msk.f32.mxu1 %vm473_vm0, %v4256_v4 }
0x1494   : > { %v4257_v43 = vpop.trf.xlu0 }
0x1495   : > { %4894 = vmatmul.mubr.msk.f32.gmra.mxu1 %vm473_vm0, %v4257_v43 }
0x1498   : > { %v4258_v59 = vpop.trf.xlu0 }
0x1499   : > { %4896 = vmatprep.mubr.msk.f32.mxu1 %vm473_vm0, %v4258_v59 }
0x149c   : > { %v4259_v42 = vpop.trf.xlu0 }
0x149d   : > { %4897 = vmatmul.mubr.msk.f32.gmra.mxu1 %vm473_vm0, %v4259_v42 }
0x14a0   : > { %v4260_v25 = vpop.trf.xlu0 }
0x14a1   : > { %4899 = vmatprep.mubr.msk.f32.mxu1 %vm473_vm0, %v4260_v25 }
0x14a4   : > { %v4261_v53 = vpop.trf.xlu0 }
0x14a5   : > { %4900 = vmatmul.mubr.msk.f32.gmra.mxu1 %vm473_vm0, %v4261_v53 }
0x154d   : > { %v4892_v41 = vpop.f32.mrf.mxu1 }
0x154e   : > { %v4366_v5 = vadd.f32 %v4892_v41, %v4710_v20 }
0x154f   : > { %v4360_v9 = vpop.f32.mrf.mxu1 }
0x1550   : > { %v4400_v14 = vadd.f32 %v5416_v10, %v4366_v5  ;;  %v4361_v7 = vadd.f32 %v4710_v20, %v4360_v9 }
0x1552   : > { %4408 = vst.msk [vmem:[%s6986_s11 + $0x8] sm:$0xff] %vm473_vm0, %v4400_v14  ;;  %v4399_v50 = vadd.f32 %v5417_v21, %v4361_v7 }
0x1554   : > { %4407 = vst.msk [vmem:[%s6986_s11] sm:$0xff] %vm473_vm0, %v4399_v50 }
0x1555   : > { %v4895_v57 = vpop.f32.mrf.mxu1 }
0x1556   : > { %v4376_v18 = vadd.f32 %v4895_v57, %v4710_v20 }
0x1557   : > { %v4370_v35 = vpop.f32.mrf.mxu1 }
0x1558   : > { %v4402_v28 = vadd.f32 %v5418_v12, %v4376_v18  ;;  %v4371_v33 = vadd.f32 %v4710_v20, %v4370_v35 }
0x155a   : > { %4410 = vst.msk [vmem:[%s6986_s11 + $0x18] sm:$0xff] %vm473_vm0, %v4402_v28  ;;  %v4401_v37 = vadd.f32 %v5419_v61, %v4371_v33 }
0x155c   : > { %4409 = vst.msk [vmem:[%s6986_s11 + $0x10] sm:$0xff] %vm473_vm0, %v4401_v37 }
0x155d   : > { %v4898_v45 = vpop.f32.mrf.mxu1 }
0x155e   : > { %v4386_v15 = vadd.f32 %v4898_v45, %v4710_v20 }
0x155f   : > { %v4380_v38 = vpop.f32.mrf.mxu1 }
0x1560   : > { %v4404_v3 = vadd.f32 %v5420_v6, %v4386_v15  ;;  %v4381_v54 = vadd.f32 %v4710_v20, %v4380_v38 }
0x1562   : > { %4412 = vst.msk [vmem:[%s6986_s11 + $0x28] sm:$0xff] %vm473_vm0, %v4404_v3  ;;  %v4403_v29 = vadd.f32 %v5421_v49, %v4381_v54 }
0x1564   : > { %4411 = vst.msk [vmem:[%s6986_s11 + $0x20] sm:$0xff] %vm473_vm0, %v4403_v29 }
0x1565   : > { %v4901_v17 = vpop.f32.mrf.mxu1 }
0x1566   : > { %v4396_v23 = vadd.f32 %v4901_v17, %v4710_v20 }
0x1567   : > { %v4390_v63 = vpop.f32.mrf.mxu1 }
0x1568   : > { %v4406_v39 = vadd.f32 %v5422_v2, %v4396_v23  ;;  %v4391_v47 = vadd.f32 %v4710_v20, %v4390_v63 }
0x156a   : > { %4414 = vst.msk [vmem:[%s6986_s11 + $0x38] sm:$0xff] %vm473_vm0, %v4406_v39  ;;  %v4405_v62 = vadd.f32 %v5423_v40, %v4391_v47 }
0x156c   : > { %4413 = vst.msk [vmem:[%s6986_s11 + $0x30] sm:$0xff] %vm473_vm0, %v4405_v62 }
0x156d   : > { %5621 = shalt.err (!%p5618_p3)
}
0x156e   : > { %s5622_s3 = scalar_lea.hbm %s7011_s6, 1024  ;;  %s5626_s23 = scalar_lea.hbm %s7071_s10, 2048 }
0x156f   : > { %p5623_p4 = scmp.ne.s32.totalorder %s7011_s6, %s5622_s3  ;;  %p5627_p0 = scmp.lt.s32.totalorder %s7011_s6, %s7071_s10 }
0x1570   : > { %p5628_p7 = scmp.lt.s32.totalorder %s5626_s23, %s5622_s3 }
0x1571   : > { %p5624_p6 = pnand %p5623_p4, %p7111_p9 }
0x1572   : > { %p5629_p2 = por %p5628_p7, %p5627_p0 }
0x1573   : > { %p5625_p12 = pneg %p5624_p6 }
0x1575   : > { %p5630_p8 = pnand %p5629_p2, %p5625_p12 }
0x1577   : > { %5633 = shalt.err (!%p5630_p8)
}
0x1578   : > { %s5699_s5 = smov 128   ;;  %s5700_s27 = smov 8  }
0x1579   : > { %4928 = dma.vmem_to_hbm [thread:$0]  (%p7111_p9), %s7013_s24, 1024, %s7011_s6, %s4416_s19, %s5699_s5, %s5699_s5, %s5700_s27  }
0x157a PF: > { %s4444_s21 = sand.u32 1, %s5672_s13   ;;  %p7112_p10 = scmp.ne.s32.totalorder %s7094_s25, 0 }
0x157b   : > { %p7113_p11 = scmp.ge.s32.totalorder %s5684_s16, 2  ;;  %s4445_s4 = scalar_lea.sflag [#allocation4], %s4444_s21 }
0x157d   : > { %p4954_p13 = pnand %p7113_p11, %p7112_p10 }
0x157f   : > { %p4955_p5 = pneg %p4954_p13 }
0x1581   : > { %5667 = dma.done.wait (%p4955_p5), %s4445_s4, 1024  }
0x1582   : > { %5669 = vsyncadd (%p4955_p5), %s4445_s4, 4294966272  ;;  %p26_p1 = scmp.ge.s32.totalorder %s5863_s26, 4   ;;  %s7114_s13 = smov %s5676_s14 }
0x1583   : > { %s7115_s14 = smov %s5680_s15  ;;  %s7116_s15 = smov %s5874_s30 }
0x1584   : > { %s7117_s16 = smov %s5863_s26  ;;  %28 = sbr.rel (!%p26_p1) target bundleno = 13 (0xd), region = 129 }
0x1589   :  { %4450 = vsyncpa [#allocation3], 1 }
0x158a   :  { %4452 = vsyncpa [#allocation3 + $0x1], 1 }
0x158b   :  { %4453 = vsyncpa [#allocation6], 1 }
0x158c   :  { %4454 = vsyncpa [#allocation9], 1 }
0x158d   :  { %4455 = vsyncpa [#allocation12], 1 }
0x158e   :  { %4456 = vsyncpa [#allocation4], 1 }
0x158f   :  { %4458 = vsyncpa [#allocation4 + $0x1], 1 }

</bundles_post_ra>
